<compile_context>
chip_gen: v6e
topology: v6e:2x2x1
jax: 0.10.0
libtpu: 0.0.40
codegen_flags: <defaults>
</compile_context>

<pallas_src>
import functools

import jax
import jax.numpy as jnp
import numpy as np
from jax.experimental import pallas as pl
from jax.experimental.pallas import tpu as pltpu


# ----------------------------- Pallas kernel -----------------------------

def _generator_kernel(z_ref, y_ref, w1_ref, b1_ref, w2_ref, b2_ref,
                      w3a_ref, w3b_ref, b3_ref, o_ref):
    # m1: Linear(100, 200) + ReLU on the random code Z.
    h1 = jnp.dot(z_ref[...], w1_ref[...], preferred_element_type=jnp.float32)
    h1 = jnp.maximum(h1 + b1_ref[...], 0.0)

    # m2: Linear(9, 1000) + ReLU on the conditioning input Y.
    h2 = jnp.dot(y_ref[...], w2_ref[...], preferred_element_type=jnp.float32)
    h2 = jnp.maximum(h2 + b2_ref[...], 0.0)

    # Dropout(0.5): identity in eval mode.

    # m3: Linear(1200, 784) + Sigmoid.
    # cat((h1, h2), -1) @ W3  ==  h1 @ W3[:200] + h2 @ W3[200:]  (no concat needed).
    logits = (jnp.dot(h1, w3a_ref[...], preferred_element_type=jnp.float32)
              + jnp.dot(h2, w3b_ref[...], preferred_element_type=jnp.float32)
              + b3_ref[...])
    o_ref[...] = jax.nn.sigmoid(logits).astype(o_ref.dtype)


# ----------------------------- Wrapper -----------------------------

def _round_up(x, m):
    return (x + m - 1) // m * m


def old_generator_forward(params, Y, Z, tm=256):
    """Y: (B, 9) float32, Z: (B, 100) float32 -> (B, 1, 28, 28) float32."""
    B = Y.shape[0]
    Y = Y.astype(jnp.float32)
    Z = Z.astype(jnp.float32)

    # Row (batch) tiling: pad rows to a multiple of 8 sublanes / tile size.
    tm = min(tm, _round_up(B, 8))
    Bp = _round_up(B, tm)
    if Bp != B:
        pad = ((0, Bp - B), (0, 0))
        Y = jnp.pad(Y, pad)
        Z = jnp.pad(Z, pad)

    w1, b1 = params["m1_w"], params["m1_b"]          # (100, 200), (1, 200)
    w2, b2 = params["m2_w"], params["m2_b"]          # (9, 1000), (1, 1000)
    w3a, w3b, b3 = params["m3_wa"], params["m3_wb"], params["m3_b"]  # (200,784),(1000,784),(1,784)

    full = lambda i: (0, 0)
    row = lambda i: (i, 0)

    out = pl.pallas_call(
        _generator_kernel,
        out_shape=jax.ShapeDtypeStruct((Bp, 784), jnp.float32),
        grid=(Bp // tm,),
        in_specs=[
            pl.BlockSpec((tm, 100), row),            # Z tile
            pl.BlockSpec((tm, 9), row),              # Y tile
            pl.BlockSpec((100, 200), full),          # W1
            pl.BlockSpec((1, 200), full),            # b1
            pl.BlockSpec((9, 1000), full),           # W2
            pl.BlockSpec((1, 1000), full),           # b2
            pl.BlockSpec((200, 784), full),          # W3[:200]
            pl.BlockSpec((1000, 784), full),         # W3[200:]
            pl.BlockSpec((1, 784), full),            # b3
        ],
        out_specs=pl.BlockSpec((tm, 784), row),
        compiler_params=pltpu.CompilerParams(
            dimension_semantics=("parallel",),
            vmem_limit_bytes=48 << 20,
        ),
    )(Z, Y, w1, b1, w2, b2, w3a, w3b, b3)

    return out[:B].reshape(B, 1, 28, 28)


# ----------------------------- Parameter init -----------------------------

def init_params(key):
    """PyTorch nn.Linear default init; weights stored pre-transposed as (in, out)."""
    keys = iter(jax.random.split(key, 8))

    def lin(fan_in, fan_out):
        lim = 1.0 / np.sqrt(fan_in)
        w = jax.random.uniform(next(keys), (fan_in, fan_out), jnp.float32, -lim, lim)
        b = jax.random.uniform(next(keys), (1, fan_out), jnp.float32, -lim, lim)
        return w, b

    m1_w, m1_b = lin(100, 200)
    m2_w, m2_b = lin(9, 1000)
    m3_w, m3_b = lin(1200, 784)
    return {
        "m1_w": m1_w, "m1_b": m1_b,
        "m2_w": m2_w, "m2_b": m2_b,
        # Split W3 along its input dim so the concat never materializes.
        "m3_wa": m3_w[:200], "m3_wb": m3_w[200:], "m3_b": m3_b,
    }


# ----------------------------- Main -----------------------------

if __name__ == "__main__":
    key = jax.random.PRNGKey(0)
    kp, ky, kz = jax.random.split(key, 3)
    params = init_params(kp)

    B = 2
    Y = jax.random.uniform(ky, (B, 9), jnp.float32)          # conditioning input
    Z = jax.random.uniform(kz, (B, 100), jnp.float32)        # torch.rand equivalent

    out = old_generator_forward(params, Y, Z)
    out = jax.block_until_ready(out)

    assert out.shape == (B, 1, 28, 28) and out.dtype == jnp.float32
    assert bool(jnp.all(jnp.isfinite(out)))
    assert bool(jnp.all((out >= 0.0) & (out <= 1.0)))        # sigmoid range
    print("KERNEL_OK")
</pallas_src>

<mosaic_0001>
module attributes {stable_mosaic.version = 11 : i64} {
  func.func @_generator_kernel(%arg0: i32, %arg1: memref<8x100xf32, #tpu.memory_space<vmem>>, %arg2: memref<8x9xf32, #tpu.memory_space<vmem>>, %arg3: memref<100x200xf32, #tpu.memory_space<vmem>>, %arg4: memref<1x200xf32, #tpu.memory_space<vmem>>, %arg5: memref<9x1000xf32, #tpu.memory_space<vmem>>, %arg6: memref<1x1000xf32, #tpu.memory_space<vmem>>, %arg7: memref<200x784xf32, #tpu.memory_space<vmem>>, %arg8: memref<1000x784xf32, #tpu.memory_space<vmem>>, %arg9: memref<1x784xf32, #tpu.memory_space<vmem>>, %arg10: memref<8x784xf32, #tpu.memory_space<vmem>>) attributes {dimension_semantics = [#tpu.dimension_semantics<parallel>], iteration_bounds = array<i64: 1>, scalar_prefetch = 0 : i64, scratch_operands = 0 : i64, tpu.core_type = #tpu.core_type<tc>, window_params = [{transform_indices = @transform_0, window_bounds = array<i64: 8, 100>}, {transform_indices = @transform_1, window_bounds = array<i64: 8, 9>}, {pipeline_mode = #tpu.pipeline_mode<synchronous>, transform_indices = @transform_2, window_bounds = array<i64: 100, 200>}, {pipeline_mode = #tpu.pipeline_mode<synchronous>, transform_indices = @transform_3, window_bounds = array<i64: 1, 200>}, {pipeline_mode = #tpu.pipeline_mode<synchronous>, transform_indices = @transform_4, window_bounds = array<i64: 9, 1000>}, {pipeline_mode = #tpu.pipeline_mode<synchronous>, transform_indices = @transform_5, window_bounds = array<i64: 1, 1000>}, {pipeline_mode = #tpu.pipeline_mode<synchronous>, transform_indices = @transform_6, window_bounds = array<i64: 200, 784>}, {pipeline_mode = #tpu.pipeline_mode<synchronous>, transform_indices = @transform_7, window_bounds = array<i64: 1000, 784>}, {pipeline_mode = #tpu.pipeline_mode<synchronous>, transform_indices = @transform_8, window_bounds = array<i64: 1, 784>}, {transform_indices = @transform_9, window_bounds = array<i64: 8, 784>}]} {
    %c0 = arith.constant 0 : index
    %c0_0 = arith.constant 0 : index
    %0 = vector.load %arg1[%c0, %c0_0] : memref<8x100xf32, #tpu.memory_space<vmem>>, vector<8x100xf32>
    %c0_1 = arith.constant 0 : index
    %c0_2 = arith.constant 0 : index
    %1 = vector.load %arg3[%c0_1, %c0_2] : memref<100x200xf32, #tpu.memory_space<vmem>>, vector<100x200xf32>
    %cst = arith.constant dense<0.000000e+00> : vector<8x200xf32>
    %2 = tpu.matmul %0, %1, %cst {dimension_numbers = #tpu.dot_dimension_numbers<[1], [0], [0], [1], [0, 0, 1, 1], [], []>} : vector<8x100xf32>, vector<100x200xf32>, vector<8x200xf32> -> vector<8x200xf32>
    %c0_3 = arith.constant 0 : index
    %c0_4 = arith.constant 0 : index
    %3 = vector.load %arg4[%c0_3, %c0_4] : memref<1x200xf32, #tpu.memory_space<vmem>>, vector<1x200xf32>
    %4 = vector.broadcast %3 : vector<1x200xf32> to vector<8x200xf32>
    %5 = arith.addf %2, %4 : vector<8x200xf32>
    %cst_5 = arith.constant 0.000000e+00 : f32
    %6 = vector.broadcast %cst_5 : f32 to vector<8x200xf32>
    %7 = arith.maximumf %5, %6 : vector<8x200xf32>
    %c0_6 = arith.constant 0 : index
    %c0_7 = arith.constant 0 : index
    %8 = vector.load %arg2[%c0_6, %c0_7] : memref<8x9xf32, #tpu.memory_space<vmem>>, vector<8x9xf32>
    %c0_8 = arith.constant 0 : index
    %c0_9 = arith.constant 0 : index
    %9 = vector.load %arg5[%c0_8, %c0_9] : memref<9x1000xf32, #tpu.memory_space<vmem>>, vector<9x1000xf32>
    %cst_10 = arith.constant dense<0.000000e+00> : vector<8x1000xf32>
    %10 = tpu.matmul %8, %9, %cst_10 {dimension_numbers = #tpu.dot_dimension_numbers<[1], [0], [0], [1], [0, 0, 1, 1], [], []>} : vector<8x9xf32>, vector<9x1000xf32>, vector<8x1000xf32> -> vector<8x1000xf32>
    %c0_11 = arith.constant 0 : index
    %c0_12 = arith.constant 0 : index
    %11 = vector.load %arg6[%c0_11, %c0_12] : memref<1x1000xf32, #tpu.memory_space<vmem>>, vector<1x1000xf32>
    %12 = vector.broadcast %11 : vector<1x1000xf32> to vector<8x1000xf32>
    %13 = arith.addf %10, %12 : vector<8x1000xf32>
    %cst_13 = arith.constant 0.000000e+00 : f32
    %14 = vector.broadcast %cst_13 : f32 to vector<8x1000xf32>
    %15 = arith.maximumf %13, %14 : vector<8x1000xf32>
    %c0_14 = arith.constant 0 : index
    %c0_15 = arith.constant 0 : index
    %16 = vector.load %arg7[%c0_14, %c0_15] : memref<200x784xf32, #tpu.memory_space<vmem>>, vector<200x784xf32>
    %cst_16 = arith.constant dense<0.000000e+00> : vector<8x784xf32>
    %17 = tpu.matmul %7, %16, %cst_16 {dimension_numbers = #tpu.dot_dimension_numbers<[1], [0], [0], [1], [0, 0, 1, 1], [], []>} : vector<8x200xf32>, vector<200x784xf32>, vector<8x784xf32> -> vector<8x784xf32>
    %c0_17 = arith.constant 0 : index
    %c0_18 = arith.constant 0 : index
    %18 = vector.load %arg8[%c0_17, %c0_18] : memref<1000x784xf32, #tpu.memory_space<vmem>>, vector<1000x784xf32>
    %cst_19 = arith.constant dense<0.000000e+00> : vector<8x784xf32>
    %19 = tpu.matmul %15, %18, %cst_19 {dimension_numbers = #tpu.dot_dimension_numbers<[1], [0], [0], [1], [0, 0, 1, 1], [], []>} : vector<8x1000xf32>, vector<1000x784xf32>, vector<8x784xf32> -> vector<8x784xf32>
    %20 = arith.addf %17, %19 : vector<8x784xf32>
    %c0_20 = arith.constant 0 : index
    %c0_21 = arith.constant 0 : index
    %21 = vector.load %arg9[%c0_20, %c0_21] : memref<1x784xf32, #tpu.memory_space<vmem>>, vector<1x784xf32>
    %22 = vector.broadcast %21 : vector<1x784xf32> to vector<8x784xf32>
    %23 = arith.addf %20, %22 : vector<8x784xf32>
    %24 = arith.negf %23 : vector<8x784xf32>
    %25 = math.exp %24 : vector<8x784xf32>
    %cst_22 = arith.constant 1.000000e+00 : f32
    %26 = vector.broadcast %cst_22 : f32 to vector<8x784xf32>
    %27 = arith.addf %26, %25 : vector<8x784xf32>
    %28 = arith.divf %26, %27 : vector<8x784xf32>
    %c0_23 = arith.constant 0 : index
    %c0_24 = arith.constant 0 : index
    %29 = vector.load %arg10[%c0_23, %c0_24] : memref<8x784xf32, #tpu.memory_space<vmem>>, vector<8x784xf32>
    tpu.vector_store %arg10[%c0_23, %c0_24], %28 {strides = array<i32>} : memref<8x784xf32, #tpu.memory_space<vmem>>, vector<8x784xf32>,
    return
  }
  func.func @transform_0(%arg0: i32) -> (i32, i32) {
    %c0_i32 = arith.constant 0 : i32
    %c0_i32_0 = arith.constant 0 : i32
    return %arg0, %c0_i32 : i32, i32
  }
  func.func @transform_1(%arg0: i32) -> (i32, i32) {
    %c0_i32 = arith.constant 0 : i32
    %c0_i32_0 = arith.constant 0 : i32
    return %arg0, %c0_i32 : i32, i32
  }
  func.func @transform_2(%arg0: i32) -> (i32, i32) {
    %c0_i32 = arith.constant 0 : i32
    %c0_i32_0 = arith.constant 0 : i32
    %c0_i32_1 = arith.constant 0 : i32
    return %c0_i32, %c0_i32_0 : i32, i32
  }
  func.func @transform_3(%arg0: i32) -> (i32, i32) {
    %c0_i32 = arith.constant 0 : i32
    %c0_i32_0 = arith.constant 0 : i32
    %c0_i32_1 = arith.constant 0 : i32
    return %c0_i32, %c0_i32_0 : i32, i32
  }
  func.func @transform_4(%arg0: i32) -> (i32, i32) {
    %c0_i32 = arith.constant 0 : i32
    %c0_i32_0 = arith.constant 0 : i32
    %c0_i32_1 = arith.constant 0 : i32
    return %c0_i32, %c0_i32_0 : i32, i32
  }
  func.func @transform_5(%arg0: i32) -> (i32, i32) {
    %c0_i32 = arith.constant 0 : i32
    %c0_i32_0 = arith.constant 0 : i32
    %c0_i32_1 = arith.constant 0 : i32
    return %c0_i32, %c0_i32_0 : i32, i32
  }
  func.func @transform_6(%arg0: i32) -> (i32, i32) {
    %c0_i32 = arith.constant 0 : i32
    %c0_i32_0 = arith.constant 0 : i32
    %c0_i32_1 = arith.constant 0 : i32
    return %c0_i32, %c0_i32_0 : i32, i32
  }
  func.func @transform_7(%arg0: i32) -> (i32, i32) {
    %c0_i32 = arith.constant 0 : i32
    %c0_i32_0 = arith.constant 0 : i32
    %c0_i32_1 = arith.constant 0 : i32
    return %c0_i32, %c0_i32_0 : i32, i32
  }
  func.func @transform_8(%arg0: i32) -> (i32, i32) {
    %c0_i32 = arith.constant 0 : i32
    %c0_i32_0 = arith.constant 0 : i32
    %c0_i32_1 = arith.constant 0 : i32
    return %c0_i32, %c0_i32_0 : i32, i32
  }
  func.func @transform_9(%arg0: i32) -> (i32, i32) {
    %c0_i32 = arith.constant 0 : i32
    %c0_i32_0 = arith.constant 0 : i32
    return %arg0, %c0_i32 : i32, i32
  }
}

</mosaic_0001>

<bundles_post_ra>
// kernel: tpu_custom_call.1
= control target key start
LH: loop header
LB: loop body
LE: loop exit
PB: predicated region body
PF: predicated region fallthrough
CT: control target
= control target key end

     0   :  { %vm219_vm0 = vcmask 1040384   ;;  %v3304_v4 = vmov 0.0   ;;  %vm215_vm1 = vcmask 72704   ;;  %vm76_vm2 = vcmask 1043456   ;;  %s6911_s0 = inlined_call_operand.vmem [shape: f32[8,100], index: 0, kind: input, shape index: {}]   ;;  %s6912_s1 = inlined_call_operand.vmem [shape: f32[8,9], index: 1, kind: input, shape index: {}]   ;;  %s6913_s2 = inlined_call_operand.vmem [shape: f32[100,200], index: 2, kind: input, shape index: {}]   ;;  %s6914_s3 = inlined_call_operand.vmem [shape: f32[1,200], index: 3, kind: input, shape index: {}]   ;;  %s6915_s4 = inlined_call_operand.vmem [shape: f32[9,1000], index: 4, kind: input, shape index: {}]   ;;  %s6916_s5 = inlined_call_operand.vmem [shape: f32[1,1000], index: 5, kind: input, shape index: {}]   ;;  %s6917_s6 = inlined_call_operand.vmem [shape: f32[200,784], index: 6, kind: input, shape index: {}]   ;;  %s6918_s7 = inlined_call_operand.vmem [shape: f32[1000,784], index: 7, kind: input, shape index: {}]   ;;  %s6919_s8 = inlined_call_operand.vmem [shape: f32[1,784], index: 8, kind: input, shape index: {}]   ;;  %s6920_s9 = inlined_call_operand.hbm [shape: f32[8,784], index: 9, kind: output, shape index: {}]  }
   0x1   :  { %v166_v0 = vld [vmem:[%s6915_s4 + $0x48] sm:$0x1]  ;;  %v165_v1 = vld [vmem:[%s6915_s4 + $0x40] sm:$0x1]  ;;  %308 = vmatprep.mubr.f32.mxu0 %v3304_v4  ;;  %v168_v6 = vld [vmem:[%s6915_s4 + $0x58] sm:$0x1]  ;;  %147 = vmatprep.mubr.f32.mxu1 %v3304_v4 }
   0x2   :  { %v158_v2 = vld [vmem:[%s6915_s4 + $0x8] sm:$0xff]  ;;  %3120 = vmatprep.subr.msk.mxu0 %vm219_vm0, %v166_v0  ;;  %v157_v3 = vld [vmem:[%s6915_s4] sm:$0xff]  ;;  %v167_v7 = vld [vmem:[%s6915_s4 + $0x50] sm:$0x1]  ;;  %vm72_vm3 = vcmask 818176  }
   0x3   :  { %3121 = vmatpush1.msk.msra.mxu0 %vm219_vm0, %v165_v1  ;;  %v3374_v5 = vld [vmem:[%s6912_s1] sm:$0xff]  ;;  %v59_v8 = vld [vmem:[%s6913_s2 + $0xc8] sm:$0xf]  ;;  %v160_v9 = vld [vmem:[%s6915_s4 + $0x18] sm:$0xff] }
   0x4   :  { %274 = vmatprep.subr.mxu0 %v158_v2  ;;  %3117 = vmatprep.subr.msk.mxu1 %vm76_vm2, %v59_v8  ;;  %v58_v10 = vld [vmem:[%s6913_s2 + $0xc0] sm:$0xf]  ;;  %v159_v11 = vld [vmem:[%s6915_s4 + $0x10] sm:$0xff]  ;;  %v57_v12 = vld [vmem:[%s6913_s2 + $0xb8] sm:$0xff] }
   0x5   :  { %275 = vmatpush1.msra.mxu0 %v157_v3  ;;  %v56_v13 = vld [vmem:[%s6913_s2 + $0xb0] sm:$0xff]  ;;  %3118 = vmatpush1.msk.msra.mxu1 %vm76_vm2, %v58_v10  ;;  %v55_v14 = vld [vmem:[%s6913_s2 + $0xa8] sm:$0xff]  ;;  %v54_v15 = vld [vmem:[%s6913_s2 + $0xa0] sm:$0xff] }
   0x6   :  { %3122 = vmatmul.mubr.msk.f32.vlgmr.msra.gmra.mxu0 %vm215_vm1, %v3374_v5  ;;  %3123 = vmatprep.subr.msk.mxu0 %vm219_vm0, %v168_v6  ;;  %v53_v16 = vld [vmem:[%s6913_s2 + $0x98] sm:$0xff]  ;;  %v52_v17 = vld [vmem:[%s6913_s2 + $0x90] sm:$0xff]  ;;  %v51_v18 = vld [vmem:[%s6913_s2 + $0x88] sm:$0xff] }
   0x7   :  { %3124 = vmatpush1.msk.msra.mxu0 %vm219_vm0, %v167_v7  ;;  %379 = vmatprep.mubr.f32.mxu0 %v3304_v4  ;;  %v50_v19 = vld [vmem:[%s6913_s2 + $0x80] sm:$0xff]  ;;  %v170_v20 = vld [vmem:[%s6915_s4 + $0x68] sm:$0x1]  ;;  %v49_v21 = vld [vmem:[%s6913_s2 + $0x78] sm:$0xff] }
   0x8   :  { %345 = vmatprep.subr.mxu0 %v160_v9  ;;  %91 = vmatprep.subr.mxu1 %v57_v12  ;;  %v169_v22 = vld [vmem:[%s6915_s4 + $0x60] sm:$0x1]  ;;  %v48_v23 = vld [vmem:[%s6913_s2 + $0x70] sm:$0xff]  ;;  %v162_v24 = vld [vmem:[%s6915_s4 + $0x28] sm:$0xff] }
   0x9   :  { %346 = vmatpush1.msra.mxu0 %v159_v11  ;;  %92 = vmatpush1.msra.mxu1 %v56_v13  ;;  %v161_v25 = vld [vmem:[%s6915_s4 + $0x20] sm:$0xff]  ;;  %v47_v26 = vld [vmem:[%s6913_s2 + $0x68] sm:$0xff]  ;;  %v1041_v28 = vld [vmem:[%s6918_s7 + $0xa50] sm:$0xff] }
   0xa   :  { %3125 = vmatmul.mubr.msk.f32.vlgmr.msra.gmra.mxu0 %vm215_vm1, %v3374_v5  ;;  %93 = vmatprep.subr.mxu1 %v55_v14  ;;  %v46_v27 = vld [vmem:[%s6913_s2 + $0x60] sm:$0xff]  ;;  %v45_v29 = vld [vmem:[%s6913_s2 + $0x58] sm:$0xff]  ;;  %v1040_v30 = vld [vmem:[%s6918_s7 + $0xa48] sm:$0xff] }
   0xb   :  { %450 = vmatprep.mubr.f32.mxu0 %v3304_v4  ;;  %94 = vmatpush1.msra.mxu1 %v54_v15  ;;  %v1034_v31 = vld [vmem:[%s6918_s7 + $0xa18] sm:$0xff]  ;;  %v44_v32 = vld [vmem:[%s6913_s2 + $0x50] sm:$0xff]  ;;  %v43_v34 = vld [vmem:[%s6913_s2 + $0x48] sm:$0xff] }
   0xc   :  { %95 = vmatprep.subr.mxu1 %v53_v16  ;;  %3126 = vmatprep.subr.msk.mxu0 %vm219_vm0, %v170_v20  ;;  %v1033_v33 = vld [vmem:[%s6918_s7 + $0xa10] sm:$0xff]  ;;  %v1027_v35 = vld [vmem:[%s6918_s7 + $0x9e0] sm:$0xff]  ;;  %v1026_v37 = vld [vmem:[%s6918_s7 + $0x9d8] sm:$0xff] }
   0xd   :  { %96 = vmatpush1.msra.mxu1 %v52_v17  ;;  %3127 = vmatpush1.msk.msra.mxu0 %vm219_vm0, %v169_v22  ;;  %v42_v36 = vld [vmem:[%s6913_s2 + $0x40] sm:$0xff]  ;;  %v41_v38 = vld [vmem:[%s6913_s2 + $0x38] sm:$0xff]  ;;  %v1020_v39 = vld [vmem:[%s6918_s7 + $0x9a8] sm:$0xff] }
   0xe   :  { %97 = vmatprep.subr.mxu1 %v51_v18  ;;  %416 = vmatprep.subr.mxu0 %v162_v24  ;;  %v40_v40 = vld [vmem:[%s6913_s2 + $0x30] sm:$0xff]  ;;  %v1019_v41 = vld [vmem:[%s6918_s7 + $0x9a0] sm:$0xff]  ;;  %v39_v42 = vld [vmem:[%s6913_s2 + $0x28] sm:$0xff] }
   0xf   :  { %98 = vmatpush1.msra.mxu1 %v50_v19  ;;  %417 = vmatpush1.msra.mxu0 %v161_v25  ;;  %v1013_v43 = vld [vmem:[%s6918_s7 + $0x970] sm:$0xff]  ;;  %v38_v44 = vld [vmem:[%s6913_s2 + $0x20] sm:$0xff]  ;;  %v1012_v45 = vld [vmem:[%s6918_s7 + $0x968] sm:$0xff] }
  0x10   :  { %99 = vmatprep.subr.mxu1 %v49_v21  ;;  %3128 = vmatmul.mubr.msk.f32.vlgmr.msra.gmra.mxu0 %vm215_vm1, %v3374_v5  ;;  %v37_v46 = vld [vmem:[%s6913_s2 + $0x18] sm:$0xff]  ;;  %v36_v48 = vld [vmem:[%s6913_s2 + $0x10] sm:$0xff]  ;;  %v35_v50 = vld [vmem:[%s6913_s2 + $0x8] sm:$0xff] }
  0x11   :  { %100 = vmatpush1.msra.mxu1 %v48_v23  ;;  %1661 = vmatprep.subr.mxu0 %v1041_v28  ;;  %v1006_v47 = vld [vmem:[%s6918_s7 + $0x938] sm:$0xff]  ;;  %v1005_v49 = vld [vmem:[%s6918_s7 + $0x930] sm:$0xff]  ;;  %v999_v51 = vld [vmem:[%s6918_s7 + $0x900] sm:$0xff] }
  0x12   :  { %101 = vmatprep.subr.mxu1 %v47_v26  ;;  %1662 = vmatpush1.msra.mxu0 %v1040_v30  ;;  %v34_v52 = vld [vmem:[%s6913_s2] sm:$0xff]  ;;  %v998_v53 = vld [vmem:[%s6918_s7 + $0x8f8] sm:$0xff]  ;;  %v171_v56 = vld [vmem:[%s6915_s4 + $0x70] sm:$0x1] }
  0x13   :  { %102 = vmatpush1.msra.mxu1 %v46_v27  ;;  %1663 = vmatprep.subr.mxu0 %v1034_v31  ;;  %v33_v54 = vld [vmem:[%s6911_s0] sm:$0xff]  ;;  %v172_v55 = vld [vmem:[%s6915_s4 + $0x78] sm:$0x1]  ;;  %v992_v58 = vld [vmem:[%s6918_s7 + $0x8c8] sm:$0xff] }
  0x14   :  { %103 = vmatprep.subr.mxu1 %v45_v29  ;;  %1664 = vmatpush1.msra.mxu0 %v1033_v33  ;;  %v164_v57 = vld [vmem:[%s6915_s4 + $0x38] sm:$0xff]  ;;  %v163_v59 = vld [vmem:[%s6915_s4 + $0x30] sm:$0xff]  ;;  %v991_v60 = vld [vmem:[%s6918_s7 + $0x8c0] sm:$0xff] }
  0x15   :  { %104 = vmatpush1.msra.mxu1 %v44_v32  ;;  %1665 = vmatprep.subr.mxu0 %v1027_v35  ;;  %v817_v61 = vld [vmem:[%s6918_s7 + $0x350] sm:$0xff]  ;;  %v816_v62 = vld [vmem:[%s6918_s7 + $0x348] sm:$0xff]  ;;  %v810_v0 = vld [vmem:[%s6918_s7 + $0x318] sm:$0xff] }
  0x16   :  { %105 = vmatprep.subr.mxu1 %v43_v34  ;;  %1666 = vmatpush1.msra.mxu0 %v1026_v37  ;;  %v985_v63 = vld [vmem:[%s6918_s7 + $0x890] sm:$0xff]  ;;  %v984_v1 = vld [vmem:[%s6918_s7 + $0x888] sm:$0xff]  ;;  %v978_v3 = vld [vmem:[%s6918_s7 + $0x858] sm:$0xff] }
  0x17   :  { %106 = vmatpush1.msra.mxu1 %v42_v36  ;;  %1667 = vmatprep.subr.mxu0 %v1020_v39  ;;  %v809_v2 = vld [vmem:[%s6918_s7 + $0x310] sm:$0xff]  ;;  %v803_v6 = vld [vmem:[%s6918_s7 + $0x2e0] sm:$0xff]  ;;  %v796_v9 = vld [vmem:[%s6918_s7 + $0x2a8] sm:$0xff] }
  0x18   :  { %107 = vmatprep.subr.mxu1 %v41_v38  ;;  %1668 = vmatpush1.msra.mxu0 %v1019_v41  ;;  %v977_v7 = vld [vmem:[%s6918_s7 + $0x850] sm:$0xff]  ;;  %v971_v8 = vld [vmem:[%s6918_s7 + $0x820] sm:$0xff]  ;;  %v970_v10 = vld [vmem:[%s6918_s7 + $0x818] sm:$0xff] }
  0x19   :  { %108 = vmatpush1.msra.mxu1 %v40_v40  ;;  %1669 = vmatprep.subr.mxu0 %v1013_v43  ;;  %v795_v11 = vld [vmem:[%s6918_s7 + $0x2a0] sm:$0xff]  ;;  %v964_v12 = vld [vmem:[%s6918_s7 + $0x7e8] sm:$0xff]  ;;  %v789_v13 = vld [vmem:[%s6918_s7 + $0x270] sm:$0xff] }
  0x1a   :  { %109 = vmatprep.subr.mxu1 %v39_v42  ;;  %1670 = vmatpush1.msra.mxu0 %v1012_v45  ;;  %v963_v14 = vld [vmem:[%s6918_s7 + $0x7e0] sm:$0xff]  ;;  %v788_v15 = vld [vmem:[%s6918_s7 + $0x268] sm:$0xff]  ;;  %v957_v16 = vld [vmem:[%s6918_s7 + $0x7b0] sm:$0xff] }
  0x1b   :  { %110 = vmatpush1.msra.mxu1 %v38_v44  ;;  %1671 = vmatprep.subr.mxu0 %v1006_v47  ;;  %v782_v17 = vld [vmem:[%s6918_s7 + $0x238] sm:$0xff]  ;;  %v956_v18 = vld [vmem:[%s6918_s7 + $0x7a8] sm:$0xff]  ;;  %v781_v19 = vld [vmem:[%s6918_s7 + $0x230] sm:$0xff] }
  0x1c   :  { %111 = vmatprep.subr.mxu1 %v37_v46  ;;  %1672 = vmatpush1.msra.mxu0 %v1005_v49  ;;  %v950_v20 = vld [vmem:[%s6918_s7 + $0x778] sm:$0xff]  ;;  %v775_v21 = vld [vmem:[%s6918_s7 + $0x200] sm:$0xff]  ;;  %v949_v22 = vld [vmem:[%s6918_s7 + $0x770] sm:$0xff] }
  0x1d   :  { %112 = vmatpush1.msra.mxu1 %v36_v48  ;;  %1673 = vmatprep.subr.mxu0 %v999_v51  ;;  %v774_v23 = vld [vmem:[%s6918_s7 + $0x1f8] sm:$0xff]  ;;  %v943_v24 = vld [vmem:[%s6918_s7 + $0x740] sm:$0xff]  ;;  %v768_v25 = vld [vmem:[%s6918_s7 + $0x1c8] sm:$0xff] }
  0x1e   :  { %113 = vmatprep.subr.mxu1 %v35_v50  ;;  %1674 = vmatpush1.msra.mxu0 %v998_v53  ;;  %v942_v26 = vld [vmem:[%s6918_s7 + $0x738] sm:$0xff]  ;;  %v767_v27 = vld [vmem:[%s6918_s7 + $0x1c0] sm:$0xff]  ;;  %v936_v28 = vld [vmem:[%s6918_s7 + $0x708] sm:$0xff] }
  0x1f   :  { %114 = vmatpush1.msra.mxu1 %v34_v52  ;;  %1675 = vmatprep.subr.mxu0 %v992_v58  ;;  %v761_v29 = vld [vmem:[%s6918_s7 + $0x190] sm:$0xff]  ;;  %v935_v30 = vld [vmem:[%s6918_s7 + $0x700] sm:$0xff]  ;;  %v760_v31 = vld [vmem:[%s6918_s7 + $0x188] sm:$0xff] }
  0x20   :  { %3119 = vmatmul.mubr.msk.f32.vlgmr.msra.gmra.mxu1 %vm72_vm3, %v33_v54  ;;  %3129 = vmatprep.subr.msk.mxu1 %vm219_vm0, %v172_v55  ;;  %v1153_v32 = vld [vmem:[%s6918_s7 + $0xdd0] sm:$0xff]  ;;  %v754_v33 = vld [vmem:[%s6918_s7 + $0x158] sm:$0xff]  ;;  %v1152_v34 = vld [vmem:[%s6918_s7 + $0xdc8] sm:$0xff] }
  0x21   :  { %3130 = vmatpush1.msk.msra.mxu1 %vm219_vm0, %v171_v56  ;;  %521 = vmatprep.mubr.f32.mxu1 %v3304_v4 }
  0x22   :  { %487 = vmatprep.subr.mxu1 %v164_v57  ;;  %1676 = vmatpush1.msra.mxu0 %v991_v60 }
  0x23   :  { %488 = vmatpush1.msra.mxu1 %v163_v59  ;;  %1677 = vmatprep.subr.mxu0 %v985_v63 }
  0x24   :  { %3131 = vmatmul.mubr.msk.f32.vlgmr.msra.gmra.mxu1 %vm215_vm1, %v3374_v5  ;;  %1590 = vmatprep.subr.mxu1 %v817_v61  ;;  %v802_v5 = vld [vmem:[%s6918_s7 + $0x2d8] sm:$0xff] }
  0x25   :  { %1591 = vmatpush1.msra.mxu1 %v816_v62  ;;  %1678 = vmatpush1.msra.mxu0 %v984_v1 }
  0x26   :  { %1592 = vmatprep.subr.mxu1 %v810_v0  ;;  %1679 = vmatprep.subr.mxu0 %v978_v3 }
  0x27   :  { %1593 = vmatpush1.msra.mxu1 %v809_v2  ;;  %1680 = vmatpush1.msra.mxu0 %v977_v7 }
  0x28   :  { %1594 = vmatprep.subr.mxu1 %v803_v6  ;;  %1681 = vmatprep.subr.mxu0 %v971_v8 }
  0x29   :  { %1595 = vmatpush1.msra.mxu1 %v802_v5  ;;  %1682 = vmatpush1.msra.mxu0 %v970_v10 }
  0x2a   :  { %1596 = vmatprep.subr.mxu1 %v796_v9  ;;  %1683 = vmatprep.subr.mxu0 %v964_v12 }
  0x2b   :  { %1597 = vmatpush1.msra.mxu1 %v795_v11  ;;  %1684 = vmatpush1.msra.mxu0 %v963_v14 }
  0x2c   :  { %1598 = vmatprep.subr.mxu1 %v789_v13  ;;  %1685 = vmatprep.subr.mxu0 %v957_v16 }
  0x2d   :  { %1599 = vmatpush1.msra.mxu1 %v788_v15  ;;  %1686 = vmatpush1.msra.mxu0 %v956_v18 }
  0x2e   :  { %1600 = vmatprep.subr.mxu1 %v782_v17  ;;  %1687 = vmatprep.subr.mxu0 %v950_v20 }
  0x2f   :  { %1601 = vmatpush1.msra.mxu1 %v781_v19  ;;  %1688 = vmatpush1.msra.mxu0 %v949_v22 }
  0x30   :  { %1602 = vmatprep.subr.mxu1 %v775_v21  ;;  %1689 = vmatprep.subr.mxu0 %v943_v24 }
  0x31   :  { %1603 = vmatpush1.msra.mxu1 %v774_v23  ;;  %1690 = vmatpush1.msra.mxu0 %v942_v26 }
  0x32   :  { %1604 = vmatprep.subr.mxu1 %v768_v25  ;;  %1691 = vmatprep.subr.mxu0 %v936_v28 }
  0x33   :  { %1605 = vmatpush1.msra.mxu1 %v767_v27 }
  0x34   :  { %14 = vsyncpa [#allocation3], 0  ;;  %1606 = vmatprep.subr.mxu1 %v761_v29  ;;  %v753_v35 = vld [vmem:[%s6918_s7 + $0x150] sm:$0xff]  ;;  %1692 = vmatpush1.msra.mxu0 %v935_v30  ;;  %v1146_v36 = vld [vmem:[%s6918_s7 + $0xd98] sm:$0xff]  ;;  %vm1586_vm4 = vcmask 850944   ;;  %vm2722_vm5 = vcmask 588800  }
  0x35   :  { %1607 = vmatpush1.msra.mxu1 %v760_v31  ;;  %v747_v37 = vld [vmem:[%s6918_s7 + $0x120] sm:$0xff]  ;;  %1693 = vmatprep.subr.mxu0 %v1153_v32  ;;  %v1145_v38 = vld [vmem:[%s6918_s7 + $0xd90] sm:$0xff]  ;;  %v746_v39 = vld [vmem:[%s6918_s7 + $0x118] sm:$0xff]  ;;  %vm3101_vm6 = vcmask 130048  }
  0x36   :  { %1608 = vmatprep.subr.mxu1 %v754_v33  ;;  %1694 = vmatpush2.msra.mxu0 %v1152_v34  ;;  %v1139_v40 = vld [vmem:[%s6918_s7 + $0xd60] sm:$0xff]  ;;  %v740_v41 = vld [vmem:[%s6918_s7 + $0xe8] sm:$0xff]  ;;  %v1138_v42 = vld [vmem:[%s6918_s7 + $0xd58] sm:$0xff] }
  0x37   :  { %1609 = vmatpush1.msra.mxu1 %v753_v35  ;;  %1695 = vmatprep.subr.mxu0 %v1146_v36  ;;  %v739_v43 = vld [vmem:[%s6918_s7 + $0xe0] sm:$0xff]  ;;  %v1132_v44 = vld [vmem:[%s6918_s7 + $0xd28] sm:$0xff]  ;;  %v733_v45 = vld [vmem:[%s6918_s7 + $0xb0] sm:$0xff] }
  0x38   :  { %1610 = vmatprep.subr.mxu1 %v747_v37  ;;  %1696 = vmatpush2.msra.mxu0 %v1145_v38  ;;  %v1131_v46 = vld [vmem:[%s6918_s7 + $0xd20] sm:$0xff]  ;;  %v732_v47 = vld [vmem:[%s6918_s7 + $0xa8] sm:$0xff]  ;;  %v1125_v48 = vld [vmem:[%s6918_s7 + $0xcf0] sm:$0xff] }
  0x39   :  { %1611 = vmatpush1.msra.mxu1 %v746_v39  ;;  %1697 = vmatprep.subr.mxu0 %v1139_v40  ;;  %v726_v49 = vld [vmem:[%s6918_s7 + $0x78] sm:$0xff]  ;;  %v1124_v50 = vld [vmem:[%s6918_s7 + $0xce8] sm:$0xff]  ;;  %v725_v51 = vld [vmem:[%s6918_s7 + $0x70] sm:$0xff] }
  0x3a   :  { %1612 = vmatprep.subr.mxu1 %v740_v41  ;;  %1698 = vmatpush2.msra.mxu0 %v1138_v42  ;;  %v1118_v52 = vld [vmem:[%s6918_s7 + $0xcb8] sm:$0xff]  ;;  %v719_v53 = vld [vmem:[%s6918_s7 + $0x40] sm:$0xff]  ;;  %v1117_v54 = vld [vmem:[%s6918_s7 + $0xcb0] sm:$0xff] }
  0x3b   :  { %1613 = vmatpush1.msra.mxu1 %v739_v43  ;;  %1699 = vmatprep.subr.mxu0 %v1132_v44  ;;  %v718_v55 = vld [vmem:[%s6918_s7 + $0x38] sm:$0xff]  ;;  %v1111_v56 = vld [vmem:[%s6918_s7 + $0xc80] sm:$0xff]  ;;  %v712_v57 = vld [vmem:[%s6918_s7 + $0x8] sm:$0xff] }
  0x3c   :  { %1614 = vmatprep.subr.mxu1 %v733_v45  ;;  %1700 = vmatpush2.msra.mxu0 %v1131_v46  ;;  %v1110_v58 = vld [vmem:[%s6918_s7 + $0xc78] sm:$0xff]  ;;  %v711_v59 = vld [vmem:[%s6918_s7] sm:$0xff]  ;;  %v1104_v60 = vld [vmem:[%s6918_s7 + $0xc48] sm:$0xff] }
  0x3d   :  { %1615 = vmatpush1.msra.mxu1 %v732_v47  ;;  %1701 = vmatprep.subr.mxu0 %v1125_v48  ;;  %v929_v61 = vld [vmem:[%s6918_s7 + $0x6d0] sm:$0xff]  ;;  %v1103_v62 = vld [vmem:[%s6918_s7 + $0xc40] sm:$0xff]  ;;  %v928_v63 = vld [vmem:[%s6918_s7 + $0x6c8] sm:$0xff] }
  0x3e   :  { %1616 = vmatprep.subr.mxu1 %v726_v49  ;;  %1702 = vmatpush2.msra.mxu0 %v1124_v50  ;;  %v1097_v0 = vld [vmem:[%s6918_s7 + $0xc10] sm:$0xff]  ;;  %v922_v1 = vld [vmem:[%s6918_s7 + $0x698] sm:$0xff]  ;;  %v1096_v2 = vld [vmem:[%s6918_s7 + $0xc08] sm:$0xff]  ;;  %v62_v49 = vlaneseq }
  0x3f   :  { %1617 = vmatpush1.msra.mxu1 %v725_v51  ;;  %1703 = vmatprep.subr.mxu0 %v1118_v52  ;;  %v921_v3 = vld [vmem:[%s6918_s7 + $0x690] sm:$0xff]  ;;  %v1090_v6 = vld [vmem:[%s6918_s7 + $0xbd8] sm:$0xff]  ;;  %v915_v7 = vld [vmem:[%s6918_s7 + $0x660] sm:$0xff] }
  0x40   :  { %1618 = vmatprep.subr.mxu1 %v719_v53  ;;  %1704 = vmatpush2.msra.mxu0 %v1117_v54  ;;  %v1089_v5 = vld [vmem:[%s6918_s7 + $0xbd0] sm:$0xff]  ;;  %v914_v8 = vld [vmem:[%s6918_s7 + $0x658] sm:$0xff]  ;;  %v1083_v9 = vld [vmem:[%s6918_s7 + $0xba0] sm:$0xff]  ;;  %v3903_v50 = vshrl.u32 %v62_v49, 7 }
  0x41   :  { %1619 = vmatpush1.msra.mxu1 %v718_v55  ;;  %1705 = vmatprep.subr.mxu0 %v1111_v56  ;;  %v908_v10 = vld [vmem:[%s6918_s7 + $0x628] sm:$0xff]  ;;  %v1082_v11 = vld [vmem:[%s6918_s7 + $0xb98] sm:$0xff]  ;;  %v907_v12 = vld [vmem:[%s6918_s7 + $0x620] sm:$0xff] }
  0x42   :  { %1620 = vmatprep.subr.mxu1 %v712_v57  ;;  %1706 = vmatpush2.msra.mxu0 %v1110_v58  ;;  %v1076_v13 = vld [vmem:[%s6918_s7 + $0xb68] sm:$0xff]  ;;  %v901_v14 = vld [vmem:[%s6918_s7 + $0x5f0] sm:$0xff]  ;;  %v1075_v15 = vld [vmem:[%s6918_s7 + $0xb60] sm:$0xff]  ;;  %v3906_v51 = vsub.s32 0, %v3903_v50  ;;  %v3914_v53 = vsub.s32 1, %v3903_v50  ;;  %v185_v55 = vsub.s32 2, %v3903_v50 }
  0x43   :  { %1621 = vmatpush1.msra.mxu1 %v711_v59  ;;  %1707 = vmatprep.subr.mxu0 %v1104_v60  ;;  %v900_v16 = vld [vmem:[%s6918_s7 + $0x5e8] sm:$0xff]  ;;  %v1069_v17 = vld [vmem:[%s6918_s7 + $0xb30] sm:$0xff]  ;;  %v894_v18 = vld [vmem:[%s6918_s7 + $0x5b8] sm:$0xff]  ;;  %v189_v57 = vsub.s32 3, %v3903_v50 }
  0x44   :  { %1622 = vmatprep.subr.mxu1 %v929_v61  ;;  %1708 = vmatpush2.msra.mxu0 %v1103_v62  ;;  %v1068_v19 = vld [vmem:[%s6918_s7 + $0xb28] sm:$0xff]  ;;  %v893_v20 = vld [vmem:[%s6918_s7 + $0x5b0] sm:$0xff]  ;;  %v1062_v21 = vld [vmem:[%s6918_s7 + $0xaf8] sm:$0xff] }
  0x45   :  { %1623 = vmatpush2.msra.mxu1 %v928_v63  ;;  %1709 = vmatprep.subr.mxu0 %v1097_v0  ;;  %v887_v22 = vld [vmem:[%s6918_s7 + $0x580] sm:$0xff]  ;;  %v1061_v23 = vld [vmem:[%s6918_s7 + $0xaf0] sm:$0xff]  ;;  %v886_v24 = vld [vmem:[%s6918_s7 + $0x578] sm:$0xff] }
  0x46   :  { %1624 = vmatprep.subr.mxu1 %v922_v1  ;;  %1710 = vmatpush2.msra.mxu0 %v1096_v2  ;;  %v1055_v25 = vld [vmem:[%s6918_s7 + $0xac0] sm:$0xff]  ;;  %v880_v26 = vld [vmem:[%s6918_s7 + $0x548] sm:$0xff]  ;;  %v1054_v27 = vld [vmem:[%s6918_s7 + $0xab8] sm:$0xff] }
  0x47   :  { %1625 = vmatpush2.msra.mxu1 %v921_v3  ;;  %1711 = vmatprep.subr.mxu0 %v1090_v6  ;;  %v879_v28 = vld [vmem:[%s6918_s7 + $0x540] sm:$0xff]  ;;  %v1048_v29 = vld [vmem:[%s6918_s7 + $0xa88] sm:$0xff]  ;;  %v873_v30 = vld [vmem:[%s6918_s7 + $0x510] sm:$0xff] }
  0x48   :  { %1626 = vmatprep.subr.mxu1 %v915_v7  ;;  %1712 = vmatpush2.msra.mxu0 %v1089_v5  ;;  %v1047_v31 = vld [vmem:[%s6918_s7 + $0xa80] sm:$0xff]  ;;  %v872_v32 = vld [vmem:[%s6918_s7 + $0x508] sm:$0xff]  ;;  %v1489_v33 = vld [vmem:[%s6918_s7 + $0x1850] sm:$0xff] }
  0x49   :  { %1627 = vmatpush2.msra.mxu1 %v914_v8  ;;  %1713 = vmatprep.subr.mxu0 %v1083_v9  ;;  %v866_v34 = vld [vmem:[%s6918_s7 + $0x4d8] sm:$0xff]  ;;  %v865_v35 = vld [vmem:[%s6918_s7 + $0x4d0] sm:$0xff]  ;;  %v859_v36 = vld [vmem:[%s6918_s7 + $0x4a0] sm:$0xff] }
  0x4a   :  { %1628 = vmatprep.subr.mxu1 %v908_v10  ;;  %1714 = vmatpush2.msra.mxu0 %v1082_v11  ;;  %v858_v37 = vld [vmem:[%s6918_s7 + $0x498] sm:$0xff]  ;;  %v852_v38 = vld [vmem:[%s6918_s7 + $0x468] sm:$0xff]  ;;  %v851_v39 = vld [vmem:[%s6918_s7 + $0x460] sm:$0xff] }
  0x4b   :  { %1629 = vmatpush2.msra.mxu1 %v907_v12  ;;  %1715 = vmatprep.subr.mxu0 %v1076_v13  ;;  %v845_v40 = vld [vmem:[%s6918_s7 + $0x430] sm:$0xff]  ;;  %v844_v41 = vld [vmem:[%s6918_s7 + $0x428] sm:$0xff]  ;;  %v838_v42 = vld [vmem:[%s6918_s7 + $0x3f8] sm:$0xff] }
  0x4c   :  { %1630 = vmatprep.subr.mxu1 %v901_v14  ;;  %1716 = vmatpush2.msra.mxu0 %v1075_v15  ;;  %v837_v43 = vld [vmem:[%s6918_s7 + $0x3f0] sm:$0xff]  ;;  %v831_v44 = vld [vmem:[%s6918_s7 + $0x3c0] sm:$0xff]  ;;  %v830_v45 = vld [vmem:[%s6918_s7 + $0x3b8] sm:$0xff] }
  0x4d   :  { %1631 = vmatpush2.msra.mxu1 %v900_v16  ;;  %1717 = vmatprep.subr.mxu0 %v1069_v17  ;;  %v824_v46 = vld [vmem:[%s6918_s7 + $0x388] sm:$0xff]  ;;  %v823_v47 = vld [vmem:[%s6918_s7 + $0x380] sm:$0xff]  ;;  %v1265_v48 = vld [vmem:[%s6918_s7 + $0x1150] sm:$0xff] }
  0x4e   :  { %1632 = vmatprep.subr.mxu1 %v894_v18  ;;  %1718 = vmatpush2.msra.mxu0 %v1068_v19  ;;  %v3911_v52 = vld [vmem:[%s6916_s5] sm:$0xff]  ;;  %v1264_v7 = vld [vmem:[%s6918_s7 + $0x1148] sm:$0xff]  ;;  %v1258_v8 = vld [vmem:[%s6918_s7 + $0x1118] sm:$0xff] }
  0x4f   :  { %1633 = vmatpush2.msra.mxu1 %v893_v20  ;;  %1719 = vmatprep.subr.mxu0 %v1062_v21  ;;  %v178_v54 = vrot.slane %v3911_v52, %v3906_v51  ;;  %v182_v56 = vrot.slane %v3911_v52, %v3914_v53  ;;  %v186_v61 = vrot.slane %v3911_v52, %v185_v55  ;;  %v1257_v9 = vld [vmem:[%s6918_s7 + $0x1110] sm:$0xff]  ;;  %v1251_v11 = vld [vmem:[%s6918_s7 + $0x10e0] sm:$0xff]  ;;  %v1250_v13 = vld [vmem:[%s6918_s7 + $0x10d8] sm:$0xff] }
  0x50   :  { %1634 = vmatprep.subr.mxu1 %v887_v22  ;;  %1720 = vmatpush2.msra.mxu0 %v1061_v23  ;;  %v190_v63 = vrot.slane %v3911_v52, %v189_v57  ;;  %v1488_v14 = vld [vmem:[%s6918_s7 + $0x1848] sm:$0xff]  ;;  %v1482_v16 = vld [vmem:[%s6918_s7 + $0x1818] sm:$0xff]  ;;  %v1243_v17 = vld [vmem:[%s6918_s7 + $0x10a0] sm:$0xff] }
  0x51   :  { %1635 = vmatpush2.msra.mxu1 %v886_v24  ;;  %1721 = vmatprep.subr.mxu0 %v1055_v25  ;;  %v1244_v15 = vld [vmem:[%s6918_s7 + $0x10a8] sm:$0xff]  ;;  %v1481_v18 = vld [vmem:[%s6918_s7 + $0x1810] sm:$0xff]  ;;  %v1475_v20 = vld [vmem:[%s6918_s7 + $0x17e0] sm:$0xff] }
  0x52   :  { %1636 = vmatprep.subr.mxu1 %v880_v26  ;;  %1722 = vmatpush2.msra.mxu0 %v1054_v27  ;;  %v1237_v19 = vld [vmem:[%s6918_s7 + $0x1070] sm:$0xff]  ;;  %v1236_v21 = vld [vmem:[%s6918_s7 + $0x1068] sm:$0xff]  ;;  %v1474_v22 = vld [vmem:[%s6918_s7 + $0x17d8] sm:$0xff] }
  0x53   :  { %1637 = vmatpush2.msra.mxu1 %v879_v28  ;;  %1723 = vmatprep.subr.mxu0 %v1048_v29  ;;  %v1230_v23 = vld [vmem:[%s6918_s7 + $0x1038] sm:$0xff]  ;;  %v1468_v24 = vld [vmem:[%s6918_s7 + $0x17a8] sm:$0xff]  ;;  %v1229_v25 = vld [vmem:[%s6918_s7 + $0x1030] sm:$0xff] }
  0x54   :  { %1638 = vmatprep.subr.mxu1 %v873_v30  ;;  %1724 = vmatpush2.msra.mxu0 %v1047_v31  ;;  %v1467_v26 = vld [vmem:[%s6918_s7 + $0x17a0] sm:$0xff]  ;;  %v1461_v28 = vld [vmem:[%s6918_s7 + $0x1770] sm:$0xff]  ;;  %v1222_v29 = vld [vmem:[%s6918_s7 + $0xff8] sm:$0xff] }
  0x55   :  { %1639 = vmatpush2.msra.mxu1 %v872_v32  ;;  %1803 = vmatprep.subr.mxu0 %v1489_v33  ;;  %v1223_v27 = vld [vmem:[%s6918_s7 + $0x1000] sm:$0xff]  ;;  %v1460_v30 = vld [vmem:[%s6918_s7 + $0x1768] sm:$0xff]  ;;  %v1454_v32 = vld [vmem:[%s6918_s7 + $0x1738] sm:$0xff] }
  0x56   :  { %1640 = vmatprep.subr.mxu1 %v866_v34  ;;  %v1216_v31 = vld [vmem:[%s6918_s7 + $0xfc8] sm:$0xff]  ;;  %v1215_v33 = vld [vmem:[%s6918_s7 + $0xfc0] sm:$0xff]  ;;  %v1453_v34 = vld [vmem:[%s6918_s7 + $0x1730] sm:$0xff] }
  0x57   :  { %1641 = vmatpush2.msra.mxu1 %v865_v35  ;;  %v1209_v35 = vld [vmem:[%s6918_s7 + $0xf90] sm:$0xff]  ;;  %v1187_v49 = vld [vmem:[%s6918_s7 + $0xee0] sm:$0xff] }
  0x58   :  { %1642 = vmatprep.subr.mxu1 %v859_v36  ;;  %v1447_v36 = vld [vmem:[%s6918_s7 + $0x1700] sm:$0xff] }
  0x59   :  { %1643 = vmatpush2.msra.mxu1 %v858_v37  ;;  %v1208_v37 = vld [vmem:[%s6918_s7 + $0xf88] sm:$0xff] }
  0x5a   :  { %1644 = vmatprep.subr.mxu1 %v852_v38  ;;  %v1446_v38 = vld [vmem:[%s6918_s7 + $0x16f8] sm:$0xff] }
  0x5b   :  { %1645 = vmatpush2.msra.mxu1 %v851_v39  ;;  %v1202_v39 = vld [vmem:[%s6918_s7 + $0xf58] sm:$0xff] }
  0x5c   :  { %1646 = vmatprep.subr.mxu1 %v845_v40  ;;  %v1440_v40 = vld [vmem:[%s6918_s7 + $0x16c8] sm:$0xff] }
  0x5d   :  { %1647 = vmatpush2.msra.mxu1 %v844_v41  ;;  %v1201_v41 = vld [vmem:[%s6918_s7 + $0xf50] sm:$0xff] }
  0x5e   :  { %1648 = vmatprep.subr.mxu1 %v838_v42  ;;  %v1439_v42 = vld [vmem:[%s6918_s7 + $0x16c0] sm:$0xff] }
  0x5f   :  { %1649 = vmatpush2.msra.mxu1 %v837_v43  ;;  %v1195_v43 = vld [vmem:[%s6918_s7 + $0xf20] sm:$0xff] }
  0x60   :  { %1650 = vmatprep.subr.mxu1 %v831_v44  ;;  %v1433_v44 = vld [vmem:[%s6918_s7 + $0x1690] sm:$0xff] }
  0x61   :  { %1651 = vmatpush2.msra.mxu1 %v830_v45  ;;  %v1194_v45 = vld [vmem:[%s6918_s7 + $0xf18] sm:$0xff] }
  0x62   :  { %1652 = vmatprep.subr.mxu1 %v824_v46  ;;  %v1432_v46 = vld [vmem:[%s6918_s7 + $0x1688] sm:$0xff] }
  0x63   :  { %1653 = vmatpush2.msra.mxu1 %v823_v47  ;;  %v1188_v47 = vld [vmem:[%s6918_s7 + $0xee8] sm:$0xff] }
  0x64   :  { %1732 = vmatprep.subr.mxu1 %v1265_v48  ;;  %v1426_v48 = vld [vmem:[%s6918_s7 + $0x1658] sm:$0xff] }
  0xc6   :  { %v310_v58 = vpop.f32.mrf.mxu0 }
  0xc7   :  { %v311_v59 = vadd.f32 %v310_v58, %v178_v54  ;;  %v1425_v54 = vld [vmem:[%s6918_s7 + $0x1650] sm:$0xff]  ;;  %v1419_v58 = vld [vmem:[%s6918_s7 + $0x1620] sm:$0xff] }
  0xc8   :  { %v312_v60 = vpop.f32.mrf.mxu0 }
  0xc9   :  { %v313_v62 = vadd.f32 %v312_v60, %v182_v56  ;;  %v3930_v2 = vmax.f32 %v311_v59, 0.0  ;;  %v1181_v56 = vld [vmem:[%s6918_s7 + $0xeb0] sm:$0xff]  ;;  %v1180_v59 = vld [vmem:[%s6918_s7 + $0xea8] sm:$0xff]  ;;  %v1418_v60 = vld [vmem:[%s6918_s7 + $0x1618] sm:$0xff] }
  0xca   :  { %v381_v0 = vpop.f32.mrf.mxu0 }
  0xcb   :  { %v3928_v1 = vmax.f32 %v313_v62, 0.0  ;;  %v382_v3 = vadd.f32 %v381_v0, %v186_v61  ;;  %v1174_v61 = vld [vmem:[%s6918_s7 + $0xe78] sm:$0xff]  ;;  %v1412_v62 = vld [vmem:[%s6918_s7 + $0x15e8] sm:$0xff]  ;;  %v1411_v0 = vld [vmem:[%s6918_s7 + $0x15e0] sm:$0xff] }
  0xcc   :  { %v383_v6 = vpop.f32.mrf.mxu0 }
  0xcd   :  { %v384_v5 = vadd.f32 %v383_v6, %v190_v63  ;;  %1654 = vmatprep.mubr.f32.mxu1 %v3928_v1  ;;  %v3948_v12 = vmax.f32 %v382_v3, 0.0  ;;  %v1173_v63 = vld [vmem:[%s6918_s7 + $0xe70] sm:$0xff]  ;;  %v1167_v3 = vld [vmem:[%s6918_s7 + $0xe40] sm:$0xff] }
  0xce   :  { %1655 = vmatmul.mubr.f32.vlgmr.msra.gmra.mxu1 %v3930_v2  ;;  %v1405_v6 = vld [vmem:[%s6918_s7 + $0x15b0] sm:$0xff] }
  0xcf   :  { %v3943_v10 = vmax.f32 %v384_v5, 0.0  ;;  %1733 = vmatpush1.msra.mxu1 %v1264_v7  ;;  %v1166_v7 = vld [vmem:[%s6918_s7 + $0xe38] sm:$0xff]  ;;  %v1404_v5 = vld [vmem:[%s6918_s7 + $0x15a8] sm:$0xff] }
  0xd0   :  { %1734 = vmatprep.subr.mxu1 %v1258_v8  ;;  %v1160_v8 = vld [vmem:[%s6918_s7 + $0xe08] sm:$0xff] }
  0xd1   :  { %1735 = vmatpush1.msra.mxu1 %v1257_v9  ;;  %1725 = vmatprep.mubr.f32.mxu0 %v3943_v10  ;;  %v1398_v9 = vld [vmem:[%s6918_s7 + $0x1578] sm:$0xff] }
  0xd2   :  { %1736 = vmatprep.subr.mxu1 %v1251_v11  ;;  %1726 = vmatmul.mubr.f32.vlgmr.msra.gmra.mxu0 %v3948_v12  ;;  %v1159_v11 = vld [vmem:[%s6918_s7 + $0xe00] sm:$0xff] }
  0xd3   :  { %1737 = vmatpush1.msra.mxu1 %v1250_v13  ;;  %1804 = vmatpush1.msra.mxu0 %v1488_v14  ;;  %v1397_v13 = vld [vmem:[%s6918_s7 + $0x1570] sm:$0xff] }
  0xd4   :  { %1738 = vmatprep.subr.mxu1 %v1244_v15  ;;  %1805 = vmatprep.subr.mxu0 %v1482_v16  ;;  %v1377_v14 = vld [vmem:[%s6918_s7 + $0x14d0] sm:$0xff]  ;;  %v1391_v15 = vld [vmem:[%s6918_s7 + $0x1540] sm:$0xff]  ;;  %v1376_v16 = vld [vmem:[%s6918_s7 + $0x14c8] sm:$0xff] }
  0xd5   :  { %1739 = vmatpush1.msra.mxu1 %v1243_v17  ;;  %1806 = vmatpush1.msra.mxu0 %v1481_v18  ;;  %v1390_v17 = vld [vmem:[%s6918_s7 + $0x1538] sm:$0xff] }
  0xd6   :  { %1740 = vmatprep.subr.mxu1 %v1237_v19  ;;  %1807 = vmatprep.subr.mxu0 %v1475_v20  ;;  %v1370_v18 = vld [vmem:[%s6918_s7 + $0x1498] sm:$0xff]  ;;  %v1384_v19 = vld [vmem:[%s6918_s7 + $0x1508] sm:$0xff]  ;;  %v1369_v20 = vld [vmem:[%s6918_s7 + $0x1490] sm:$0xff] }
  0xd7   :  { %1741 = vmatpush1.msra.mxu1 %v1236_v21  ;;  %1808 = vmatpush1.msra.mxu0 %v1474_v22  ;;  %v1383_v21 = vld [vmem:[%s6918_s7 + $0x1500] sm:$0xff] }
  0xd8   :  { %1742 = vmatprep.subr.mxu1 %v1230_v23  ;;  %1809 = vmatprep.subr.mxu0 %v1468_v24  ;;  %v1363_v22 = vld [vmem:[%s6918_s7 + $0x1460] sm:$0xff]  ;;  %v1580_v23 = vld [vmem:[%s6918_s7 + $0x1b28] sm:$0xff]  ;;  %v1362_v24 = vld [vmem:[%s6918_s7 + $0x1458] sm:$0xff] }
  0xd9   :  { %1743 = vmatpush1.msra.mxu1 %v1229_v25  ;;  %1810 = vmatpush1.msra.mxu0 %v1467_v26  ;;  %v1579_v25 = vld [vmem:[%s6918_s7 + $0x1b20] sm:$0xff]  ;;  %v1356_v26 = vld [vmem:[%s6918_s7 + $0x1428] sm:$0xff] }
  0xda   :  { %1744 = vmatprep.subr.mxu1 %v1223_v27  ;;  %1811 = vmatprep.subr.mxu0 %v1461_v28  ;;  %v1573_v27 = vld [vmem:[%s6918_s7 + $0x1af0] sm:$0xff]  ;;  %v1355_v28 = vld [vmem:[%s6918_s7 + $0x1420] sm:$0xff] }
  0xdb   :  { %1745 = vmatpush1.msra.mxu1 %v1222_v29  ;;  %1812 = vmatpush1.msra.mxu0 %v1460_v30  ;;  %v1572_v29 = vld [vmem:[%s6918_s7 + $0x1ae8] sm:$0xff]  ;;  %v1349_v30 = vld [vmem:[%s6918_s7 + $0x13f0] sm:$0xff] }
  0xdc   :  { %1746 = vmatprep.subr.mxu1 %v1216_v31  ;;  %1813 = vmatprep.subr.mxu0 %v1454_v32  ;;  %v1566_v31 = vld [vmem:[%s6918_s7 + $0x1ab8] sm:$0xff]  ;;  %v1348_v32 = vld [vmem:[%s6918_s7 + $0x13e8] sm:$0xff] }
  0xdd   :  { %1747 = vmatpush1.msra.mxu1 %v1215_v33  ;;  %1814 = vmatpush1.msra.mxu0 %v1453_v34  ;;  %v1565_v33 = vld [vmem:[%s6918_s7 + $0x1ab0] sm:$0xff]  ;;  %v1342_v34 = vld [vmem:[%s6918_s7 + $0x13b8] sm:$0xff] }
  0xde   :  { %1748 = vmatprep.subr.mxu1 %v1209_v35  ;;  %1815 = vmatprep.subr.mxu0 %v1447_v36  ;;  %v1559_v35 = vld [vmem:[%s6918_s7 + $0x1a80] sm:$0xff] }
  0xdf   :  { %1749 = vmatpush1.msra.mxu1 %v1208_v37  ;;  %1816 = vmatpush1.msra.mxu0 %v1446_v38  ;;  %v1341_v37 = vld [vmem:[%s6918_s7 + $0x13b0] sm:$0xff]  ;;  %v1558_v38 = vld [vmem:[%s6918_s7 + $0x1a78] sm:$0xff] }
  0xe0   :  { %1750 = vmatprep.subr.mxu1 %v1202_v39  ;;  %1817 = vmatprep.subr.mxu0 %v1440_v40  ;;  %v4180_v36 = vpop.f32.mrf.mxu1  ;;  %v1335_v39 = vld [vmem:[%s6918_s7 + $0x1380] sm:$0xff]  ;;  %v1552_v40 = vld [vmem:[%s6918_s7 + $0x1a48] sm:$0xff] }
  0xe1   :  { %1751 = vmatpush1.msra.mxu1 %v1201_v41  ;;  %1818 = vmatpush1.msra.mxu0 %v1439_v42  ;;  %v1334_v41 = vld [vmem:[%s6918_s7 + $0x1378] sm:$0xff]  ;;  %v1551_v42 = vld [vmem:[%s6918_s7 + $0x1a40] sm:$0xff] }
  0xe2   :  { %1752 = vmatprep.subr.mxu1 %v1195_v43  ;;  %1819 = vmatprep.subr.mxu0 %v1433_v44  ;;  %v1328_v43 = vld [vmem:[%s6918_s7 + $0x1348] sm:$0xff]  ;;  %v1545_v44 = vld [vmem:[%s6918_s7 + $0x1a10] sm:$0xff] }
  0xe3   :  { %1753 = vmatpush1.msra.mxu1 %v1194_v45  ;;  %1820 = vmatpush1.msra.mxu0 %v1432_v46  ;;  %v4206_v45 = vpop.f32.mrf.mxu1  ;;  %v1327_v46 = vld [vmem:[%s6918_s7 + $0x1340] sm:$0xff] }
  0xe4   :  { %1754 = vmatprep.subr.mxu1 %v1188_v47  ;;  %1821 = vmatprep.subr.mxu0 %v1426_v48  ;;  %v1544_v47 = vld [vmem:[%s6918_s7 + $0x1a08] sm:$0xff]  ;;  %v1321_v48 = vld [vmem:[%s6918_s7 + $0x1310] sm:$0xff] }
  0xe5   :  { %1755 = vmatpush1.msra.mxu1 %v1187_v49  ;;  %1822 = vmatpush1.msra.mxu0 %v1425_v54  ;;  %v1538_v49 = vld [vmem:[%s6918_s7 + $0x19d8] sm:$0xff]  ;;  %v1320_v54 = vld [vmem:[%s6918_s7 + $0x1308] sm:$0xff] }
  0xe6   :  { %1756 = vmatprep.subr.mxu1 %v1181_v56  ;;  %1823 = vmatprep.subr.mxu0 %v1419_v58  ;;  %v1537_v56 = vld [vmem:[%s6918_s7 + $0x19d0] sm:$0xff]  ;;  %v205_v58 = vsub.s32 7, %v3903_v50 }
  0xe7   :  { %1757 = vmatpush1.msra.mxu1 %v1180_v59  ;;  %1824 = vmatpush1.msra.mxu0 %v1418_v60  ;;  %v1314_v59 = vld [vmem:[%s6918_s7 + $0x12d8] sm:$0xff]  ;;  %v1531_v60 = vld [vmem:[%s6918_s7 + $0x19a0] sm:$0xff] }
  0xe8   :  { %1758 = vmatprep.subr.mxu1 %v1174_v61  ;;  %1825 = vmatprep.subr.mxu0 %v1412_v62  ;;  %v523_v61 = vpop.f32.mrf.mxu1  ;;  %v1313_v62 = vld [vmem:[%s6918_s7 + $0x12d0] sm:$0xff] }
  0xe9   :  { %1759 = vmatpush1.msra.mxu1 %v1173_v63  ;;  %1826 = vmatpush1.msra.mxu0 %v1411_v0  ;;  %v1530_v63 = vld [vmem:[%s6918_s7 + $0x1998] sm:$0xff]  ;;  %v197_v0 = vsub.s32 5, %v3903_v50 }
  0xea   :  { %1760 = vmatprep.subr.mxu1 %v1167_v3  ;;  %1827 = vmatprep.subr.mxu0 %v1405_v6  ;;  %v1307_v3 = vld [vmem:[%s6918_s7 + $0x12a0] sm:$0xff]  ;;  %v1524_v6 = vld [vmem:[%s6918_s7 + $0x1968] sm:$0xff] }
  0xeb   :  { %1761 = vmatpush1.msra.mxu1 %v1166_v7  ;;  %1828 = vmatpush1.msra.mxu0 %v1404_v5  ;;  %v201_v7 = vsub.s32 6, %v3903_v50  ;;  %v452_v5 = vpop.f32.mrf.mxu0 }
  0xec   :  { %1762 = vmatprep.subr.mxu1 %v1160_v8  ;;  %1829 = vmatprep.subr.mxu0 %v1398_v9  ;;  %v1306_v8 = vld [vmem:[%s6918_s7 + $0x1298] sm:$0xff]  ;;  %v1523_v9 = vld [vmem:[%s6918_s7 + $0x1960] sm:$0xff] }
  0xed   :  { %1763 = vmatpush1.msra.mxu1 %v1159_v11  ;;  %1830 = vmatpush1.msra.mxu0 %v1397_v13  ;;  %v193_v11 = vsub.s32 4, %v3903_v50  ;;  %v206_v13 = vrot.slane %v3911_v52, %v205_v58  ;;  %v812_v58 = vld [vmem:[%s6918_s7 + $0x328] sm:$0xff] }
  0xee   :  { %1764 = vmatprep.subr.mxu1 %v1377_v14  ;;  %1831 = vmatprep.subr.mxu0 %v1391_v15  ;;  %v1300_v14 = vld [vmem:[%s6918_s7 + $0x1268] sm:$0xff]  ;;  %v1517_v15 = vld [vmem:[%s6918_s7 + $0x1930] sm:$0xff] }
  0xef   :  { %1765 = vmatpush2.msra.mxu1 %v1376_v16  ;;  %1832 = vmatpush1.msra.mxu0 %v1390_v17  ;;  %v525_v16 = vpop.f32.mrf.mxu1  ;;  %v1299_v17 = vld [vmem:[%s6918_s7 + $0x1260] sm:$0xff] }
  0xf0   :  { %1766 = vmatprep.subr.mxu1 %v1370_v18  ;;  %1833 = vmatprep.subr.mxu0 %v1384_v19  ;;  %v1516_v18 = vld [vmem:[%s6918_s7 + $0x1928] sm:$0xff]  ;;  %v198_v19 = vrot.slane %v3911_v52, %v197_v0 }
  0xf1   :  { %1767 = vmatpush2.msra.mxu1 %v1369_v20  ;;  %1834 = vmatpush1.msra.mxu0 %v1383_v21  ;;  %v202_v20 = vrot.slane %v3911_v52, %v201_v7  ;;  %v1293_v21 = vld [vmem:[%s6918_s7 + $0x1230] sm:$0xff] }
  0xf2   :  { %1768 = vmatprep.subr.mxu1 %v1363_v22  ;;  %1841 = vmatprep.subr.mxu0 %v1580_v23  ;;  %v1510_v22 = vld [vmem:[%s6918_s7 + $0x18f8] sm:$0xff]  ;;  %v454_v23 = vpop.f32.mrf.mxu0 }
  0xf3   :  { %1769 = vmatpush2.msra.mxu1 %v1362_v24  ;;  %1842 = vmatpush2.msra.mxu0 %v1579_v25  ;;  %v194_v24 = vrot.slane %v3911_v52, %v193_v11  ;;  %v526_v25 = vadd.f32 %v525_v16, %v206_v13  ;;  %v455_v52 = vadd.f32 %v454_v23, %v198_v19  ;;  %v1014_v13 = vld [vmem:[%s6918_s7 + $0x978] sm:$0xff]  ;;  %v1001_v19 = vld [vmem:[%s6918_s7 + $0x910] sm:$0xff] }
  0xf4   :  { %1770 = vmatprep.subr.mxu1 %v1356_v26  ;;  %1843 = vmatprep.subr.mxu0 %v1573_v27  ;;  %v1292_v26 = vld [vmem:[%s6918_s7 + $0x1228] sm:$0xff]  ;;  %v1509_v27 = vld [vmem:[%s6918_s7 + $0x18f0] sm:$0xff]  ;;  %v790_v16 = vld [vmem:[%s6918_s7 + $0x278] sm:$0xff] }
  0xf5   :  { %1771 = vmatpush2.msra.mxu1 %v1355_v28  ;;  %1844 = vmatpush2.msra.mxu0 %v1572_v29  ;;  %v1286_v28 = vld [vmem:[%s6918_s7 + $0x11f8] sm:$0xff]  ;;  %v1503_v29 = vld [vmem:[%s6918_s7 + $0x18c0] sm:$0xff] }
  0xf6   :  { %1772 = vmatprep.subr.mxu1 %v1349_v30  ;;  %1845 = vmatprep.subr.mxu0 %v1566_v31  ;;  %v1285_v30 = vld [vmem:[%s6918_s7 + $0x11f0] sm:$0xff]  ;;  %v1502_v31 = vld [vmem:[%s6918_s7 + $0x18b8] sm:$0xff] }
  0xf7   :  { %1773 = vmatpush2.msra.mxu1 %v1348_v32  ;;  %1846 = vmatpush2.msra.mxu0 %v1565_v33  ;;  %v524_v32 = vadd.f32 %v523_v61, %v202_v20  ;;  %v1279_v33 = vld [vmem:[%s6918_s7 + $0x11c0] sm:$0xff]  ;;  %v1028_v61 = vld [vmem:[%s6918_s7 + $0x9e8] sm:$0xff]  ;;  %v994_v23 = vld [vmem:[%s6918_s7 + $0x8d8] sm:$0xff] }
  0xf8   :  { %1774 = vmatprep.subr.mxu1 %v1342_v34  ;;  %1847 = vmatprep.subr.mxu0 %v1559_v35  ;;  %v1496_v34 = vld [vmem:[%s6918_s7 + $0x1888] sm:$0xff]  ;;  %v453_v35 = vadd.f32 %v452_v5, %v194_v24  ;;  %v798_v5 = vld [vmem:[%s6918_s7 + $0x2b8] sm:$0xff]  ;;  %v783_v20 = vld [vmem:[%s6918_s7 + $0x240] sm:$0xff] }
  0xf9   :  { %1775 = vmatpush2.msra.mxu1 %v1341_v37  ;;  %1848 = vmatpush2.msra.mxu0 %v1558_v38  ;;  %v4306_v37 = vmax.f32 %v526_v25, 0.0  ;;  %v1278_v38 = vld [vmem:[%s6918_s7 + $0x11b8] sm:$0xff]  ;;  %v776_v24 = vld [vmem:[%s6918_s7 + $0x208] sm:$0xff]  ;;  %v993_v25 = vld [vmem:[%s6918_s7 + $0x8d0] sm:$0xff] }
  0xfa   :  { %1776 = vmatprep.subr.mxu1 %v1335_v39  ;;  %1849 = vmatprep.subr.mxu0 %v1552_v40  ;;  %v1495_v39 = vld [vmem:[%s6918_s7 + $0x1880] sm:$0xff]  ;;  %v1272_v40 = vld [vmem:[%s6918_s7 + $0x1188] sm:$0xff] }
  0xfb   :  { %1777 = vmatpush2.msra.mxu1 %v1334_v41  ;;  %1850 = vmatpush2.msra.mxu0 %v1551_v42  ;;  %v4317_v41 = vmax.f32 %v455_v52, 0.0  ;;  %v1043_v42 = vld [vmem:[%s6918_s7 + $0xa60] sm:$0xff] }
  0xfc   :  { %1778 = vmatprep.subr.mxu1 %v1328_v43  ;;  %1851 = vmatprep.subr.mxu0 %v1545_v44  ;;  %v4322_v43 = vmax.f32 %v524_v32, 0.0  ;;  %v1271_v44 = vld [vmem:[%s6918_s7 + $0x1180] sm:$0xff] }
  0xfd   :  { %1779 = vmatpush2.msra.mxu1 %v1327_v46  ;;  %1852 = vmatpush2.msra.mxu0 %v1544_v47  ;;  %v4327_v46 = vmax.f32 %v453_v35, 0.0  ;;  %v1042_v47 = vld [vmem:[%s6918_s7 + $0xa58] sm:$0xff]  ;;  %v763_v52 = vld [vmem:[%s6918_s7 + $0x1a0] sm:$0xff] }
  0xfe   :  { %1780 = vmatprep.subr.mxu1 %v1321_v48  ;;  %1853 = vmatprep.subr.mxu0 %v1538_v49  ;;  %v819_v48 = vld [vmem:[%s6918_s7 + $0x360] sm:$0xff]  ;;  %v1036_v49 = vld [vmem:[%s6918_s7 + $0xa28] sm:$0xff] }
  0xff   :  { %1781 = vmatpush2.msra.mxu1 %v1320_v54  ;;  %1854 = vmatpush2.msra.mxu0 %v1537_v56  ;;  %v818_v54 = vld [vmem:[%s6918_s7 + $0x358] sm:$0xff]  ;;  %v1035_v56 = vld [vmem:[%s6918_s7 + $0xa20] sm:$0xff] }
 0x100   :  { %1782 = vmatprep.subr.mxu1 %v1314_v59  ;;  %1855 = vmatprep.subr.mxu0 %v1531_v60  ;;  %v1029_v59 = vld [vmem:[%s6918_s7 + $0x9f0] sm:$0xff]  ;;  %v811_v60 = vld [vmem:[%s6918_s7 + $0x320] sm:$0xff] }
 0x101   :  { %1783 = vmatpush2.msra.mxu1 %v1313_v62  ;;  %1856 = vmatpush2.msra.mxu0 %v1530_v63  ;;  %v805_v62 = vld [vmem:[%s6918_s7 + $0x2f0] sm:$0xff]  ;;  %v1022_v63 = vld [vmem:[%s6918_s7 + $0x9b8] sm:$0xff]  ;;  %v979_v32 = vld [vmem:[%s6918_s7 + $0x860] sm:$0xff] }
 0x102   :  { %1784 = vmatprep.subr.mxu1 %v1307_v3  ;;  %1857 = vmatprep.subr.mxu0 %v1524_v6  ;;  %v804_v3 = vld [vmem:[%s6918_s7 + $0x2e8] sm:$0xff]  ;;  %v1021_v6 = vld [vmem:[%s6918_s7 + $0x9b0] sm:$0xff]  ;;  %v755_v35 = vld [vmem:[%s6918_s7 + $0x160] sm:$0xff] }
 0x103   :  { %1785 = vmatpush2.msra.mxu1 %v1306_v8  ;;  %1858 = vmatpush2.msra.mxu0 %v1523_v9  ;;  %v1015_v8 = vld [vmem:[%s6918_s7 + $0x980] sm:$0xff]  ;;  %v797_v9 = vld [vmem:[%s6918_s7 + $0x2b0] sm:$0xff] }
 0x104   :  { %1786 = vmatprep.subr.mxu1 %v1300_v14  ;;  %1859 = vmatprep.subr.mxu0 %v1517_v15  ;;  %v791_v14 = vld [vmem:[%s6918_s7 + $0x280] sm:$0xff]  ;;  %v1008_v15 = vld [vmem:[%s6918_s7 + $0x948] sm:$0xff] }
 0x105   :  { %1787 = vmatpush2.msra.mxu1 %v1299_v17  ;;  %1860 = vmatpush2.msra.mxu0 %v1516_v18  ;;  %v1007_v17 = vld [vmem:[%s6918_s7 + $0x940] sm:$0xff]  ;;  %v784_v18 = vld [vmem:[%s6918_s7 + $0x248] sm:$0xff] }
 0x106   :  { %1788 = vmatprep.subr.mxu1 %v1293_v21  ;;  %1861 = vmatprep.subr.mxu0 %v1510_v22  ;;  %v1000_v21 = vld [vmem:[%s6918_s7 + $0x908] sm:$0xff]  ;;  %v777_v22 = vld [vmem:[%s6918_s7 + $0x210] sm:$0xff] }
 0x107   :  { %1789 = vmatpush2.msra.mxu1 %v1292_v26  ;;  %1862 = vmatpush2.msra.mxu0 %v1509_v27  ;;  %v770_v26 = vld [vmem:[%s6918_s7 + $0x1d8] sm:$0xff]  ;;  %v987_v27 = vld [vmem:[%s6918_s7 + $0x8a0] sm:$0xff] }
 0x108   :  { %1790 = vmatprep.subr.mxu1 %v1286_v28  ;;  %1863 = vmatprep.subr.mxu0 %v1503_v29  ;;  %v769_v28 = vld [vmem:[%s6918_s7 + $0x1d0] sm:$0xff]  ;;  %v986_v29 = vld [vmem:[%s6918_s7 + $0x898] sm:$0xff] }
 0x109   :  { %1791 = vmatpush2.msra.mxu1 %v1285_v30  ;;  %1864 = vmatpush2.msra.mxu0 %v1502_v31  ;;  %v980_v30 = vld [vmem:[%s6918_s7 + $0x868] sm:$0xff]  ;;  %v762_v31 = vld [vmem:[%s6918_s7 + $0x198] sm:$0xff] }
 0x10a   :  { %1792 = vmatprep.subr.mxu1 %v1279_v33  ;;  %1865 = vmatprep.subr.mxu0 %v1496_v34  ;;  %v756_v33 = vld [vmem:[%s6918_s7 + $0x168] sm:$0xff]  ;;  %v973_v34 = vld [vmem:[%s6918_s7 + $0x830] sm:$0xff] }
 0x10b   :  { %1793 = vmatpush2.msra.mxu1 %v1278_v38  ;;  %1866 = vmatpush2.msra.mxu0 %v1495_v39  ;;  %v972_v38 = vld [vmem:[%s6918_s7 + $0x828] sm:$0xff]  ;;  %v749_v39 = vld [vmem:[%s6918_s7 + $0x130] sm:$0xff] }
 0x10c   :  { %3132 = vmatprep.mubr.msk.f32.mxu0 %vm1586_vm4, %v4306_v37  ;;  %1794 = vmatprep.subr.mxu1 %v1272_v40  ;;  %v966_v40 = vld [vmem:[%s6918_s7 + $0x7f8] sm:$0xff] }
 0x10d   :  { %1868 = vmatmul.mubr.f32.vlgmr.msra.gmra.mxu0 %v4322_v43  ;;  %1945 = vmatprep.subr.mxu0 %v1043_v42  ;;  %v748_v42 = vld [vmem:[%s6918_s7 + $0x128] sm:$0xff] }
 0x10e   :  { %1795 = vmatpush2.msra.mxu1 %v1271_v44  ;;  %1796 = vmatprep.mubr.f32.mxu1 %v4317_v41  ;;  %v965_v44 = vld [vmem:[%s6918_s7 + $0x7f0] sm:$0xff] }
 0x10f   :  { %1946 = vmatpush1.msra.mxu0 %v1042_v47  ;;  %2009 = vmatprep.mubr.f32.mxu0 %v3943_v10  ;;  %v742_v47 = vld [vmem:[%s6918_s7 + $0xf8] sm:$0xff] }
 0x110   :  { %1797 = vmatmul.mubr.f32.vlgmr.msra.gmra.mxu1 %v4327_v46  ;;  %1874 = vmatprep.subr.mxu1 %v819_v48  ;;  %v959_v48 = vld [vmem:[%s6918_s7 + $0x7c0] sm:$0xff] }
 0x111   :  { %1947 = vmatprep.subr.mxu0 %v1036_v49  ;;  %1875 = vmatpush1.msra.mxu1 %v818_v54  ;;  %v741_v49 = vld [vmem:[%s6918_s7 + $0xf0] sm:$0xff]  ;;  %v958_v54 = vld [vmem:[%s6918_s7 + $0x7b8] sm:$0xff] }
 0x112   :  { %1938 = vmatprep.mubr.f32.mxu1 %v3928_v1  ;;  %1948 = vmatpush1.msra.mxu0 %v1035_v56  ;;  %v735_v56 = vld [vmem:[%s6918_s7 + $0xc0] sm:$0xff] }
 0x113   :  { %1876 = vmatprep.subr.mxu1 %v812_v58  ;;  %1949 = vmatprep.subr.mxu0 %v1029_v59  ;;  %v952_v58 = vld [vmem:[%s6918_s7 + $0x788] sm:$0xff]  ;;  %v734_v59 = vld [vmem:[%s6918_s7 + $0xb8] sm:$0xff] }
 0x114   :  { %1877 = vmatpush1.msra.mxu1 %v811_v60  ;;  %1950 = vmatpush1.msra.mxu0 %v1028_v61  ;;  %v951_v60 = vld [vmem:[%s6918_s7 + $0x780] sm:$0xff]  ;;  %v728_v61 = vld [vmem:[%s6918_s7 + $0x88] sm:$0xff] }
 0x115   :  { %1878 = vmatprep.subr.mxu1 %v805_v62  ;;  %1951 = vmatprep.subr.mxu0 %v1022_v63  ;;  %v945_v62 = vld [vmem:[%s6918_s7 + $0x750] sm:$0xff]  ;;  %v727_v63 = vld [vmem:[%s6918_s7 + $0x80] sm:$0xff] }
 0x116   :  { %1879 = vmatpush1.msra.mxu1 %v804_v3  ;;  %1952 = vmatpush1.msra.mxu0 %v1021_v6  ;;  %v944_v3 = vld [vmem:[%s6918_s7 + $0x748] sm:$0xff]  ;;  %v721_v6 = vld [vmem:[%s6918_s7 + $0x50] sm:$0xff] }
 0x117   :  { %1880 = vmatprep.subr.mxu1 %v798_v5  ;;  %1953 = vmatprep.subr.mxu0 %v1015_v8  ;;  %v938_v5 = vld [vmem:[%s6918_s7 + $0x718] sm:$0xff]  ;;  %v720_v8 = vld [vmem:[%s6918_s7 + $0x48] sm:$0xff] }
 0x118   :  { %1881 = vmatpush1.msra.mxu1 %v797_v9  ;;  %1954 = vmatpush1.msra.mxu0 %v1014_v13  ;;  %v937_v9 = vld [vmem:[%s6918_s7 + $0x710] sm:$0xff]  ;;  %v714_v13 = vld [vmem:[%s6918_s7 + $0x18] sm:$0xff] }
 0x119   :  { %1882 = vmatprep.subr.mxu1 %v791_v14  ;;  %1955 = vmatprep.subr.mxu0 %v1008_v15  ;;  %v1155_v14 = vld [vmem:[%s6918_s7 + $0xde0] sm:$0xff]  ;;  %v713_v15 = vld [vmem:[%s6918_s7 + $0x10] sm:$0xff] }
 0x11a   :  { %1883 = vmatpush1.msra.mxu1 %v790_v16  ;;  %1956 = vmatpush1.msra.mxu0 %v1007_v17  ;;  %v1154_v16 = vld [vmem:[%s6918_s7 + $0xdd8] sm:$0xff]  ;;  %v931_v17 = vld [vmem:[%s6918_s7 + $0x6e0] sm:$0xff] }
 0x11b   :  { %1884 = vmatprep.subr.mxu1 %v784_v18  ;;  %1957 = vmatprep.subr.mxu0 %v1001_v19  ;;  %v1148_v18 = vld [vmem:[%s6918_s7 + $0xda8] sm:$0xff]  ;;  %v930_v19 = vld [vmem:[%s6918_s7 + $0x6d8] sm:$0xff] }
 0x11c   :  { %1885 = vmatpush1.msra.mxu1 %v783_v20  ;;  %1958 = vmatpush1.msra.mxu0 %v1000_v21  ;;  %v1147_v20 = vld [vmem:[%s6918_s7 + $0xda0] sm:$0xff]  ;;  %v924_v21 = vld [vmem:[%s6918_s7 + $0x6a8] sm:$0xff] }
 0x11d   :  { %1886 = vmatprep.subr.mxu1 %v777_v22  ;;  %1959 = vmatprep.subr.mxu0 %v994_v23  ;;  %v1141_v22 = vld [vmem:[%s6918_s7 + $0xd70] sm:$0xff]  ;;  %v923_v23 = vld [vmem:[%s6918_s7 + $0x6a0] sm:$0xff] }
 0x11e   :  { %1887 = vmatpush1.msra.mxu1 %v776_v24  ;;  %1960 = vmatpush1.msra.mxu0 %v993_v25  ;;  %v1140_v24 = vld [vmem:[%s6918_s7 + $0xd68] sm:$0xff]  ;;  %v917_v25 = vld [vmem:[%s6918_s7 + $0x670] sm:$0xff] }
 0x11f   :  { %1888 = vmatprep.subr.mxu1 %v770_v26  ;;  %1961 = vmatprep.subr.mxu0 %v987_v27  ;;  %v1134_v26 = vld [vmem:[%s6918_s7 + $0xd38] sm:$0xff]  ;;  %v916_v27 = vld [vmem:[%s6918_s7 + $0x668] sm:$0xff] }
 0x120   :  { %1889 = vmatpush1.msra.mxu1 %v769_v28  ;;  %1962 = vmatpush1.msra.mxu0 %v986_v29  ;;  %v1133_v28 = vld [vmem:[%s6918_s7 + $0xd30] sm:$0xff]  ;;  %v910_v29 = vld [vmem:[%s6918_s7 + $0x638] sm:$0xff] }
 0x121   :  { %1890 = vmatprep.subr.mxu1 %v763_v52  ;;  %1963 = vmatprep.subr.mxu0 %v980_v30  ;;  %v1127_v52 = vld [vmem:[%s6918_s7 + $0xd00] sm:$0xff]  ;;  %v909_v30 = vld [vmem:[%s6918_s7 + $0x630] sm:$0xff] }
 0x122   :  { %1891 = vmatpush1.msra.mxu1 %v762_v31  ;;  %1964 = vmatpush1.msra.mxu0 %v979_v32  ;;  %v1126_v31 = vld [vmem:[%s6918_s7 + $0xcf8] sm:$0xff]  ;;  %v903_v32 = vld [vmem:[%s6918_s7 + $0x600] sm:$0xff] }
 0x123   :  { %1892 = vmatprep.subr.mxu1 %v756_v33  ;;  %1965 = vmatprep.subr.mxu0 %v973_v34  ;;  %v1120_v33 = vld [vmem:[%s6918_s7 + $0xcc8] sm:$0xff]  ;;  %v902_v34 = vld [vmem:[%s6918_s7 + $0x5f8] sm:$0xff] }
 0x124   :  { %1893 = vmatpush1.msra.mxu1 %v755_v35  ;;  %1966 = vmatpush1.msra.mxu0 %v972_v38  ;;  %v1119_v35 = vld [vmem:[%s6918_s7 + $0xcc0] sm:$0xff]  ;;  %v896_v38 = vld [vmem:[%s6918_s7 + $0x5c8] sm:$0xff] }
 0x125   :  { %1894 = vmatprep.subr.mxu1 %v749_v39  ;;  %1967 = vmatprep.subr.mxu0 %v966_v40  ;;  %v1113_v39 = vld [vmem:[%s6918_s7 + $0xc90] sm:$0xff]  ;;  %v895_v40 = vld [vmem:[%s6918_s7 + $0x5c0] sm:$0xff] }
 0x126   :  { %1895 = vmatpush1.msra.mxu1 %v748_v42  ;;  %1968 = vmatpush1.msra.mxu0 %v965_v44  ;;  %v1112_v42 = vld [vmem:[%s6918_s7 + $0xc88] sm:$0xff]  ;;  %v889_v44 = vld [vmem:[%s6918_s7 + $0x590] sm:$0xff] }
 0x127   :  { %1896 = vmatprep.subr.mxu1 %v742_v47  ;;  %1969 = vmatprep.subr.mxu0 %v959_v48  ;;  %v1106_v47 = vld [vmem:[%s6918_s7 + $0xc58] sm:$0xff]  ;;  %v888_v48 = vld [vmem:[%s6918_s7 + $0x588] sm:$0xff] }
 0x128   :  { %1897 = vmatpush1.msra.mxu1 %v741_v49  ;;  %1970 = vmatpush1.msra.mxu0 %v958_v54  ;;  %v1105_v49 = vld [vmem:[%s6918_s7 + $0xc50] sm:$0xff]  ;;  %v882_v54 = vld [vmem:[%s6918_s7 + $0x558] sm:$0xff] }
 0x129   :  { %1898 = vmatprep.subr.mxu1 %v735_v56  ;;  %1971 = vmatprep.subr.mxu0 %v952_v58  ;;  %v1099_v56 = vld [vmem:[%s6918_s7 + $0xc20] sm:$0xff]  ;;  %v881_v58 = vld [vmem:[%s6918_s7 + $0x550] sm:$0xff] }
 0x12a   :  { %1899 = vmatpush1.msra.mxu1 %v734_v59  ;;  %1972 = vmatpush1.msra.mxu0 %v951_v60  ;;  %v1098_v59 = vld [vmem:[%s6918_s7 + $0xc18] sm:$0xff]  ;;  %v875_v60 = vld [vmem:[%s6918_s7 + $0x520] sm:$0xff] }
 0x12b   :  { %1900 = vmatprep.subr.mxu1 %v728_v61  ;;  %1973 = vmatprep.subr.mxu0 %v945_v62  ;;  %v1092_v61 = vld [vmem:[%s6918_s7 + $0xbe8] sm:$0xff]  ;;  %v874_v62 = vld [vmem:[%s6918_s7 + $0x518] sm:$0xff] }
 0x12c   :  { %1901 = vmatpush1.msra.mxu1 %v727_v63  ;;  %1974 = vmatpush1.msra.mxu0 %v944_v3  ;;  %v1091_v63 = vld [vmem:[%s6918_s7 + $0xbe0] sm:$0xff]  ;;  %v868_v3 = vld [vmem:[%s6918_s7 + $0x4e8] sm:$0xff] }
 0x12d   :  { %1902 = vmatprep.subr.mxu1 %v721_v6  ;;  %1975 = vmatprep.subr.mxu0 %v938_v5  ;;  %v1085_v6 = vld [vmem:[%s6918_s7 + $0xbb0] sm:$0xff]  ;;  %v867_v5 = vld [vmem:[%s6918_s7 + $0x4e0] sm:$0xff] }
 0x12e   :  { %1903 = vmatpush1.msra.mxu1 %v720_v8  ;;  %1976 = vmatpush1.msra.mxu0 %v937_v9  ;;  %v1084_v8 = vld [vmem:[%s6918_s7 + $0xba8] sm:$0xff]  ;;  %v861_v9 = vld [vmem:[%s6918_s7 + $0x4b0] sm:$0xff] }
 0x12f   :  { %1904 = vmatprep.subr.mxu1 %v714_v13  ;;  %1977 = vmatprep.subr.mxu0 %v1155_v14  ;;  %v1078_v13 = vld [vmem:[%s6918_s7 + $0xb78] sm:$0xff]  ;;  %v860_v14 = vld [vmem:[%s6918_s7 + $0x4a8] sm:$0xff] }
 0x130   :  { %1905 = vmatpush1.msra.mxu1 %v713_v15  ;;  %1978 = vmatpush2.msra.mxu0 %v1154_v16  ;;  %v1077_v15 = vld [vmem:[%s6918_s7 + $0xb70] sm:$0xff]  ;;  %v854_v16 = vld [vmem:[%s6918_s7 + $0x478] sm:$0xff] }
 0x131   :  { %1906 = vmatprep.subr.mxu1 %v931_v17  ;;  %1979 = vmatprep.subr.mxu0 %v1148_v18  ;;  %v1071_v17 = vld [vmem:[%s6918_s7 + $0xb40] sm:$0xff]  ;;  %v853_v18 = vld [vmem:[%s6918_s7 + $0x470] sm:$0xff] }
 0x132   :  { %1907 = vmatpush2.msra.mxu1 %v930_v19  ;;  %1980 = vmatpush2.msra.mxu0 %v1147_v20  ;;  %v1070_v19 = vld [vmem:[%s6918_s7 + $0xb38] sm:$0xff]  ;;  %v847_v20 = vld [vmem:[%s6918_s7 + $0x440] sm:$0xff] }
 0x133   :  { %1908 = vmatprep.subr.mxu1 %v924_v21  ;;  %1981 = vmatprep.subr.mxu0 %v1141_v22  ;;  %v1064_v21 = vld [vmem:[%s6918_s7 + $0xb08] sm:$0xff]  ;;  %v846_v22 = vld [vmem:[%s6918_s7 + $0x438] sm:$0xff] }
 0x134   :  { %1909 = vmatpush2.msra.mxu1 %v923_v23  ;;  %1982 = vmatpush2.msra.mxu0 %v1140_v24  ;;  %v1063_v23 = vld [vmem:[%s6918_s7 + $0xb00] sm:$0xff]  ;;  %v840_v24 = vld [vmem:[%s6918_s7 + $0x408] sm:$0xff] }
 0x135   :  { %1910 = vmatprep.subr.mxu1 %v917_v25  ;;  %1983 = vmatprep.subr.mxu0 %v1134_v26  ;;  %v1057_v25 = vld [vmem:[%s6918_s7 + $0xad0] sm:$0xff]  ;;  %v839_v26 = vld [vmem:[%s6918_s7 + $0x400] sm:$0xff] }
 0x136   :  { %1911 = vmatpush2.msra.mxu1 %v916_v27  ;;  %1984 = vmatpush2.msra.mxu0 %v1133_v28  ;;  %v1056_v27 = vld [vmem:[%s6918_s7 + $0xac8] sm:$0xff]  ;;  %v833_v28 = vld [vmem:[%s6918_s7 + $0x3d0] sm:$0xff] }
 0x137   :  { %1912 = vmatprep.subr.mxu1 %v910_v29  ;;  %1985 = vmatprep.subr.mxu0 %v1127_v52  ;;  %v1050_v29 = vld [vmem:[%s6918_s7 + $0xa98] sm:$0xff]  ;;  %v832_v52 = vld [vmem:[%s6918_s7 + $0x3c8] sm:$0xff] }
 0x138   :  { %1913 = vmatpush2.msra.mxu1 %v909_v30  ;;  %1986 = vmatpush2.msra.mxu0 %v1126_v31  ;;  %v1049_v30 = vld [vmem:[%s6918_s7 + $0xa90] sm:$0xff]  ;;  %v826_v31 = vld [vmem:[%s6918_s7 + $0x398] sm:$0xff] }
 0x139   :  { %1914 = vmatprep.subr.mxu1 %v903_v32  ;;  %1987 = vmatprep.subr.mxu0 %v1120_v33  ;;  %v1491_v32 = vld [vmem:[%s6918_s7 + $0x1860] sm:$0xff]  ;;  %v825_v33 = vld [vmem:[%s6918_s7 + $0x390] sm:$0xff] }
 0x13a   :  { %1915 = vmatpush2.msra.mxu1 %v902_v34  ;;  %1988 = vmatpush2.msra.mxu0 %v1119_v35  ;;  %v1490_v34 = vld [vmem:[%s6918_s7 + $0x1858] sm:$0xff]  ;;  %v1267_v35 = vld [vmem:[%s6918_s7 + $0x1160] sm:$0xff] }
 0x13b   :  { %1916 = vmatprep.subr.mxu1 %v896_v38  ;;  %1989 = vmatprep.subr.mxu0 %v1113_v39  ;;  %v1484_v38 = vld [vmem:[%s6918_s7 + $0x1828] sm:$0xff]  ;;  %v1266_v39 = vld [vmem:[%s6918_s7 + $0x1158] sm:$0xff] }
 0x13c   :  { %1917 = vmatpush2.msra.mxu1 %v895_v40  ;;  %1990 = vmatpush2.msra.mxu0 %v1112_v42  ;;  %v1483_v40 = vld [vmem:[%s6918_s7 + $0x1820] sm:$0xff]  ;;  %v1260_v42 = vld [vmem:[%s6918_s7 + $0x1128] sm:$0xff] }
 0x13d   :  { %1918 = vmatprep.subr.mxu1 %v889_v44  ;;  %1991 = vmatprep.subr.mxu0 %v1106_v47  ;;  %v1477_v44 = vld [vmem:[%s6918_s7 + $0x17f0] sm:$0xff]  ;;  %v1259_v47 = vld [vmem:[%s6918_s7 + $0x1120] sm:$0xff] }
 0x13e   :  { %1919 = vmatpush2.msra.mxu1 %v888_v48  ;;  %1992 = vmatpush2.msra.mxu0 %v1105_v49  ;;  %v1476_v48 = vld [vmem:[%s6918_s7 + $0x17e8] sm:$0xff]  ;;  %v1253_v49 = vld [vmem:[%s6918_s7 + $0x10f0] sm:$0xff] }
 0x13f   :  { %1920 = vmatprep.subr.mxu1 %v882_v54  ;;  %1993 = vmatprep.subr.mxu0 %v1099_v56  ;;  %v1470_v54 = vld [vmem:[%s6918_s7 + $0x17b8] sm:$0xff]  ;;  %v1252_v56 = vld [vmem:[%s6918_s7 + $0x10e8] sm:$0xff] }
 0x140   :  { %1921 = vmatpush2.msra.mxu1 %v881_v58  ;;  %1994 = vmatpush2.msra.mxu0 %v1098_v59  ;;  %v1469_v58 = vld [vmem:[%s6918_s7 + $0x17b0] sm:$0xff]  ;;  %v1246_v59 = vld [vmem:[%s6918_s7 + $0x10b8] sm:$0xff] }
 0x141   :  { %1922 = vmatprep.subr.mxu1 %v875_v60  ;;  %1995 = vmatprep.subr.mxu0 %v1092_v61  ;;  %v1463_v60 = vld [vmem:[%s6918_s7 + $0x1780] sm:$0xff]  ;;  %v1245_v61 = vld [vmem:[%s6918_s7 + $0x10b0] sm:$0xff] }
 0x142   :  { %1923 = vmatpush2.msra.mxu1 %v874_v62  ;;  %1996 = vmatpush2.msra.mxu0 %v1091_v63  ;;  %v1462_v62 = vld [vmem:[%s6918_s7 + $0x1778] sm:$0xff]  ;;  %v1239_v63 = vld [vmem:[%s6918_s7 + $0x1080] sm:$0xff] }
 0x143   :  { %1924 = vmatprep.subr.mxu1 %v868_v3  ;;  %1997 = vmatprep.subr.mxu0 %v1085_v6  ;;  %v1456_v3 = vld [vmem:[%s6918_s7 + $0x1748] sm:$0xff]  ;;  %v1238_v6 = vld [vmem:[%s6918_s7 + $0x1078] sm:$0xff] }
 0x144   :  { %1925 = vmatpush2.msra.mxu1 %v867_v5  ;;  %1998 = vmatpush2.msra.mxu0 %v1084_v8  ;;  %v1455_v5 = vld [vmem:[%s6918_s7 + $0x1740] sm:$0xff]  ;;  %v1232_v8 = vld [vmem:[%s6918_s7 + $0x1048] sm:$0xff] }
 0x145   :  { %1926 = vmatprep.subr.mxu1 %v861_v9  ;;  %1999 = vmatprep.subr.mxu0 %v1078_v13  ;;  %v1449_v9 = vld [vmem:[%s6918_s7 + $0x1710] sm:$0xff]  ;;  %v1231_v13 = vld [vmem:[%s6918_s7 + $0x1040] sm:$0xff] }
 0x146   :  { %1927 = vmatpush2.msra.mxu1 %v860_v14  ;;  %2000 = vmatpush2.msra.mxu0 %v1077_v15  ;;  %v1448_v14 = vld [vmem:[%s6918_s7 + $0x1708] sm:$0xff]  ;;  %v1225_v15 = vld [vmem:[%s6918_s7 + $0x1010] sm:$0xff] }
 0x147   :  { %1928 = vmatprep.subr.mxu1 %v854_v16  ;;  %2001 = vmatprep.subr.mxu0 %v1071_v17  ;;  %v1442_v16 = vld [vmem:[%s6918_s7 + $0x16d8] sm:$0xff]  ;;  %v1224_v17 = vld [vmem:[%s6918_s7 + $0x1008] sm:$0xff] }
 0x148   :  { %1929 = vmatpush2.msra.mxu1 %v853_v18  ;;  %2002 = vmatpush2.msra.mxu0 %v1070_v19  ;;  %v1441_v18 = vld [vmem:[%s6918_s7 + $0x16d0] sm:$0xff]  ;;  %v1218_v19 = vld [vmem:[%s6918_s7 + $0xfd8] sm:$0xff] }
 0x149   :  { %1930 = vmatprep.subr.mxu1 %v847_v20  ;;  %2003 = vmatprep.subr.mxu0 %v1064_v21  ;;  %v1435_v20 = vld [vmem:[%s6918_s7 + $0x16a0] sm:$0xff]  ;;  %v1217_v21 = vld [vmem:[%s6918_s7 + $0xfd0] sm:$0xff] }
 0x14a   :  { %1931 = vmatpush2.msra.mxu1 %v846_v22  ;;  %2004 = vmatpush2.msra.mxu0 %v1063_v23  ;;  %v1434_v22 = vld [vmem:[%s6918_s7 + $0x1698] sm:$0xff]  ;;  %v1211_v23 = vld [vmem:[%s6918_s7 + $0xfa0] sm:$0xff] }
 0x14b   :  { %1932 = vmatprep.subr.mxu1 %v840_v24  ;;  %2005 = vmatprep.subr.mxu0 %v1057_v25  ;;  %v1428_v24 = vld [vmem:[%s6918_s7 + $0x1668] sm:$0xff]  ;;  %v1210_v25 = vld [vmem:[%s6918_s7 + $0xf98] sm:$0xff] }
 0x14c   :  { %1933 = vmatpush2.msra.mxu1 %v839_v26  ;;  %2006 = vmatpush2.msra.mxu0 %v1056_v27  ;;  %v1427_v26 = vld [vmem:[%s6918_s7 + $0x1660] sm:$0xff]  ;;  %v1204_v27 = vld [vmem:[%s6918_s7 + $0xf68] sm:$0xff] }
 0x14d   :  { %1934 = vmatprep.subr.mxu1 %v833_v28  ;;  %2007 = vmatprep.subr.mxu0 %v1050_v29  ;;  %v1421_v28 = vld [vmem:[%s6918_s7 + $0x1630] sm:$0xff]  ;;  %v1203_v29 = vld [vmem:[%s6918_s7 + $0xf60] sm:$0xff] }
 0x14e   :  { %1935 = vmatpush2.msra.mxu1 %v832_v52  ;;  %2008 = vmatpush2.msra.mxu0 %v1049_v30  ;;  %v1420_v52 = vld [vmem:[%s6918_s7 + $0x1628] sm:$0xff]  ;;  %v1197_v30 = vld [vmem:[%s6918_s7 + $0xf30] sm:$0xff] }
 0x14f   :  { %1936 = vmatprep.subr.mxu1 %v826_v31  ;;  %2010 = vmatmul.mubr.f32.vlgmr.msra.gmra.mxu0 %v3948_v12  ;;  %v1414_v31 = vld [vmem:[%s6918_s7 + $0x15f8] sm:$0xff] }
 0x150   :  { %2087 = vmatprep.subr.mxu0 %v1491_v32  ;;  %1937 = vmatpush2.msra.mxu1 %v825_v33  ;;  %v1196_v32 = vld [vmem:[%s6918_s7 + $0xf28] sm:$0xff]  ;;  %v1413_v33 = vld [vmem:[%s6918_s7 + $0x15f0] sm:$0xff] }
 0x151   :  { %2088 = vmatpush1.msra.mxu0 %v1490_v34  ;;  %3133 = vmatprep.mubr.msk.f32.mxu0 %vm1586_vm4, %v4306_v37  ;;  %v1190_v34 = vld [vmem:[%s6918_s7 + $0xef8] sm:$0xff] }
 0x152   :  { %1939 = vmatmul.mubr.f32.vlgmr.msra.gmra.mxu1 %v3930_v2  ;;  %2016 = vmatprep.subr.mxu1 %v1267_v35  ;;  %v1407_v35 = vld [vmem:[%s6918_s7 + $0x15c0] sm:$0xff] }
 0x153   :  { %2089 = vmatprep.subr.mxu0 %v1484_v38  ;;  %2017 = vmatpush1.msra.mxu1 %v1266_v39  ;;  %v1189_v38 = vld [vmem:[%s6918_s7 + $0xef0] sm:$0xff]  ;;  %v1406_v39 = vld [vmem:[%s6918_s7 + $0x15b8] sm:$0xff] }
 0x154   :  { %2080 = vmatprep.mubr.f32.mxu1 %v4317_v41  ;;  %2090 = vmatpush1.msra.mxu0 %v1483_v40  ;;  %v1183_v40 = vld [vmem:[%s6918_s7 + $0xec0] sm:$0xff] }
 0x155   :  { %2018 = vmatprep.subr.mxu1 %v1260_v42  ;;  %2091 = vmatprep.subr.mxu0 %v1477_v44  ;;  %v1400_v42 = vld [vmem:[%s6918_s7 + $0x1588] sm:$0xff]  ;;  %v1182_v44 = vld [vmem:[%s6918_s7 + $0xeb8] sm:$0xff] }
 0x156   :  { %2019 = vmatpush1.msra.mxu1 %v1259_v47  ;;  %2092 = vmatpush1.msra.mxu0 %v1476_v48  ;;  %v1399_v47 = vld [vmem:[%s6918_s7 + $0x1580] sm:$0xff]  ;;  %v1176_v48 = vld [vmem:[%s6918_s7 + $0xe88] sm:$0xff] }
 0x157   :  { %2020 = vmatprep.subr.mxu1 %v1253_v49  ;;  %2093 = vmatprep.subr.mxu0 %v1470_v54  ;;  %v1393_v49 = vld [vmem:[%s6918_s7 + $0x1550] sm:$0xff]  ;;  %v1175_v54 = vld [vmem:[%s6918_s7 + $0xe80] sm:$0xff] }
 0x158   :  { %2021 = vmatpush1.msra.mxu1 %v1252_v56  ;;  %2094 = vmatpush1.msra.mxu0 %v1469_v58  ;;  %v1392_v56 = vld [vmem:[%s6918_s7 + $0x1548] sm:$0xff]  ;;  %v1169_v58 = vld [vmem:[%s6918_s7 + $0xe50] sm:$0xff] }
 0x159   :  { %2022 = vmatprep.subr.mxu1 %v1246_v59  ;;  %2095 = vmatprep.subr.mxu0 %v1463_v60  ;;  %v1386_v59 = vld [vmem:[%s6918_s7 + $0x1518] sm:$0xff]  ;;  %v1168_v60 = vld [vmem:[%s6918_s7 + $0xe48] sm:$0xff] }
 0x15a   :  { %2023 = vmatpush1.msra.mxu1 %v1245_v61  ;;  %2096 = vmatpush1.msra.mxu0 %v1462_v62  ;;  %v1385_v61 = vld [vmem:[%s6918_s7 + $0x1510] sm:$0xff]  ;;  %v1162_v62 = vld [vmem:[%s6918_s7 + $0xe18] sm:$0xff] }
 0x15b   :  { %2024 = vmatprep.subr.mxu1 %v1239_v63  ;;  %2097 = vmatprep.subr.mxu0 %v1456_v3  ;;  %v1582_v63 = vld [vmem:[%s6918_s7 + $0x1b38] sm:$0xff]  ;;  %v1161_v3 = vld [vmem:[%s6918_s7 + $0xe10] sm:$0xff] }
 0x15c   :  { %2025 = vmatpush1.msra.mxu1 %v1238_v6  ;;  %2098 = vmatpush1.msra.mxu0 %v1455_v5  ;;  %v1581_v6 = vld [vmem:[%s6918_s7 + $0x1b30] sm:$0xff]  ;;  %v1379_v5 = vld [vmem:[%s6918_s7 + $0x14e0] sm:$0xff] }
 0x15d   :  { %2026 = vmatprep.subr.mxu1 %v1232_v8  ;;  %2099 = vmatprep.subr.mxu0 %v1449_v9  ;;  %v1575_v8 = vld [vmem:[%s6918_s7 + $0x1b00] sm:$0xff]  ;;  %v1378_v9 = vld [vmem:[%s6918_s7 + $0x14d8] sm:$0xff] }
 0x15e   :  { %2027 = vmatpush1.msra.mxu1 %v1231_v13  ;;  %2100 = vmatpush1.msra.mxu0 %v1448_v14  ;;  %v1574_v13 = vld [vmem:[%s6918_s7 + $0x1af8] sm:$0xff]  ;;  %v1372_v14 = vld [vmem:[%s6918_s7 + $0x14a8] sm:$0xff] }
 0x15f   :  { %2028 = vmatprep.subr.mxu1 %v1225_v15  ;;  %2101 = vmatprep.subr.mxu0 %v1442_v16  ;;  %v1568_v15 = vld [vmem:[%s6918_s7 + $0x1ac8] sm:$0xff]  ;;  %v1371_v16 = vld [vmem:[%s6918_s7 + $0x14a0] sm:$0xff] }
 0x160   :  { %2029 = vmatpush1.msra.mxu1 %v1224_v17  ;;  %2102 = vmatpush1.msra.mxu0 %v1441_v18  ;;  %v1567_v17 = vld [vmem:[%s6918_s7 + $0x1ac0] sm:$0xff]  ;;  %v1365_v18 = vld [vmem:[%s6918_s7 + $0x1470] sm:$0xff] }
 0x161   :  { %2030 = vmatprep.subr.mxu1 %v1218_v19  ;;  %2103 = vmatprep.subr.mxu0 %v1435_v20  ;;  %v1561_v19 = vld [vmem:[%s6918_s7 + $0x1a90] sm:$0xff]  ;;  %v1364_v20 = vld [vmem:[%s6918_s7 + $0x1468] sm:$0xff] }
 0x162   :  { %2031 = vmatpush1.msra.mxu1 %v1217_v21  ;;  %2104 = vmatpush1.msra.mxu0 %v1434_v22  ;;  %v1560_v21 = vld [vmem:[%s6918_s7 + $0x1a88] sm:$0xff]  ;;  %v1358_v22 = vld [vmem:[%s6918_s7 + $0x1438] sm:$0xff] }
 0x163   :  { %2032 = vmatprep.subr.mxu1 %v1211_v23  ;;  %2105 = vmatprep.subr.mxu0 %v1428_v24  ;;  %v1554_v23 = vld [vmem:[%s6918_s7 + $0x1a58] sm:$0xff]  ;;  %v1357_v24 = vld [vmem:[%s6918_s7 + $0x1430] sm:$0xff] }
 0x164   :  { %2033 = vmatpush1.msra.mxu1 %v1210_v25  ;;  %2106 = vmatpush1.msra.mxu0 %v1427_v26  ;;  %v1553_v25 = vld [vmem:[%s6918_s7 + $0x1a50] sm:$0xff]  ;;  %v1351_v26 = vld [vmem:[%s6918_s7 + $0x1400] sm:$0xff] }
 0x165   :  { %2034 = vmatprep.subr.mxu1 %v1204_v27  ;;  %2107 = vmatprep.subr.mxu0 %v1421_v28  ;;  %v1547_v27 = vld [vmem:[%s6918_s7 + $0x1a20] sm:$0xff]  ;;  %v1350_v28 = vld [vmem:[%s6918_s7 + $0x13f8] sm:$0xff] }
 0x166   :  { %2035 = vmatpush1.msra.mxu1 %v1203_v29  ;;  %2108 = vmatpush1.msra.mxu0 %v1420_v52  ;;  %v1546_v29 = vld [vmem:[%s6918_s7 + $0x1a18] sm:$0xff]  ;;  %v1344_v52 = vld [vmem:[%s6918_s7 + $0x13c8] sm:$0xff] }
 0x167   :  { %2036 = vmatprep.subr.mxu1 %v1197_v30  ;;  %2109 = vmatprep.subr.mxu0 %v1414_v31  ;;  %v1540_v30 = vld [vmem:[%s6918_s7 + $0x19e8] sm:$0xff]  ;;  %v1343_v31 = vld [vmem:[%s6918_s7 + $0x13c0] sm:$0xff] }
 0x168   :  { %2037 = vmatpush1.msra.mxu1 %v1196_v32  ;;  %2110 = vmatpush1.msra.mxu0 %v1413_v33  ;;  %v1539_v32 = vld [vmem:[%s6918_s7 + $0x19e0] sm:$0xff]  ;;  %v1337_v33 = vld [vmem:[%s6918_s7 + $0x1390] sm:$0xff] }
 0x169   :  { %2038 = vmatprep.subr.mxu1 %v1190_v34  ;;  %2111 = vmatprep.subr.mxu0 %v1407_v35  ;;  %v1533_v34 = vld [vmem:[%s6918_s7 + $0x19b0] sm:$0xff]  ;;  %v1336_v35 = vld [vmem:[%s6918_s7 + $0x1388] sm:$0xff] }
 0x16a   :  { %2039 = vmatpush1.msra.mxu1 %v1189_v38  ;;  %2112 = vmatpush1.msra.mxu0 %v1406_v39  ;;  %v1532_v38 = vld [vmem:[%s6918_s7 + $0x19a8] sm:$0xff]  ;;  %v1330_v39 = vld [vmem:[%s6918_s7 + $0x1358] sm:$0xff] }
 0x16b   :  { %2040 = vmatprep.subr.mxu1 %v1183_v40  ;;  %2113 = vmatprep.subr.mxu0 %v1400_v42  ;;  %v1526_v40 = vld [vmem:[%s6918_s7 + $0x1978] sm:$0xff]  ;;  %v1329_v42 = vld [vmem:[%s6918_s7 + $0x1350] sm:$0xff] }
 0x16c   :  { %2041 = vmatpush1.msra.mxu1 %v1182_v44  ;;  %2114 = vmatpush1.msra.mxu0 %v1399_v47  ;;  %v1525_v44 = vld [vmem:[%s6918_s7 + $0x1970] sm:$0xff]  ;;  %v1323_v47 = vld [vmem:[%s6918_s7 + $0x1320] sm:$0xff] }
 0x16d   :  { %2042 = vmatprep.subr.mxu1 %v1176_v48  ;;  %2115 = vmatprep.subr.mxu0 %v1393_v49  ;;  %v1519_v48 = vld [vmem:[%s6918_s7 + $0x1940] sm:$0xff]  ;;  %v1322_v49 = vld [vmem:[%s6918_s7 + $0x1318] sm:$0xff] }
 0x16e   :  { %2043 = vmatpush1.msra.mxu1 %v1175_v54  ;;  %2116 = vmatpush1.msra.mxu0 %v1392_v56  ;;  %v1518_v54 = vld [vmem:[%s6918_s7 + $0x1938] sm:$0xff]  ;;  %v1316_v56 = vld [vmem:[%s6918_s7 + $0x12e8] sm:$0xff] }
 0x16f   :  { %2044 = vmatprep.subr.mxu1 %v1169_v58  ;;  %2117 = vmatprep.subr.mxu0 %v1386_v59  ;;  %v1512_v58 = vld [vmem:[%s6918_s7 + $0x1908] sm:$0xff]  ;;  %v1315_v59 = vld [vmem:[%s6918_s7 + $0x12e0] sm:$0xff] }
 0x170   :  { %2045 = vmatpush1.msra.mxu1 %v1168_v60  ;;  %2118 = vmatpush1.msra.mxu0 %v1385_v61  ;;  %v1511_v60 = vld [vmem:[%s6918_s7 + $0x1900] sm:$0xff]  ;;  %v1309_v61 = vld [vmem:[%s6918_s7 + $0x12b0] sm:$0xff] }
 0x171   :  { %2046 = vmatprep.subr.mxu1 %v1162_v62  ;;  %2125 = vmatprep.subr.mxu0 %v1582_v63  ;;  %v1505_v62 = vld [vmem:[%s6918_s7 + $0x18d0] sm:$0xff]  ;;  %v1308_v63 = vld [vmem:[%s6918_s7 + $0x12a8] sm:$0xff] }
 0x172   :  { %2047 = vmatpush1.msra.mxu1 %v1161_v3  ;;  %2126 = vmatpush2.msra.mxu0 %v1581_v6  ;;  %v1504_v3 = vld [vmem:[%s6918_s7 + $0x18c8] sm:$0xff]  ;;  %v1302_v6 = vld [vmem:[%s6918_s7 + $0x1278] sm:$0xff] }
 0x173   :  { %2048 = vmatprep.subr.mxu1 %v1379_v5  ;;  %2127 = vmatprep.subr.mxu0 %v1575_v8  ;;  %v1498_v5 = vld [vmem:[%s6918_s7 + $0x1898] sm:$0xff]  ;;  %v1301_v8 = vld [vmem:[%s6918_s7 + $0x1270] sm:$0xff] }
 0x174   :  { %2049 = vmatpush2.msra.mxu1 %v1378_v9  ;;  %2128 = vmatpush2.msra.mxu0 %v1574_v13  ;;  %v1497_v9 = vld [vmem:[%s6918_s7 + $0x1890] sm:$0xff]  ;;  %v1295_v13 = vld [vmem:[%s6918_s7 + $0x1240] sm:$0xff] }
 0x175   :  { %2050 = vmatprep.subr.mxu1 %v1372_v14  ;;  %2129 = vmatprep.subr.mxu0 %v1568_v15  ;;  %v821_v14 = vld [vmem:[%s6918_s7 + $0x370] sm:$0xff]  ;;  %v1294_v15 = vld [vmem:[%s6918_s7 + $0x1238] sm:$0xff] }
 0x176   :  { %2051 = vmatpush2.msra.mxu1 %v1371_v16  ;;  %2130 = vmatpush2.msra.mxu0 %v1567_v17  ;;  %v820_v16 = vld [vmem:[%s6918_s7 + $0x368] sm:$0xff] }
 0x177   :  { %2052 = vmatprep.subr.mxu1 %v1365_v18  ;;  %2131 = vmatprep.subr.mxu0 %v1561_v19  ;;  %v1288_v17 = vld [vmem:[%s6918_s7 + $0x1208] sm:$0xff]  ;;  %v814_v18 = vld [vmem:[%s6918_s7 + $0x338] sm:$0xff]  ;;  %v1287_v19 = vld [vmem:[%s6918_s7 + $0x1200] sm:$0xff] }
 0x178   :  { %2053 = vmatpush2.msra.mxu1 %v1364_v20  ;;  %2132 = vmatpush2.msra.mxu0 %v1560_v21  ;;  %v813_v20 = vld [vmem:[%s6918_s7 + $0x330] sm:$0xff] }
 0x179   :  { %2054 = vmatprep.subr.mxu1 %v1358_v22  ;;  %2133 = vmatprep.subr.mxu0 %v1554_v23  ;;  %v1281_v21 = vld [vmem:[%s6918_s7 + $0x11d0] sm:$0xff]  ;;  %v807_v22 = vld [vmem:[%s6918_s7 + $0x300] sm:$0xff]  ;;  %v1280_v23 = vld [vmem:[%s6918_s7 + $0x11c8] sm:$0xff] }
 0x17a   :  { %2055 = vmatpush2.msra.mxu1 %v1357_v24  ;;  %2134 = vmatpush2.msra.mxu0 %v1553_v25  ;;  %v806_v24 = vld [vmem:[%s6918_s7 + $0x2f8] sm:$0xff] }
 0x17b   :  { %2056 = vmatprep.subr.mxu1 %v1351_v26  ;;  %2135 = vmatprep.subr.mxu0 %v1547_v27  ;;  %v1274_v25 = vld [vmem:[%s6918_s7 + $0x1198] sm:$0xff]  ;;  %v800_v26 = vld [vmem:[%s6918_s7 + $0x2c8] sm:$0xff]  ;;  %v1273_v27 = vld [vmem:[%s6918_s7 + $0x1190] sm:$0xff] }
 0x17c   :  { %2057 = vmatpush2.msra.mxu1 %v1350_v28  ;;  %2136 = vmatpush2.msra.mxu0 %v1546_v29  ;;  %v799_v28 = vld [vmem:[%s6918_s7 + $0x2c0] sm:$0xff]  ;;  %v793_v29 = vld [vmem:[%s6918_s7 + $0x290] sm:$0xff] }
 0x17d   :  { %2058 = vmatprep.subr.mxu1 %v1344_v52  ;;  %2137 = vmatprep.subr.mxu0 %v1540_v30  ;;  %v1045_v52 = vld [vmem:[%s6918_s7 + $0xa70] sm:$0xff]  ;;  %v792_v30 = vld [vmem:[%s6918_s7 + $0x288] sm:$0xff] }
 0x17e   :  { %2059 = vmatpush2.msra.mxu1 %v1343_v31  ;;  %2138 = vmatpush2.msra.mxu0 %v1539_v32  ;;  %v1044_v31 = vld [vmem:[%s6918_s7 + $0xa68] sm:$0xff]  ;;  %v786_v32 = vld [vmem:[%s6918_s7 + $0x258] sm:$0xff] }
 0x17f   :  { %2060 = vmatprep.subr.mxu1 %v1337_v33  ;;  %2139 = vmatprep.subr.mxu0 %v1533_v34  ;;  %v1038_v33 = vld [vmem:[%s6918_s7 + $0xa38] sm:$0xff]  ;;  %v785_v34 = vld [vmem:[%s6918_s7 + $0x250] sm:$0xff] }
 0x180   :  { %2061 = vmatpush2.msra.mxu1 %v1336_v35  ;;  %2140 = vmatpush2.msra.mxu0 %v1532_v38  ;;  %v1037_v35 = vld [vmem:[%s6918_s7 + $0xa30] sm:$0xff]  ;;  %v779_v38 = vld [vmem:[%s6918_s7 + $0x220] sm:$0xff] }
 0x181   :  { %2062 = vmatprep.subr.mxu1 %v1330_v39  ;;  %2141 = vmatprep.subr.mxu0 %v1526_v40  ;;  %v1031_v39 = vld [vmem:[%s6918_s7 + $0xa00] sm:$0xff]  ;;  %v778_v40 = vld [vmem:[%s6918_s7 + $0x218] sm:$0xff] }
 0x182   :  { %2063 = vmatpush2.msra.mxu1 %v1329_v42  ;;  %2142 = vmatpush2.msra.mxu0 %v1525_v44  ;;  %v1030_v42 = vld [vmem:[%s6918_s7 + $0x9f8] sm:$0xff]  ;;  %v772_v44 = vld [vmem:[%s6918_s7 + $0x1e8] sm:$0xff] }
 0x183   :  { %2064 = vmatprep.subr.mxu1 %v1323_v47  ;;  %2143 = vmatprep.subr.mxu0 %v1519_v48  ;;  %v1024_v47 = vld [vmem:[%s6918_s7 + $0x9c8] sm:$0xff]  ;;  %v771_v48 = vld [vmem:[%s6918_s7 + $0x1e0] sm:$0xff] }
 0x184   :  { %2065 = vmatpush2.msra.mxu1 %v1322_v49  ;;  %2144 = vmatpush2.msra.mxu0 %v1518_v54  ;;  %v1023_v49 = vld [vmem:[%s6918_s7 + $0x9c0] sm:$0xff]  ;;  %v765_v54 = vld [vmem:[%s6918_s7 + $0x1b0] sm:$0xff] }
 0x185   :  { %2066 = vmatprep.subr.mxu1 %v1316_v56  ;;  %2145 = vmatprep.subr.mxu0 %v1512_v58  ;;  %v1017_v56 = vld [vmem:[%s6918_s7 + $0x990] sm:$0xff]  ;;  %v764_v58 = vld [vmem:[%s6918_s7 + $0x1a8] sm:$0xff] }
 0x186   :  { %2067 = vmatpush2.msra.mxu1 %v1315_v59  ;;  %2146 = vmatpush2.msra.mxu0 %v1511_v60  ;;  %v1016_v59 = vld [vmem:[%s6918_s7 + $0x988] sm:$0xff]  ;;  %v758_v60 = vld [vmem:[%s6918_s7 + $0x178] sm:$0xff] }
 0x187   :  { %2068 = vmatprep.subr.mxu1 %v1309_v61  ;;  %2147 = vmatprep.subr.mxu0 %v1505_v62  ;;  %v1010_v61 = vld [vmem:[%s6918_s7 + $0x958] sm:$0xff]  ;;  %v757_v62 = vld [vmem:[%s6918_s7 + $0x170] sm:$0xff] }
 0x188   :  { %2069 = vmatpush2.msra.mxu1 %v1308_v63  ;;  %2148 = vmatpush2.msra.mxu0 %v1504_v3  ;;  %v1009_v63 = vld [vmem:[%s6918_s7 + $0x950] sm:$0xff]  ;;  %v751_v3 = vld [vmem:[%s6918_s7 + $0x140] sm:$0xff] }
 0x189   :  { %2070 = vmatprep.subr.mxu1 %v1302_v6  ;;  %2149 = vmatprep.subr.mxu0 %v1498_v5  ;;  %v1003_v6 = vld [vmem:[%s6918_s7 + $0x920] sm:$0xff]  ;;  %v750_v5 = vld [vmem:[%s6918_s7 + $0x138] sm:$0xff] }
 0x18a   :  { %2071 = vmatpush2.msra.mxu1 %v1301_v8  ;;  %2150 = vmatpush2.msra.mxu0 %v1497_v9  ;;  %v1002_v8 = vld [vmem:[%s6918_s7 + $0x918] sm:$0xff]  ;;  %v744_v9 = vld [vmem:[%s6918_s7 + $0x108] sm:$0xff] }
 0x18b   :  { %2072 = vmatprep.subr.mxu1 %v1295_v13  ;;  %2152 = vmatmul.mubr.f32.vlgmr.msra.gmra.mxu0 %v4322_v43  ;;  %v996_v13 = vld [vmem:[%s6918_s7 + $0x8e8] sm:$0xff] }
 0x18c   :  { %2158 = vmatprep.subr.mxu0 %v821_v14  ;;  %2073 = vmatpush2.msra.mxu1 %v1294_v15  ;;  %v743_v14 = vld [vmem:[%s6918_s7 + $0x100] sm:$0xff] }
 0x18d   :  { %2159 = vmatpush1.msra.mxu0 %v820_v16  ;;  %2222 = vmatprep.mubr.f32.mxu0 %v3928_v1  ;;  %v995_v15 = vld [vmem:[%s6918_s7 + $0x8e0] sm:$0xff]  ;;  %v737_v16 = vld [vmem:[%s6918_s7 + $0xd0] sm:$0xff] }
 0x18e   :  { %2074 = vmatprep.subr.mxu1 %v1288_v17  ;;  %2160 = vmatprep.subr.mxu0 %v814_v18  ;;  %v989_v17 = vld [vmem:[%s6918_s7 + $0x8b0] sm:$0xff]  ;;  %v736_v18 = vld [vmem:[%s6918_s7 + $0xc8] sm:$0xff] }
 0x18f   :  { %2075 = vmatpush2.msra.mxu1 %v1287_v19  ;;  %2161 = vmatpush1.msra.mxu0 %v813_v20  ;;  %v988_v19 = vld [vmem:[%s6918_s7 + $0x8a8] sm:$0xff]  ;;  %v730_v20 = vld [vmem:[%s6918_s7 + $0x98] sm:$0xff] }
 0x190   :  { %2076 = vmatprep.subr.mxu1 %v1281_v21  ;;  %2162 = vmatprep.subr.mxu0 %v807_v22  ;;  %v982_v21 = vld [vmem:[%s6918_s7 + $0x878] sm:$0xff]  ;;  %v729_v22 = vld [vmem:[%s6918_s7 + $0x90] sm:$0xff] }
 0x191   :  { %2077 = vmatpush2.msra.mxu1 %v1280_v23  ;;  %2163 = vmatpush1.msra.mxu0 %v806_v24  ;;  %v981_v23 = vld [vmem:[%s6918_s7 + $0x870] sm:$0xff]  ;;  %v723_v24 = vld [vmem:[%s6918_s7 + $0x60] sm:$0xff] }
 0x192   :  { %2078 = vmatprep.subr.mxu1 %v1274_v25  ;;  %2164 = vmatprep.subr.mxu0 %v800_v26  ;;  %v975_v25 = vld [vmem:[%s6918_s7 + $0x840] sm:$0xff]  ;;  %v722_v26 = vld [vmem:[%s6918_s7 + $0x58] sm:$0xff] }
 0x193   :  { %2079 = vmatpush2.msra.mxu1 %v1273_v27  ;;  %2165 = vmatpush1.msra.mxu0 %v799_v28  ;;  %v974_v27 = vld [vmem:[%s6918_s7 + $0x838] sm:$0xff]  ;;  %v716_v28 = vld [vmem:[%s6918_s7 + $0x28] sm:$0xff] }
 0x194   :  { %2081 = vmatmul.mubr.f32.vlgmr.msra.gmra.mxu1 %v4327_v46  ;;  %2166 = vmatprep.subr.mxu0 %v793_v29  ;;  %v968_v29 = vld [vmem:[%s6918_s7 + $0x808] sm:$0xff] }
 0x195   :  { %2229 = vmatprep.subr.mxu1 %v1045_v52  ;;  %2167 = vmatpush1.msra.mxu0 %v792_v30  ;;  %v715_v52 = vld [vmem:[%s6918_s7 + $0x20] sm:$0xff] }
 0x196   :  { %2230 = vmatpush1.msra.mxu1 %v1044_v31  ;;  %2293 = vmatprep.mubr.f32.mxu1 %v3943_v10  ;;  %v967_v30 = vld [vmem:[%s6918_s7 + $0x800] sm:$0xff]  ;;  %v933_v31 = vld [vmem:[%s6918_s7 + $0x6f0] sm:$0xff] }
 0x197   :  { %2168 = vmatprep.subr.mxu0 %v786_v32  ;;  %2231 = vmatprep.subr.mxu1 %v1038_v33  ;;  %v961_v32 = vld [vmem:[%s6918_s7 + $0x7d0] sm:$0xff]  ;;  %v932_v33 = vld [vmem:[%s6918_s7 + $0x6e8] sm:$0xff] }
 0x198   :  { %2169 = vmatpush1.msra.mxu0 %v785_v34  ;;  %2232 = vmatpush1.msra.mxu1 %v1037_v35  ;;  %v960_v34 = vld [vmem:[%s6918_s7 + $0x7c8] sm:$0xff]  ;;  %v926_v35 = vld [vmem:[%s6918_s7 + $0x6b8] sm:$0xff] }
 0x199   :  { %2170 = vmatprep.subr.mxu0 %v779_v38  ;;  %2233 = vmatprep.subr.mxu1 %v1031_v39  ;;  %v954_v38 = vld [vmem:[%s6918_s7 + $0x798] sm:$0xff]  ;;  %v925_v39 = vld [vmem:[%s6918_s7 + $0x6b0] sm:$0xff] }
 0x19a   :  { %2171 = vmatpush1.msra.mxu0 %v778_v40  ;;  %2234 = vmatpush1.msra.mxu1 %v1030_v42  ;;  %v953_v40 = vld [vmem:[%s6918_s7 + $0x790] sm:$0xff]  ;;  %v919_v42 = vld [vmem:[%s6918_s7 + $0x680] sm:$0xff] }
 0x19b   :  { %2172 = vmatprep.subr.mxu0 %v772_v44  ;;  %2235 = vmatprep.subr.mxu1 %v1024_v47  ;;  %v947_v44 = vld [vmem:[%s6918_s7 + $0x760] sm:$0xff]  ;;  %v918_v47 = vld [vmem:[%s6918_s7 + $0x678] sm:$0xff] }
 0x19c   :  { %2173 = vmatpush1.msra.mxu0 %v771_v48  ;;  %2236 = vmatpush1.msra.mxu1 %v1023_v49  ;;  %v946_v48 = vld [vmem:[%s6918_s7 + $0x758] sm:$0xff]  ;;  %v912_v49 = vld [vmem:[%s6918_s7 + $0x648] sm:$0xff] }
 0x19d   :  { %2174 = vmatprep.subr.mxu0 %v765_v54  ;;  %2237 = vmatprep.subr.mxu1 %v1017_v56  ;;  %v940_v54 = vld [vmem:[%s6918_s7 + $0x728] sm:$0xff]  ;;  %v911_v56 = vld [vmem:[%s6918_s7 + $0x640] sm:$0xff] }
 0x19e   :  { %2175 = vmatpush1.msra.mxu0 %v764_v58  ;;  %2238 = vmatpush1.msra.mxu1 %v1016_v59  ;;  %v939_v58 = vld [vmem:[%s6918_s7 + $0x720] sm:$0xff]  ;;  %v905_v59 = vld [vmem:[%s6918_s7 + $0x610] sm:$0xff] }
 0x19f   :  { %2176 = vmatprep.subr.mxu0 %v758_v60  ;;  %2239 = vmatprep.subr.mxu1 %v1010_v61  ;;  %v1157_v60 = vld [vmem:[%s6918_s7 + $0xdf0] sm:$0xff]  ;;  %v904_v61 = vld [vmem:[%s6918_s7 + $0x608] sm:$0xff] }
 0x1a0   :  { %2177 = vmatpush1.msra.mxu0 %v757_v62  ;;  %2240 = vmatpush1.msra.mxu1 %v1009_v63  ;;  %v1156_v62 = vld [vmem:[%s6918_s7 + $0xde8] sm:$0xff]  ;;  %v898_v63 = vld [vmem:[%s6918_s7 + $0x5d8] sm:$0xff] }
 0x1a1   :  { %2178 = vmatprep.subr.mxu0 %v751_v3  ;;  %2241 = vmatprep.subr.mxu1 %v1003_v6  ;;  %v1150_v3 = vld [vmem:[%s6918_s7 + $0xdb8] sm:$0xff]  ;;  %v897_v6 = vld [vmem:[%s6918_s7 + $0x5d0] sm:$0xff] }
 0x1a2   :  { %2179 = vmatpush1.msra.mxu0 %v750_v5  ;;  %2242 = vmatpush1.msra.mxu1 %v1002_v8  ;;  %v1149_v5 = vld [vmem:[%s6918_s7 + $0xdb0] sm:$0xff]  ;;  %v891_v8 = vld [vmem:[%s6918_s7 + $0x5a0] sm:$0xff] }
 0x1a3   :  { %2180 = vmatprep.subr.mxu0 %v744_v9  ;;  %2243 = vmatprep.subr.mxu1 %v996_v13  ;;  %v1143_v9 = vld [vmem:[%s6918_s7 + $0xd80] sm:$0xff]  ;;  %v890_v13 = vld [vmem:[%s6918_s7 + $0x598] sm:$0xff] }
 0x1a4   :  { %2181 = vmatpush1.msra.mxu0 %v743_v14  ;;  %2244 = vmatpush1.msra.mxu1 %v995_v15  ;;  %v1142_v14 = vld [vmem:[%s6918_s7 + $0xd78] sm:$0xff]  ;;  %v884_v15 = vld [vmem:[%s6918_s7 + $0x568] sm:$0xff] }
 0x1a5   :  { %2182 = vmatprep.subr.mxu0 %v737_v16  ;;  %2245 = vmatprep.subr.mxu1 %v989_v17  ;;  %v1136_v16 = vld [vmem:[%s6918_s7 + $0xd48] sm:$0xff]  ;;  %v883_v17 = vld [vmem:[%s6918_s7 + $0x560] sm:$0xff] }
 0x1a6   :  { %2183 = vmatpush1.msra.mxu0 %v736_v18  ;;  %2246 = vmatpush1.msra.mxu1 %v988_v19  ;;  %v1135_v18 = vld [vmem:[%s6918_s7 + $0xd40] sm:$0xff]  ;;  %v877_v19 = vld [vmem:[%s6918_s7 + $0x530] sm:$0xff] }
 0x1a7   :  { %2184 = vmatprep.subr.mxu0 %v730_v20  ;;  %2247 = vmatprep.subr.mxu1 %v982_v21  ;;  %v1129_v20 = vld [vmem:[%s6918_s7 + $0xd10] sm:$0xff]  ;;  %v876_v21 = vld [vmem:[%s6918_s7 + $0x528] sm:$0xff] }
 0x1a8   :  { %2185 = vmatpush1.msra.mxu0 %v729_v22  ;;  %2248 = vmatpush1.msra.mxu1 %v981_v23  ;;  %v1128_v22 = vld [vmem:[%s6918_s7 + $0xd08] sm:$0xff]  ;;  %v870_v23 = vld [vmem:[%s6918_s7 + $0x4f8] sm:$0xff] }
 0x1a9   :  { %2186 = vmatprep.subr.mxu0 %v723_v24  ;;  %2249 = vmatprep.subr.mxu1 %v975_v25  ;;  %v1122_v24 = vld [vmem:[%s6918_s7 + $0xcd8] sm:$0xff]  ;;  %v869_v25 = vld [vmem:[%s6918_s7 + $0x4f0] sm:$0xff] }
 0x1aa   :  { %2187 = vmatpush1.msra.mxu0 %v722_v26  ;;  %2250 = vmatpush1.msra.mxu1 %v974_v27  ;;  %v1121_v26 = vld [vmem:[%s6918_s7 + $0xcd0] sm:$0xff]  ;;  %v863_v27 = vld [vmem:[%s6918_s7 + $0x4c0] sm:$0xff] }
 0x1ab   :  { %2188 = vmatprep.subr.mxu0 %v716_v28  ;;  %2251 = vmatprep.subr.mxu1 %v968_v29  ;;  %v1115_v28 = vld [vmem:[%s6918_s7 + $0xca0] sm:$0xff]  ;;  %v862_v29 = vld [vmem:[%s6918_s7 + $0x4b8] sm:$0xff] }
 0x1ac   :  { %2189 = vmatpush1.msra.mxu0 %v715_v52  ;;  %2252 = vmatpush1.msra.mxu1 %v967_v30  ;;  %v1114_v52 = vld [vmem:[%s6918_s7 + $0xc98] sm:$0xff]  ;;  %v856_v30 = vld [vmem:[%s6918_s7 + $0x488] sm:$0xff] }
 0x1ad   :  { %2190 = vmatprep.subr.mxu0 %v933_v31  ;;  %2253 = vmatprep.subr.mxu1 %v961_v32  ;;  %v1108_v31 = vld [vmem:[%s6918_s7 + $0xc68] sm:$0xff]  ;;  %v855_v32 = vld [vmem:[%s6918_s7 + $0x480] sm:$0xff] }
 0x1ae   :  { %2191 = vmatpush2.msra.mxu0 %v932_v33  ;;  %2254 = vmatpush1.msra.mxu1 %v960_v34  ;;  %v1107_v33 = vld [vmem:[%s6918_s7 + $0xc60] sm:$0xff]  ;;  %v849_v34 = vld [vmem:[%s6918_s7 + $0x450] sm:$0xff] }
 0x1af   :  { %2192 = vmatprep.subr.mxu0 %v926_v35  ;;  %2255 = vmatprep.subr.mxu1 %v954_v38  ;;  %v1101_v35 = vld [vmem:[%s6918_s7 + $0xc30] sm:$0xff]  ;;  %v848_v38 = vld [vmem:[%s6918_s7 + $0x448] sm:$0xff] }
 0x1b0   :  { %2193 = vmatpush2.msra.mxu0 %v925_v39  ;;  %2256 = vmatpush1.msra.mxu1 %v953_v40  ;;  %v1100_v39 = vld [vmem:[%s6918_s7 + $0xc28] sm:$0xff]  ;;  %v842_v40 = vld [vmem:[%s6918_s7 + $0x418] sm:$0xff] }
 0x1b1   :  { %2194 = vmatprep.subr.mxu0 %v919_v42  ;;  %2257 = vmatprep.subr.mxu1 %v947_v44  ;;  %v1094_v42 = vld [vmem:[%s6918_s7 + $0xbf8] sm:$0xff]  ;;  %v841_v44 = vld [vmem:[%s6918_s7 + $0x410] sm:$0xff] }
 0x1b2   :  { %2195 = vmatpush2.msra.mxu0 %v918_v47  ;;  %2258 = vmatpush1.msra.mxu1 %v946_v48  ;;  %v1093_v47 = vld [vmem:[%s6918_s7 + $0xbf0] sm:$0xff]  ;;  %v835_v48 = vld [vmem:[%s6918_s7 + $0x3e0] sm:$0xff] }
 0x1b3   :  { %2196 = vmatprep.subr.mxu0 %v912_v49  ;;  %2259 = vmatprep.subr.mxu1 %v940_v54  ;;  %v1087_v49 = vld [vmem:[%s6918_s7 + $0xbc0] sm:$0xff]  ;;  %v834_v54 = vld [vmem:[%s6918_s7 + $0x3d8] sm:$0xff] }
 0x1b4   :  { %2197 = vmatpush2.msra.mxu0 %v911_v56  ;;  %2260 = vmatpush1.msra.mxu1 %v939_v58  ;;  %v1086_v56 = vld [vmem:[%s6918_s7 + $0xbb8] sm:$0xff]  ;;  %v828_v58 = vld [vmem:[%s6918_s7 + $0x3a8] sm:$0xff] }
 0x1b5   :  { %2198 = vmatprep.subr.mxu0 %v905_v59  ;;  %2261 = vmatprep.subr.mxu1 %v1157_v60  ;;  %v1080_v59 = vld [vmem:[%s6918_s7 + $0xb88] sm:$0xff]  ;;  %v827_v60 = vld [vmem:[%s6918_s7 + $0x3a0] sm:$0xff] }
 0x1b6   :  { %2199 = vmatpush2.msra.mxu0 %v904_v61  ;;  %2262 = vmatpush2.msra.mxu1 %v1156_v62  ;;  %v1079_v61 = vld [vmem:[%s6918_s7 + $0xb80] sm:$0xff]  ;;  %v1073_v62 = vld [vmem:[%s6918_s7 + $0xb50] sm:$0xff] }
 0x1b7   :  { %2200 = vmatprep.subr.mxu0 %v898_v63  ;;  %2263 = vmatprep.subr.mxu1 %v1150_v3  ;;  %v1269_v63 = vld [vmem:[%s6918_s7 + $0x1170] sm:$0xff]  ;;  %v1072_v3 = vld [vmem:[%s6918_s7 + $0xb48] sm:$0xff] }
 0x1b8   :  { %2201 = vmatpush2.msra.mxu0 %v897_v6  ;;  %2264 = vmatpush2.msra.mxu1 %v1149_v5  ;;  %v1268_v6 = vld [vmem:[%s6918_s7 + $0x1168] sm:$0xff]  ;;  %v1066_v5 = vld [vmem:[%s6918_s7 + $0xb18] sm:$0xff] }
 0x1b9   :  { %2202 = vmatprep.subr.mxu0 %v891_v8  ;;  %2265 = vmatprep.subr.mxu1 %v1143_v9  ;;  %v1262_v8 = vld [vmem:[%s6918_s7 + $0x1138] sm:$0xff]  ;;  %v1065_v9 = vld [vmem:[%s6918_s7 + $0xb10] sm:$0xff] }
 0x1ba   :  { %2203 = vmatpush2.msra.mxu0 %v890_v13  ;;  %2266 = vmatpush2.msra.mxu1 %v1142_v14  ;;  %v1261_v13 = vld [vmem:[%s6918_s7 + $0x1130] sm:$0xff]  ;;  %v1059_v14 = vld [vmem:[%s6918_s7 + $0xae0] sm:$0xff] }
 0x1bb   :  { %2204 = vmatprep.subr.mxu0 %v884_v15  ;;  %2267 = vmatprep.subr.mxu1 %v1136_v16  ;;  %v1255_v15 = vld [vmem:[%s6918_s7 + $0x1100] sm:$0xff]  ;;  %v1058_v16 = vld [vmem:[%s6918_s7 + $0xad8] sm:$0xff] }
 0x1bc   :  { %2205 = vmatpush2.msra.mxu0 %v883_v17  ;;  %2268 = vmatpush2.msra.mxu1 %v1135_v18  ;;  %v1254_v17 = vld [vmem:[%s6918_s7 + $0x10f8] sm:$0xff]  ;;  %v1052_v18 = vld [vmem:[%s6918_s7 + $0xaa8] sm:$0xff] }
 0x1bd   :  { %2206 = vmatprep.subr.mxu0 %v877_v19  ;;  %2269 = vmatprep.subr.mxu1 %v1129_v20  ;;  %v1248_v19 = vld [vmem:[%s6918_s7 + $0x10c8] sm:$0xff]  ;;  %v1051_v20 = vld [vmem:[%s6918_s7 + $0xaa0] sm:$0xff] }
 0x1be   :  { %2207 = vmatpush2.msra.mxu0 %v876_v21  ;;  %2270 = vmatpush2.msra.mxu1 %v1128_v22  ;;  %v1247_v21 = vld [vmem:[%s6918_s7 + $0x10c0] sm:$0xff]  ;;  %v1241_v22 = vld [vmem:[%s6918_s7 + $0x1090] sm:$0xff] }
 0x1bf   :  { %2208 = vmatprep.subr.mxu0 %v870_v23  ;;  %2271 = vmatprep.subr.mxu1 %v1122_v24  ;;  %v1493_v23 = vld [vmem:[%s6918_s7 + $0x1870] sm:$0xff]  ;;  %v1240_v24 = vld [vmem:[%s6918_s7 + $0x1088] sm:$0xff] }
 0x1c0   :  { %2209 = vmatpush2.msra.mxu0 %v869_v25  ;;  %2272 = vmatpush2.msra.mxu1 %v1121_v26  ;;  %v1492_v25 = vld [vmem:[%s6918_s7 + $0x1868] sm:$0xff]  ;;  %v1234_v26 = vld [vmem:[%s6918_s7 + $0x1058] sm:$0xff] }
 0x1c1   :  { %2210 = vmatprep.subr.mxu0 %v863_v27  ;;  %2273 = vmatprep.subr.mxu1 %v1115_v28  ;;  %v1486_v27 = vld [vmem:[%s6918_s7 + $0x1838] sm:$0xff]  ;;  %v1233_v28 = vld [vmem:[%s6918_s7 + $0x1050] sm:$0xff] }
 0x1c2   :  { %2211 = vmatpush2.msra.mxu0 %v862_v29  ;;  %2274 = vmatpush2.msra.mxu1 %v1114_v52  ;;  %v1485_v29 = vld [vmem:[%s6918_s7 + $0x1830] sm:$0xff]  ;;  %v1227_v52 = vld [vmem:[%s6918_s7 + $0x1020] sm:$0xff] }
 0x1c3   :  { %2212 = vmatprep.subr.mxu0 %v856_v30  ;;  %2275 = vmatprep.subr.mxu1 %v1108_v31  ;;  %v1479_v30 = vld [vmem:[%s6918_s7 + $0x1800] sm:$0xff]  ;;  %v1226_v31 = vld [vmem:[%s6918_s7 + $0x1018] sm:$0xff] }
 0x1c4   :  { %2213 = vmatpush2.msra.mxu0 %v855_v32  ;;  %2276 = vmatpush2.msra.mxu1 %v1107_v33  ;;  %v1478_v32 = vld [vmem:[%s6918_s7 + $0x17f8] sm:$0xff]  ;;  %v1220_v33 = vld [vmem:[%s6918_s7 + $0xfe8] sm:$0xff] }
 0x1c5   :  { %2214 = vmatprep.subr.mxu0 %v849_v34  ;;  %2277 = vmatprep.subr.mxu1 %v1101_v35  ;;  %v1472_v34 = vld [vmem:[%s6918_s7 + $0x17c8] sm:$0xff]  ;;  %v1219_v35 = vld [vmem:[%s6918_s7 + $0xfe0] sm:$0xff] }
 0x1c6   :  { %2215 = vmatpush2.msra.mxu0 %v848_v38  ;;  %2278 = vmatpush2.msra.mxu1 %v1100_v39  ;;  %v1471_v38 = vld [vmem:[%s6918_s7 + $0x17c0] sm:$0xff]  ;;  %v1213_v39 = vld [vmem:[%s6918_s7 + $0xfb0] sm:$0xff] }
 0x1c7   :  { %2216 = vmatprep.subr.mxu0 %v842_v40  ;;  %2279 = vmatprep.subr.mxu1 %v1094_v42  ;;  %v1465_v40 = vld [vmem:[%s6918_s7 + $0x1790] sm:$0xff]  ;;  %v1212_v42 = vld [vmem:[%s6918_s7 + $0xfa8] sm:$0xff] }
 0x1c8   :  { %2217 = vmatpush2.msra.mxu0 %v841_v44  ;;  %2280 = vmatpush2.msra.mxu1 %v1093_v47  ;;  %v1464_v44 = vld [vmem:[%s6918_s7 + $0x1788] sm:$0xff]  ;;  %v1206_v47 = vld [vmem:[%s6918_s7 + $0xf78] sm:$0xff] }
 0x1c9   :  { %2218 = vmatprep.subr.mxu0 %v835_v48  ;;  %2281 = vmatprep.subr.mxu1 %v1087_v49  ;;  %v1458_v48 = vld [vmem:[%s6918_s7 + $0x1758] sm:$0xff]  ;;  %v1205_v49 = vld [vmem:[%s6918_s7 + $0xf70] sm:$0xff] }
 0x1ca   :  { %2219 = vmatpush2.msra.mxu0 %v834_v54  ;;  %2282 = vmatpush2.msra.mxu1 %v1086_v56  ;;  %v1457_v54 = vld [vmem:[%s6918_s7 + $0x1750] sm:$0xff]  ;;  %v1199_v56 = vld [vmem:[%s6918_s7 + $0xf40] sm:$0xff] }
 0x1cb   :  { %2220 = vmatprep.subr.mxu0 %v828_v58  ;;  %2283 = vmatprep.subr.mxu1 %v1080_v59  ;;  %v1451_v58 = vld [vmem:[%s6918_s7 + $0x1720] sm:$0xff]  ;;  %v1198_v59 = vld [vmem:[%s6918_s7 + $0xf38] sm:$0xff] }
 0x1cc   :  { %2221 = vmatpush2.msra.mxu0 %v827_v60  ;;  %2284 = vmatpush2.msra.mxu1 %v1079_v61  ;;  %v1450_v60 = vld [vmem:[%s6918_s7 + $0x1718] sm:$0xff]  ;;  %v1192_v61 = vld [vmem:[%s6918_s7 + $0xf08] sm:$0xff] }
 0x1cd   :  { %2223 = vmatmul.mubr.f32.vlgmr.msra.gmra.mxu0 %v3930_v2  ;;  %2285 = vmatprep.subr.mxu1 %v1073_v62  ;;  %v1444_v62 = vld [vmem:[%s6918_s7 + $0x16e8] sm:$0xff] }
 0x1ce   :  { %2300 = vmatprep.subr.mxu0 %v1269_v63  ;;  %2286 = vmatpush2.msra.mxu1 %v1072_v3  ;;  %v1191_v63 = vld [vmem:[%s6918_s7 + $0xf00] sm:$0xff] }
 0x1cf   :  { %2301 = vmatpush1.msra.mxu0 %v1268_v6  ;;  %2364 = vmatprep.mubr.f32.mxu0 %v4317_v41  ;;  %v1443_v3 = vld [vmem:[%s6918_s7 + $0x16e0] sm:$0xff]  ;;  %v1185_v6 = vld [vmem:[%s6918_s7 + $0xed0] sm:$0xff] }
 0x1d0   :  { %2287 = vmatprep.subr.mxu1 %v1066_v5  ;;  %2302 = vmatprep.subr.mxu0 %v1262_v8  ;;  %v1437_v5 = vld [vmem:[%s6918_s7 + $0x16b0] sm:$0xff]  ;;  %v1184_v8 = vld [vmem:[%s6918_s7 + $0xec8] sm:$0xff] }
 0x1d1   :  { %2288 = vmatpush2.msra.mxu1 %v1065_v9  ;;  %2303 = vmatpush1.msra.mxu0 %v1261_v13  ;;  %v1436_v9 = vld [vmem:[%s6918_s7 + $0x16a8] sm:$0xff]  ;;  %v1178_v13 = vld [vmem:[%s6918_s7 + $0xe98] sm:$0xff] }
 0x1d2   :  { %2289 = vmatprep.subr.mxu1 %v1059_v14  ;;  %2304 = vmatprep.subr.mxu0 %v1255_v15  ;;  %v1430_v14 = vld [vmem:[%s6918_s7 + $0x1678] sm:$0xff]  ;;  %v1177_v15 = vld [vmem:[%s6918_s7 + $0xe90] sm:$0xff] }
 0x1d3   :  { %2290 = vmatpush2.msra.mxu1 %v1058_v16  ;;  %2305 = vmatpush1.msra.mxu0 %v1254_v17  ;;  %v1429_v16 = vld [vmem:[%s6918_s7 + $0x1670] sm:$0xff]  ;;  %v1171_v17 = vld [vmem:[%s6918_s7 + $0xe60] sm:$0xff] }
 0x1d4   :  { %2291 = vmatprep.subr.mxu1 %v1052_v18  ;;  %2306 = vmatprep.subr.mxu0 %v1248_v19  ;;  %v1423_v18 = vld [vmem:[%s6918_s7 + $0x1640] sm:$0xff]  ;;  %v1170_v19 = vld [vmem:[%s6918_s7 + $0xe58] sm:$0xff] }
 0x1d5   :  { %2292 = vmatpush2.msra.mxu1 %v1051_v20  ;;  %2307 = vmatpush1.msra.mxu0 %v1247_v21  ;;  %v1422_v20 = vld [vmem:[%s6918_s7 + $0x1638] sm:$0xff]  ;;  %v1164_v21 = vld [vmem:[%s6918_s7 + $0xe28] sm:$0xff] }
 0x1d6   :  { %2294 = vmatmul.mubr.f32.vlgmr.msra.gmra.mxu1 %v3948_v12  ;;  %2308 = vmatprep.subr.mxu0 %v1241_v22  ;;  %v1416_v22 = vld [vmem:[%s6918_s7 + $0x1608] sm:$0xff] }
 0x1d7   :  { %2371 = vmatprep.subr.mxu1 %v1493_v23  ;;  %2309 = vmatpush1.msra.mxu0 %v1240_v24  ;;  %v1163_v23 = vld [vmem:[%s6918_s7 + $0xe20] sm:$0xff] }
 0x1d8   :  { %2372 = vmatpush1.msra.mxu1 %v1492_v25  ;;  %3134 = vmatprep.mubr.msk.f32.mxu1 %vm1586_vm4, %v4306_v37  ;;  %v1415_v24 = vld [vmem:[%s6918_s7 + $0x1600] sm:$0xff]  ;;  %v1381_v25 = vld [vmem:[%s6918_s7 + $0x14f0] sm:$0xff] }
 0x1d9   :  { %2310 = vmatprep.subr.mxu0 %v1234_v26  ;;  %2373 = vmatprep.subr.mxu1 %v1486_v27  ;;  %v1409_v26 = vld [vmem:[%s6918_s7 + $0x15d0] sm:$0xff]  ;;  %v1380_v27 = vld [vmem:[%s6918_s7 + $0x14e8] sm:$0xff] }
 0x1da   :  { %2311 = vmatpush1.msra.mxu0 %v1233_v28  ;;  %2374 = vmatpush1.msra.mxu1 %v1485_v29  ;;  %v1408_v28 = vld [vmem:[%s6918_s7 + $0x15c8] sm:$0xff]  ;;  %v1374_v29 = vld [vmem:[%s6918_s7 + $0x14b8] sm:$0xff] }
 0x1db   :  { %2312 = vmatprep.subr.mxu0 %v1227_v52  ;;  %2375 = vmatprep.subr.mxu1 %v1479_v30  ;;  %v1402_v52 = vld [vmem:[%s6918_s7 + $0x1598] sm:$0xff]  ;;  %v1373_v30 = vld [vmem:[%s6918_s7 + $0x14b0] sm:$0xff] }
 0x1dc   :  { %2313 = vmatpush1.msra.mxu0 %v1226_v31  ;;  %2376 = vmatpush1.msra.mxu1 %v1478_v32  ;;  %v1401_v31 = vld [vmem:[%s6918_s7 + $0x1590] sm:$0xff]  ;;  %v1367_v32 = vld [vmem:[%s6918_s7 + $0x1480] sm:$0xff] }
 0x1dd   :  { %2314 = vmatprep.subr.mxu0 %v1220_v33  ;;  %2377 = vmatprep.subr.mxu1 %v1472_v34  ;;  %v1395_v33 = vld [vmem:[%s6918_s7 + $0x1560] sm:$0xff]  ;;  %v1366_v34 = vld [vmem:[%s6918_s7 + $0x1478] sm:$0xff] }
 0x1de   :  { %2315 = vmatpush1.msra.mxu0 %v1219_v35  ;;  %2378 = vmatpush1.msra.mxu1 %v1471_v38  ;;  %v1394_v35 = vld [vmem:[%s6918_s7 + $0x1558] sm:$0xff]  ;;  %v1360_v38 = vld [vmem:[%s6918_s7 + $0x1448] sm:$0xff] }
 0x1df   :  { %2316 = vmatprep.subr.mxu0 %v1213_v39  ;;  %2379 = vmatprep.subr.mxu1 %v1465_v40  ;;  %v1388_v39 = vld [vmem:[%s6918_s7 + $0x1528] sm:$0xff]  ;;  %v1359_v40 = vld [vmem:[%s6918_s7 + $0x1440] sm:$0xff] }
 0x1e0   :  { %2317 = vmatpush1.msra.mxu0 %v1212_v42  ;;  %2380 = vmatpush1.msra.mxu1 %v1464_v44  ;;  %v1387_v42 = vld [vmem:[%s6918_s7 + $0x1520] sm:$0xff]  ;;  %v1353_v44 = vld [vmem:[%s6918_s7 + $0x1410] sm:$0xff] }
 0x1e1   :  { %2318 = vmatprep.subr.mxu0 %v1206_v47  ;;  %2381 = vmatprep.subr.mxu1 %v1458_v48  ;;  %v1584_v47 = vld [vmem:[%s6918_s7 + $0x1b48] sm:$0xff] }
 0x1e2   :  { %2319 = vmatpush1.msra.mxu0 %v1205_v49  ;;  %2382 = vmatpush1.msra.mxu1 %v1457_v54  ;;  %v1352_v48 = vld [vmem:[%s6918_s7 + $0x1408] sm:$0xff]  ;;  %v1583_v49 = vld [vmem:[%s6918_s7 + $0x1b40] sm:$0xff]  ;;  %v1346_v54 = vld [vmem:[%s6918_s7 + $0x13d8] sm:$0xff] }
 0x1e3   :  { %2320 = vmatprep.subr.mxu0 %v1199_v56  ;;  %2383 = vmatprep.subr.mxu1 %v1451_v58  ;;  %v1577_v56 = vld [vmem:[%s6918_s7 + $0x1b10] sm:$0xff] }
 0x1e4   :  { %2321 = vmatpush1.msra.mxu0 %v1198_v59  ;;  %2384 = vmatpush1.msra.mxu1 %v1450_v60  ;;  %v1345_v58 = vld [vmem:[%s6918_s7 + $0x13d0] sm:$0xff]  ;;  %v1576_v59 = vld [vmem:[%s6918_s7 + $0x1b08] sm:$0xff]  ;;  %v1339_v60 = vld [vmem:[%s6918_s7 + $0x13a0] sm:$0xff] }
 0x1e5   :  { %2322 = vmatprep.subr.mxu0 %v1192_v61  ;;  %2385 = vmatprep.subr.mxu1 %v1444_v62  ;;  %v1570_v61 = vld [vmem:[%s6918_s7 + $0x1ad8] sm:$0xff] }
 0x1e6   :  { %2323 = vmatpush1.msra.mxu0 %v1191_v63  ;;  %2386 = vmatpush1.msra.mxu1 %v1443_v3  ;;  %v1338_v62 = vld [vmem:[%s6918_s7 + $0x1398] sm:$0xff]  ;;  %v1569_v63 = vld [vmem:[%s6918_s7 + $0x1ad0] sm:$0xff]  ;;  %v1332_v3 = vld [vmem:[%s6918_s7 + $0x1368] sm:$0xff] }
 0x1e7   :  { %2324 = vmatprep.subr.mxu0 %v1185_v6  ;;  %2387 = vmatprep.subr.mxu1 %v1437_v5  ;;  %v1563_v6 = vld [vmem:[%s6918_s7 + $0x1aa0] sm:$0xff] }
 0x1e8   :  { %2325 = vmatpush1.msra.mxu0 %v1184_v8  ;;  %2388 = vmatpush1.msra.mxu1 %v1436_v9  ;;  %v1331_v5 = vld [vmem:[%s6918_s7 + $0x1360] sm:$0xff]  ;;  %v1562_v8 = vld [vmem:[%s6918_s7 + $0x1a98] sm:$0xff]  ;;  %v1325_v9 = vld [vmem:[%s6918_s7 + $0x1330] sm:$0xff] }
 0x1e9   :  { %2326 = vmatprep.subr.mxu0 %v1178_v13  ;;  %2389 = vmatprep.subr.mxu1 %v1430_v14  ;;  %v1556_v13 = vld [vmem:[%s6918_s7 + $0x1a68] sm:$0xff] }
 0x1ea   :  { %2327 = vmatpush1.msra.mxu0 %v1177_v15  ;;  %2390 = vmatpush1.msra.mxu1 %v1429_v16  ;;  %v1324_v14 = vld [vmem:[%s6918_s7 + $0x1328] sm:$0xff]  ;;  %v1555_v15 = vld [vmem:[%s6918_s7 + $0x1a60] sm:$0xff]  ;;  %v1318_v16 = vld [vmem:[%s6918_s7 + $0x12f8] sm:$0xff] }
 0x1eb   :  { %2328 = vmatprep.subr.mxu0 %v1171_v17  ;;  %2391 = vmatprep.subr.mxu1 %v1423_v18  ;;  %v1549_v17 = vld [vmem:[%s6918_s7 + $0x1a30] sm:$0xff] }
 0x1ec   :  { %2329 = vmatpush1.msra.mxu0 %v1170_v19  ;;  %2392 = vmatpush1.msra.mxu1 %v1422_v20  ;;  %v1317_v18 = vld [vmem:[%s6918_s7 + $0x12f0] sm:$0xff]  ;;  %v1548_v19 = vld [vmem:[%s6918_s7 + $0x1a28] sm:$0xff]  ;;  %v1311_v20 = vld [vmem:[%s6918_s7 + $0x12c0] sm:$0xff] }
 0x1ed   :  { %2330 = vmatprep.subr.mxu0 %v1164_v21  ;;  %2393 = vmatprep.subr.mxu1 %v1416_v22  ;;  %v1542_v21 = vld [vmem:[%s6918_s7 + $0x19f8] sm:$0xff] }
 0x1ee   :  { %2331 = vmatpush1.msra.mxu0 %v1163_v23  ;;  %2394 = vmatpush1.msra.mxu1 %v1415_v24  ;;  %v1310_v22 = vld [vmem:[%s6918_s7 + $0x12b8] sm:$0xff]  ;;  %v1541_v23 = vld [vmem:[%s6918_s7 + $0x19f0] sm:$0xff]  ;;  %v1304_v24 = vld [vmem:[%s6918_s7 + $0x1288] sm:$0xff] }
 0x1ef   :  { %2332 = vmatprep.subr.mxu0 %v1381_v25  ;;  %2395 = vmatprep.subr.mxu1 %v1409_v26  ;;  %v1535_v25 = vld [vmem:[%s6918_s7 + $0x19c0] sm:$0xff] }
 0x1f0   :  { %2333 = vmatpush2.msra.mxu0 %v1380_v27  ;;  %2396 = vmatpush1.msra.mxu1 %v1408_v28  ;;  %v1303_v26 = vld [vmem:[%s6918_s7 + $0x1280] sm:$0xff]  ;;  %v1534_v27 = vld [vmem:[%s6918_s7 + $0x19b8] sm:$0xff]  ;;  %v1297_v28 = vld [vmem:[%s6918_s7 + $0x1250] sm:$0xff] }
 0x1f1   :  { %2334 = vmatprep.subr.mxu0 %v1374_v29  ;;  %2397 = vmatprep.subr.mxu1 %v1402_v52  ;;  %v1528_v29 = vld [vmem:[%s6918_s7 + $0x1988] sm:$0xff] }
 0x1f2   :  { %2335 = vmatpush2.msra.mxu0 %v1373_v30  ;;  %2398 = vmatpush1.msra.mxu1 %v1401_v31  ;;  %v1296_v52 = vld [vmem:[%s6918_s7 + $0x1248] sm:$0xff]  ;;  %v1527_v30 = vld [vmem:[%s6918_s7 + $0x1980] sm:$0xff]  ;;  %v1290_v31 = vld [vmem:[%s6918_s7 + $0x1218] sm:$0xff] }
 0x1f3   :  { %2336 = vmatprep.subr.mxu0 %v1367_v32  ;;  %2399 = vmatprep.subr.mxu1 %v1395_v33  ;;  %v1521_v32 = vld [vmem:[%s6918_s7 + $0x1950] sm:$0xff] }
 0x1f4   :  { %2337 = vmatpush2.msra.mxu0 %v1366_v34  ;;  %2400 = vmatpush1.msra.mxu1 %v1394_v35  ;;  %v1289_v33 = vld [vmem:[%s6918_s7 + $0x1210] sm:$0xff]  ;;  %v1520_v34 = vld [vmem:[%s6918_s7 + $0x1948] sm:$0xff]  ;;  %v1283_v35 = vld [vmem:[%s6918_s7 + $0x11e0] sm:$0xff] }
 0x1f5   :  { %2338 = vmatprep.subr.mxu0 %v1360_v38  ;;  %2401 = vmatprep.subr.mxu1 %v1388_v39  ;;  %v1514_v38 = vld [vmem:[%s6918_s7 + $0x1918] sm:$0xff] }
 0x1f6   :  { %2339 = vmatpush2.msra.mxu0 %v1359_v40  ;;  %2402 = vmatpush1.msra.mxu1 %v1387_v42  ;;  %v1282_v39 = vld [vmem:[%s6918_s7 + $0x11d8] sm:$0xff]  ;;  %v1513_v40 = vld [vmem:[%s6918_s7 + $0x1910] sm:$0xff]  ;;  %v1276_v42 = vld [vmem:[%s6918_s7 + $0x11a8] sm:$0xff] }
 0x1f7   :  { %2340 = vmatprep.subr.mxu0 %v1353_v44  ;;  %2409 = vmatprep.subr.mxu1 %v1584_v47  ;;  %v1507_v44 = vld [vmem:[%s6918_s7 + $0x18e0] sm:$0xff] }
 0x1f8   :  { %2341 = vmatpush2.msra.mxu0 %v1352_v48  ;;  %2410 = vmatpush2.msra.mxu1 %v1583_v49  ;;  %v1275_v47 = vld [vmem:[%s6918_s7 + $0x11a0] sm:$0xff]  ;;  %v1506_v48 = vld [vmem:[%s6918_s7 + $0x18d8] sm:$0xff]  ;;  %v1500_v49 = vld [vmem:[%s6918_s7 + $0x18a8] sm:$0xff] }
 0x1f9   :  { %2342 = vmatprep.subr.mxu0 %v1346_v54  ;;  %2411 = vmatprep.subr.mxu1 %v1577_v56  ;;  %v1158_v54 = vld [vmem:[%s6918_s7 + $0xdf8] sm:$0xff]  ;;  %v1499_v56 = vld [vmem:[%s6918_s7 + $0x18a0] sm:$0xff] }
 0x1fa   :  { %2343 = vmatpush2.msra.mxu0 %v1345_v58  ;;  %2412 = vmatpush2.msra.mxu1 %v1576_v59  ;;  %v1046_v58 = vld [vmem:[%s6918_s7 + $0xa78] sm:$0xff] }
 0x1fb   :  { %2344 = vmatprep.subr.mxu0 %v1339_v60  ;;  %2413 = vmatprep.subr.mxu1 %v1570_v61  ;;  %v934_v59 = vld [vmem:[%s6918_s7 + $0x6f8] sm:$0xff]  ;;  %v1151_v60 = vld [vmem:[%s6918_s7 + $0xdc0] sm:$0xff] }
 0x1fc   :  { %2345 = vmatpush2.msra.mxu0 %v1338_v62  ;;  %2414 = vmatpush2.msra.mxu1 %v1569_v63  ;;  %v822_v61 = vld [vmem:[%s6918_s7 + $0x378] sm:$0xff]  ;;  %v1039_v62 = vld [vmem:[%s6918_s7 + $0xa40] sm:$0xff] }
 0x1fd   :  { %2346 = vmatprep.subr.mxu0 %v1332_v3  ;;  %2415 = vmatprep.subr.mxu1 %v1563_v6  ;;  %v927_v63 = vld [vmem:[%s6918_s7 + $0x6c0] sm:$0xff]  ;;  %v1144_v3 = vld [vmem:[%s6918_s7 + $0xd88] sm:$0xff] }
 0x1fe   :  { %2347 = vmatpush2.msra.mxu0 %v1331_v5  ;;  %2416 = vmatpush2.msra.mxu1 %v1562_v8  ;;  %v1032_v6 = vld [vmem:[%s6918_s7 + $0xa08] sm:$0xff]  ;;  %v1137_v8 = vld [vmem:[%s6918_s7 + $0xd50] sm:$0xff] }
 0x1ff   :  { %2348 = vmatprep.subr.mxu0 %v1325_v9  ;;  %2417 = vmatprep.subr.mxu1 %v1556_v13  ;;  %v920_v5 = vld [vmem:[%s6918_s7 + $0x688] sm:$0xff]  ;;  %v1025_v13 = vld [vmem:[%s6918_s7 + $0x9d0] sm:$0xff] }
 0x200   :  { %2349 = vmatpush2.msra.mxu0 %v1324_v14  ;;  %2418 = vmatpush2.msra.mxu1 %v1555_v15  ;;  %v808_v9 = vld [vmem:[%s6918_s7 + $0x308] sm:$0xff]  ;;  %v1130_v14 = vld [vmem:[%s6918_s7 + $0xd18] sm:$0xff]  ;;  %v801_v15 = vld [vmem:[%s6918_s7 + $0x2d0] sm:$0xff] }
 0x201   :  { %2350 = vmatprep.subr.mxu0 %v1318_v16  ;;  %2419 = vmatprep.subr.mxu1 %v1549_v17  ;;  %v1018_v16 = vld [vmem:[%s6918_s7 + $0x998] sm:$0xff] }
 0x202   :  { %2351 = vmatpush2.msra.mxu0 %v1317_v18  ;;  %2420 = vmatpush2.msra.mxu1 %v1548_v19  ;;  %v906_v17 = vld [vmem:[%s6918_s7 + $0x618] sm:$0xff]  ;;  %v1123_v18 = vld [vmem:[%s6918_s7 + $0xce0] sm:$0xff] }
 0x203   :  { %2352 = vmatprep.subr.mxu0 %v1311_v20  ;;  %2421 = vmatprep.subr.mxu1 %v1542_v21  ;;  %v794_v19 = vld [vmem:[%s6918_s7 + $0x298] sm:$0xff]  ;;  %v1011_v20 = vld [vmem:[%s6918_s7 + $0x960] sm:$0xff] }
 0x204   :  { %2353 = vmatpush2.msra.mxu0 %v1310_v22  ;;  %2422 = vmatpush2.msra.mxu1 %v1541_v23  ;;  %v899_v21 = vld [vmem:[%s6918_s7 + $0x5e0] sm:$0xff]  ;;  %v1116_v22 = vld [vmem:[%s6918_s7 + $0xca8] sm:$0xff] }
 0x205   :  { %2354 = vmatprep.subr.mxu0 %v1304_v24  ;;  %2423 = vmatprep.subr.mxu1 %v1535_v25  ;;  %v787_v23 = vld [vmem:[%s6918_s7 + $0x260] sm:$0xff]  ;;  %v1004_v24 = vld [vmem:[%s6918_s7 + $0x928] sm:$0xff] }
 0x206   :  { %2355 = vmatpush2.msra.mxu0 %v1303_v26  ;;  %2424 = vmatpush2.msra.mxu1 %v1534_v27  ;;  %v892_v25 = vld [vmem:[%s6918_s7 + $0x5a8] sm:$0xff]  ;;  %v1109_v26 = vld [vmem:[%s6918_s7 + $0xc70] sm:$0xff] }
 0x207   :  { %2356 = vmatprep.subr.mxu0 %v1297_v28  ;;  %2425 = vmatprep.subr.mxu1 %v1528_v29  ;;  %v780_v27 = vld [vmem:[%s6918_s7 + $0x228] sm:$0xff]  ;;  %v997_v28 = vld [vmem:[%s6918_s7 + $0x8f0] sm:$0xff] }
 0x208   :  { %2357 = vmatpush2.msra.mxu0 %v1296_v52  ;;  %2426 = vmatpush2.msra.mxu1 %v1527_v30  ;;  %v885_v29 = vld [vmem:[%s6918_s7 + $0x570] sm:$0xff]  ;;  %v1102_v52 = vld [vmem:[%s6918_s7 + $0xc38] sm:$0xff] }
 0x209   :  { %2358 = vmatprep.subr.mxu0 %v1290_v31  ;;  %2427 = vmatprep.subr.mxu1 %v1521_v32  ;;  %v773_v30 = vld [vmem:[%s6918_s7 + $0x1f0] sm:$0xff]  ;;  %v990_v31 = vld [vmem:[%s6918_s7 + $0x8b8] sm:$0xff] }
 0x20a   :  { %2359 = vmatpush2.msra.mxu0 %v1289_v33  ;;  %2428 = vmatpush2.msra.mxu1 %v1520_v34  ;;  %v878_v32 = vld [vmem:[%s6918_s7 + $0x538] sm:$0xff]  ;;  %v1095_v33 = vld [vmem:[%s6918_s7 + $0xc00] sm:$0xff] }
 0x20b   :  { %2360 = vmatprep.subr.mxu0 %v1283_v35  ;;  %2429 = vmatprep.subr.mxu1 %v1514_v38  ;;  %v766_v34 = vld [vmem:[%s6918_s7 + $0x1b8] sm:$0xff]  ;;  %v983_v35 = vld [vmem:[%s6918_s7 + $0x880] sm:$0xff] }
 0x20c   :  { %2361 = vmatpush2.msra.mxu0 %v1282_v39  ;;  %2430 = vmatpush2.msra.mxu1 %v1513_v40  ;;  %v871_v38 = vld [vmem:[%s6918_s7 + $0x500] sm:$0xff]  ;;  %v1088_v39 = vld [vmem:[%s6918_s7 + $0xbc8] sm:$0xff] }
 0x20d   :  { %2362 = vmatprep.subr.mxu0 %v1276_v42  ;;  %2431 = vmatprep.subr.mxu1 %v1507_v44  ;;  %v759_v40 = vld [vmem:[%s6918_s7 + $0x180] sm:$0xff]  ;;  %v976_v42 = vld [vmem:[%s6918_s7 + $0x848] sm:$0xff] }
 0x20e   :  { %2363 = vmatpush2.msra.mxu0 %v1275_v47  ;;  %2432 = vmatpush2.msra.mxu1 %v1506_v48  ;;  %v864_v44 = vld [vmem:[%s6918_s7 + $0x4c8] sm:$0xff]  ;;  %v1081_v47 = vld [vmem:[%s6918_s7 + $0xb90] sm:$0xff] }
 0x20f   :  { %2365 = vmatmul.mubr.f32.vlgmr.msra.gmra.mxu0 %v4327_v46  ;;  %2433 = vmatprep.subr.mxu1 %v1500_v49  ;;  %v752_v48 = vld [vmem:[%s6918_s7 + $0x148] sm:$0xff]  ;;  %v969_v49 = vld [vmem:[%s6918_s7 + $0x810] sm:$0xff] }
 0x210   :  { %3182 = vmatprep.subr.mxu0 %v1158_v54  ;;  %2434 = vmatpush2.msra.mxu1 %v1499_v56  ;;  %v857_v54 = vld [vmem:[%s6918_s7 + $0x490] sm:$0xff]  ;;  %v1074_v56 = vld [vmem:[%s6918_s7 + $0xb58] sm:$0xff] }
 0x211   :  { %3183 = vmatpush3.msra.mxu0 %v1046_v58  ;;  %2576 = vmatprep.mubr.f32.mxu0 %v3943_v10  ;;  %v815_v10 = vld [vmem:[%s6918_s7 + $0x340] sm:$0xff]  ;;  %v745_v58 = vld [vmem:[%s6918_s7 + $0x110] sm:$0xff] }
 0x212   :  { %2436 = vmatmul.mubr.f32.vlgmr.msra.gmra.mxu1 %v4322_v43  ;;  %3147 = vmatprep.subr.mxu1 %v934_v59  ;;  %v962_v59 = vld [vmem:[%s6918_s7 + $0x7d8] sm:$0xff] }
 0x213   :  { %3184 = vmatprep.subr.mxu0 %v1151_v60  ;;  %3148 = vmatpush3.msra.mxu1 %v822_v61  ;;  %v850_v60 = vld [vmem:[%s6918_s7 + $0x458] sm:$0xff]  ;;  %v1067_v61 = vld [vmem:[%s6918_s7 + $0xb20] sm:$0xff] }
 0x214   :  { %2506 = vmatprep.mubr.f32.mxu1 %v3928_v1  ;;  %3185 = vmatpush3.msra.mxu0 %v1039_v62  ;;  %v913_v1 = vld [vmem:[%s6918_s7 + $0x650] sm:$0xff]  ;;  %v738_v62 = vld [vmem:[%s6918_s7 + $0xd8] sm:$0xff] }
 0x215   :  { %3149 = vmatprep.subr.mxu1 %v927_v63  ;;  %3186 = vmatprep.subr.mxu0 %v1144_v3  ;;  %v955_v63 = vld [vmem:[%s6918_s7 + $0x7a0] sm:$0xff] }
 0x216   :  { %3150 = vmatpush3.msra.mxu1 %v815_v10  ;;  %3187 = vmatpush3.msra.mxu0 %v1032_v6  ;;  %v843_v3 = vld [vmem:[%s6918_s7 + $0x420] sm:$0xff]  ;;  %v1060_v10 = vld [vmem:[%s6918_s7 + $0xae8] sm:$0xff] }
 0x217   :  { %3151 = vmatprep.subr.mxu1 %v920_v5  ;;  %3188 = vmatprep.subr.mxu0 %v1137_v8  ;;  %v731_v6 = vld [vmem:[%s6918_s7 + $0xa0] sm:$0xff]  ;;  %v948_v5 = vld [vmem:[%s6918_s7 + $0x768] sm:$0xff] }
 0x218   :  { %3152 = vmatpush3.msra.mxu1 %v808_v9  ;;  %3189 = vmatpush3.msra.mxu0 %v1025_v13  ;;  %v836_v8 = vld [vmem:[%s6918_s7 + $0x3e8] sm:$0xff]  ;;  %v1053_v9 = vld [vmem:[%s6918_s7 + $0xab0] sm:$0xff] }
 0x219   :  { %3153 = vmatprep.subr.mxu1 %v913_v1  ;;  %3190 = vmatprep.subr.mxu0 %v1130_v14  ;;  %v724_v13 = vld [vmem:[%s6918_s7 + $0x68] sm:$0xff]  ;;  %v941_v1 = vld [vmem:[%s6918_s7 + $0x730] sm:$0xff] }
 0x21a   :  { %3154 = vmatpush3.msra.mxu1 %v801_v15  ;;  %3191 = vmatpush3.msra.mxu0 %v1018_v16  ;;  %v829_v14 = vld [vmem:[%s6918_s7 + $0x3b0] sm:$0xff]  ;;  %v1494_v16 = vld [vmem:[%s6918_s7 + $0x1878] sm:$0xff] }
 0x21b   :  { %3155 = vmatprep.subr.mxu1 %v906_v17  ;;  %3192 = vmatprep.subr.mxu0 %v1123_v18  ;;  %v717_v15 = vld [vmem:[%s6918_s7 + $0x30] sm:$0xff]  ;;  %v1382_v17 = vld [vmem:[%s6918_s7 + $0x14f8] sm:$0xff] }
 0x21c   :  { %3156 = vmatpush3.msra.mxu1 %v794_v19  ;;  %3193 = vmatpush3.msra.mxu0 %v1011_v20  ;;  %v1270_v18 = vld [vmem:[%s6918_s7 + $0x1178] sm:$0xff]  ;;  %v1487_v19 = vld [vmem:[%s6918_s7 + $0x1840] sm:$0xff] }
 0x21d   :  { %3157 = vmatprep.subr.mxu1 %v899_v21  ;;  %3194 = vmatprep.subr.mxu0 %v1116_v22  ;;  %v1263_v20 = vld [vmem:[%s6918_s7 + $0x1140] sm:$0xff]  ;;  %v1256_v21 = vld [vmem:[%s6918_s7 + $0x1108] sm:$0xff]  ;;  %v1473_v22 = vld [vmem:[%s6918_s7 + $0x17d0] sm:$0xff] }
 0x21e   :  { %3158 = vmatpush3.msra.mxu1 %v787_v23  ;;  %3195 = vmatpush3.msra.mxu0 %v1004_v24  ;;  %v1249_v23 = vld [vmem:[%s6918_s7 + $0x10d0] sm:$0xff]  ;;  %v1466_v24 = vld [vmem:[%s6918_s7 + $0x1798] sm:$0xff] }
 0x21f   :  { %3159 = vmatprep.subr.mxu1 %v892_v25  ;;  %3196 = vmatprep.subr.mxu0 %v1109_v26  ;;  %v1354_v25 = vld [vmem:[%s6918_s7 + $0x1418] sm:$0xff] }
 0x220   :  { %3160 = vmatpush3.msra.mxu1 %v780_v27  ;;  %3197 = vmatpush3.msra.mxu0 %v997_v28  ;;  %v1242_v26 = vld [vmem:[%s6918_s7 + $0x1098] sm:$0xff]  ;;  %v1459_v27 = vld [vmem:[%s6918_s7 + $0x1760] sm:$0xff] }
 0x221   :  { %3161 = vmatprep.subr.mxu1 %v885_v29  ;;  %3198 = vmatprep.subr.mxu0 %v1102_v52  ;;  %v1347_v28 = vld [vmem:[%s6918_s7 + $0x13e0] sm:$0xff]  ;;  %v1452_v52 = vld [vmem:[%s6918_s7 + $0x1728] sm:$0xff] }
 0x222   :  { %3162 = vmatpush3.msra.mxu1 %v773_v30  ;;  %3199 = vmatpush3.msra.mxu0 %v990_v31  ;;  %v1235_v29 = vld [vmem:[%s6918_s7 + $0x1060] sm:$0xff]  ;;  %v1340_v30 = vld [vmem:[%s6918_s7 + $0x13a8] sm:$0xff] }
 0x223   :  { %3163 = vmatprep.subr.mxu1 %v878_v32  ;;  %3200 = vmatprep.subr.mxu0 %v1095_v33  ;;  %v1228_v31 = vld [vmem:[%s6918_s7 + $0x1028] sm:$0xff]  ;;  %v1445_v32 = vld [vmem:[%s6918_s7 + $0x16f0] sm:$0xff] }
 0x224   :  { %3164 = vmatpush3.msra.mxu1 %v766_v34  ;;  %3201 = vmatpush3.msra.mxu0 %v983_v35  ;;  %v1333_v33 = vld [vmem:[%s6918_s7 + $0x1370] sm:$0xff]  ;;  %v1438_v35 = vld [vmem:[%s6918_s7 + $0x16b8] sm:$0xff] }
 0x225   :  { %3165 = vmatprep.subr.mxu1 %v871_v38  ;;  %3202 = vmatprep.subr.mxu0 %v1088_v39  ;;  %v1221_v34 = vld [vmem:[%s6918_s7 + $0xff0] sm:$0xff]  ;;  %v6131_v38 = vpop.f32.mrf.mxu1  ;;  %v6133_v39 = vpop.f32.mrf.mxu0 }
 0x226   :  { %3166 = vmatpush3.msra.mxu1 %v759_v40  ;;  %3203 = vmatpush3.msra.mxu0 %v976_v42  ;;  %v1326_v40 = vld [vmem:[%s6918_s7 + $0x1338] sm:$0xff] }
 0x227   :  { %3167 = vmatprep.subr.mxu1 %v864_v44  ;;  %3204 = vmatprep.subr.mxu0 %v1081_v47  ;;  %v1214_v42 = vld [vmem:[%s6918_s7 + $0xfb8] sm:$0xff]  ;;  %v1431_v44 = vld [vmem:[%s6918_s7 + $0x1680] sm:$0xff] }
 0x228   :  { %3168 = vmatpush3.msra.mxu1 %v752_v48  ;;  %3205 = vmatpush3.msra.mxu0 %v969_v49  ;;  %v1319_v47 = vld [vmem:[%s6918_s7 + $0x1300] sm:$0xff]  ;;  %v1424_v49 = vld [vmem:[%s6918_s7 + $0x1648] sm:$0xff] }
 0x229   :  { %3169 = vmatprep.subr.mxu1 %v857_v54  ;;  %3206 = vmatprep.subr.mxu0 %v1074_v56  ;;  %v1207_v48 = vld [vmem:[%s6918_s7 + $0xf80] sm:$0xff]  ;;  %v6155_v54 = vpop.f32.mrf.mxu1  ;;  %v6157_v56 = vpop.f32.mrf.mxu0 }
 0x22a   :  { %3170 = vmatpush3.msra.mxu1 %v745_v58  ;;  %3207 = vmatpush3.msra.mxu0 %v962_v59  ;;  %v1312_v58 = vld [vmem:[%s6918_s7 + $0x12c8] sm:$0xff] }
 0x22b   :  { %3171 = vmatprep.subr.mxu1 %v850_v60  ;;  %3208 = vmatprep.subr.mxu0 %v1067_v61  ;;  %v1200_v59 = vld [vmem:[%s6918_s7 + $0xf48] sm:$0xff]  ;;  %v1417_v60 = vld [vmem:[%s6918_s7 + $0x1610] sm:$0xff]  ;;  %v6169_v61 = vpop.f32.mrf.mxu0 }
 0x22c   :  { %3172 = vmatpush3.msra.mxu1 %v738_v62  ;;  %3209 = vmatpush3.msra.mxu0 %v955_v63  ;;  %v6171_v62 = vpop.f32.mrf.mxu1  ;;  %v1305_v63 = vld [vmem:[%s6918_s7 + $0x1290] sm:$0xff] }
 0x22d   :  { %3173 = vmatprep.subr.mxu1 %v843_v3  ;;  %3210 = vmatprep.subr.mxu0 %v1060_v10  ;;  %v1193_v3 = vld [vmem:[%s6918_s7 + $0xf10] sm:$0xff]  ;;  %v1410_v10 = vld [vmem:[%s6918_s7 + $0x15d8] sm:$0xff] }
 0x22e   :  { %3174 = vmatpush3.msra.mxu1 %v731_v6  ;;  %3211 = vmatpush3.msra.mxu0 %v948_v5  ;;  %v6186_v6 = vld [vmem:[%s6914_s3] sm:$0x3]  ;;  %v1298_v5 = vld [vmem:[%s6918_s7 + $0x1258] sm:$0xff] }
 0x22f   :  { %3175 = vmatprep.subr.mxu1 %v836_v8  ;;  %3212 = vmatprep.subr.mxu0 %v1053_v9  ;;  %v1186_v8 = vld [vmem:[%s6918_s7 + $0xed8] sm:$0xff]  ;;  %v1403_v9 = vld [vmem:[%s6918_s7 + $0x15a0] sm:$0xff] }
 0x230   :  { %3176 = vmatpush3.msra.mxu1 %v724_v13  ;;  %3213 = vmatpush3.msra.mxu0 %v941_v1  ;;  %v6198_v13 = vpop.f32.mrf.mxu0  ;;  %v6200_v1 = vpop.f32.mrf.mxu1 }
 0x231   :  { %3177 = vmatprep.subr.mxu1 %v829_v14  ;;  %2577 = vmatmul.mubr.f32.vlgmr.msra.gmra.mxu0 %v3948_v12  ;;  %v1375_v12 = vld [vmem:[%s6918_s7 + $0x14c0] sm:$0xff] }
 0x232   :  { %2652 = vmatprep.subr.mxu0 %v3304_v4  ;;  %3178 = vmatpush3.msra.mxu1 %v717_v15  ;;  %v1291_v14 = vld [vmem:[%s6918_s7 + $0x1220] sm:$0xff]  ;;  %v69_v15 = vrot.slane %v6186_v6, %v3914_v53 }
 0x233   :  { %2653 = vmatpush1.msra.mxu0 %v1494_v16  ;;  %3135 = vmatprep.mubr.msk.f32.mxu0 %vm1586_vm4, %v4306_v37  ;;  %v1480_v37 = vld [vmem:[%s6918_s7 + $0x1808] sm:$0xff]  ;;  %v1179_v16 = vld [vmem:[%s6918_s7 + $0xea0] sm:$0xff] }
 0x234   :  { %2507 = vmatmul.mubr.f32.vlgmr.msra.gmra.mxu1 %v3930_v2  ;;  %3217 = vmatprep.subr.mxu1 %v1382_v17  ;;  %v1368_v2 = vld [vmem:[%s6918_s7 + $0x1488] sm:$0xff] }
 0x235   :  { %2654 = vmatprep.subr.mxu0 %v3304_v4  ;;  %3218 = vmatpush3.msra.mxu1 %v1270_v18  ;;  %v1396_v17 = vld [vmem:[%s6918_s7 + $0x1568] sm:$0xff]  ;;  %v2011_v18 = vpop.f32.mrf.mxu0 }
 0x236   :  { %2646 = vmatprep.mubr.f32.mxu1 %v4317_v41  ;;  %2655 = vmatpush1.msra.mxu0 %v1487_v19  ;;  %v1361_v41 = vld [vmem:[%s6918_s7 + $0x1450] sm:$0xff]  ;;  %v1940_v19 = vpop.f32.mrf.mxu1 }
 0x237   :  { %3219 = vmatprep.subr.mxu1 %v1375_v12  ;;  %2656 = vmatprep.subr.mxu0 %v3304_v4  ;;  %v1284_v12 = vld [vmem:[%s6918_s7 + $0x11e8] sm:$0xff] }
 0x238   :  { %3220 = vmatpush3.msra.mxu1 %v1263_v20  ;;  %2657 = vmatpush1.msra.mxu0 %v1480_v37  ;;  %v1172_v20 = vld [vmem:[%s6918_s7 + $0xe68] sm:$0xff]  ;;  %v1389_v37 = vld [vmem:[%s6918_s7 + $0x1530] sm:$0xff] }
 0x239   :  { %3221 = vmatprep.subr.mxu1 %v1368_v2  ;;  %2658 = vmatprep.subr.mxu0 %v3304_v4  ;;  %v1277_v2 = vld [vmem:[%s6918_s7 + $0x11b0] sm:$0xff] }
 0x23a   :  { %3222 = vmatpush3.msra.mxu1 %v1256_v21  ;;  %2659 = vmatpush1.msra.mxu0 %v1473_v22  ;;  %v152_v21 = vadd.f32 %v4206_v45, %v69_v15  ;;  %v1165_v22 = vld [vmem:[%s6918_s7 + $0xe30] sm:$0xff]  ;;  %v1536_v15 = vld [vmem:[%s6918_s7 + $0x19c8] sm:$0xff] }
 0x23b   :  { %3223 = vmatprep.subr.mxu1 %v1361_v41  ;;  %2660 = vmatprep.subr.mxu0 %v3304_v4  ;;  %v1585_v41 = vld [vmem:[%s6918_s7 + $0x1b50] sm:$0xff] }
 0x23c   :  { %3224 = vmatpush3.msra.mxu1 %v1249_v23  ;;  %2661 = vmatpush1.msra.mxu0 %v1466_v24  ;;  %v2013_v23 = vpop.f32.mrf.mxu0  ;;  %v1942_v24 = vpop.f32.mrf.mxu1  ;;  %v642_v45 = vld [vmem:[%s6917_s6 + $0x350] sm:$0xff] }
 0x23d   :  { %3225 = vmatprep.subr.mxu1 %v1354_v25  ;;  %2662 = vmatprep.subr.mxu0 %v3304_v4  ;;  %v2012_v25 = vadd.f32 %v2011_v18, %v1940_v19  ;;  %v1529_v18 = vld [vmem:[%s6918_s7 + $0x1990] sm:$0xff]  ;;  %v592_v19 = vld [vmem:[%s6917_s6 + $0x1c0] sm:$0xff] }
 0x23e   :  { %3226 = vmatpush3.msra.mxu1 %v1242_v26  ;;  %2663 = vmatpush1.msra.mxu0 %v1459_v27  ;;  %v1578_v26 = vld [vmem:[%s6918_s7 + $0x1b18] sm:$0xff] }
 0x23f   :  { %3227 = vmatprep.subr.mxu1 %v1347_v28  ;;  %2664 = vmatprep.subr.mxu0 %v3304_v4  ;;  %v641_v28 = vld [vmem:[%s6917_s6 + $0x348] sm:$0xff] }
 0x240   :  { %3228 = vmatpush3.msra.mxu1 %v1235_v29  ;;  %2665 = vmatpush1.msra.mxu0 %v1452_v52  ;;  %v6245_v52 = vmax.f32 %v152_v21, 0.0  ;;  %v1515_v21 = vld [vmem:[%s6918_s7 + $0x1920] sm:$0xff] }
 0x241   :  { %3229 = vmatprep.subr.mxu1 %v1340_v30  ;;  %2666 = vmatprep.subr.mxu0 %v3304_v4  ;;  %v2014_v30 = vadd.f32 %v2013_v23, %v1942_v24  ;;  %v1508_v23 = vld [vmem:[%s6918_s7 + $0x18e8] sm:$0xff]  ;;  %v571_v24 = vld [vmem:[%s6917_s6 + $0x118] sm:$0xff] }
 0x242   :  { %3230 = vmatpush3.msra.mxu1 %v1228_v31  ;;  %2667 = vmatpush1.msra.mxu0 %v1445_v32  ;;  %v635_v31 = vld [vmem:[%s6917_s6 + $0x318] sm:$0xff] }
 0x243   :  { %3231 = vmatprep.subr.mxu1 %v1333_v33  ;;  %2668 = vmatprep.subr.mxu0 %v3304_v4  ;;  %v1571_v33 = vld [vmem:[%s6918_s7 + $0x1ae0] sm:$0xff] }
 0x244   :  { %3232 = vmatpush3.msra.mxu1 %v1221_v34  ;;  %2669 = vmatpush1.msra.mxu0 %v1438_v35  ;;  %v634_v34 = vld [vmem:[%s6917_s6 + $0x310] sm:$0xff] }
 0x245   :  { %3233 = vmatprep.subr.mxu1 %v1326_v40  ;;  %2670 = vmatprep.subr.mxu0 %v3304_v4 }
 0x246   :  { %3234 = vmatpush3.msra.mxu1 %v1214_v42  ;;  %2671 = vmatpush1.msra.mxu0 %v1431_v44 }
 0x247   :  { %3235 = vmatprep.subr.mxu1 %v1319_v47  ;;  %2672 = vmatprep.subr.mxu0 %v3304_v4  ;;  %v1564_v47 = vld [vmem:[%s6918_s7 + $0x1aa8] sm:$0xff] }
 0x248   :  { %3236 = vmatpush3.msra.mxu1 %v1207_v48  ;;  %2673 = vmatpush1.msra.mxu0 %v1424_v49  ;;  %v627_v48 = vld [vmem:[%s6917_s6 + $0x2d8] sm:$0xff]  ;;  %v621_v49 = vld [vmem:[%s6917_s6 + $0x2a8] sm:$0xff] }
 0x249   :  { %3237 = vmatprep.subr.mxu1 %v1312_v58  ;;  %2674 = vmatprep.subr.mxu0 %v3304_v4 }
 0x24a   :  { %3238 = vmatpush3.msra.mxu1 %v1200_v59  ;;  %2675 = vmatpush1.msra.mxu0 %v1417_v60  ;;  %v1557_v59 = vld [vmem:[%s6918_s7 + $0x1a70] sm:$0xff]  ;;  %v620_v60 = vld [vmem:[%s6917_s6 + $0x2a0] sm:$0xff] }
 0x24b   :  { %3239 = vmatprep.subr.mxu1 %v1305_v63  ;;  %2676 = vmatprep.subr.mxu0 %v3304_v4  ;;  %v2153_v27 = vpop.f32.mrf.mxu0  ;;  %v614_v63 = vld [vmem:[%s6917_s6 + $0x270] sm:$0xff] }
 0x24c   :  { %3240 = vmatpush3.msra.mxu1 %v1193_v3  ;;  %2677 = vmatpush1.msra.mxu0 %v1410_v10  ;;  %v1550_v3 = vld [vmem:[%s6918_s7 + $0x1a38] sm:$0xff]  ;;  %v613_v10 = vld [vmem:[%s6917_s6 + $0x268] sm:$0xff] }
 0x24d   :  { %3241 = vmatprep.subr.mxu1 %v1298_v5  ;;  %2678 = vmatprep.subr.mxu0 %v3304_v4  ;;  %v2155_v44 = vpop.f32.mrf.mxu0  ;;  %v607_v5 = vld [vmem:[%s6917_s6 + $0x238] sm:$0xff] }
 0x24e   :  { %3242 = vmatpush3.msra.mxu1 %v1186_v8  ;;  %2679 = vmatpush1.msra.mxu0 %v1403_v9  ;;  %v1543_v8 = vld [vmem:[%s6918_s7 + $0x1a00] sm:$0xff]  ;;  %v606_v9 = vld [vmem:[%s6917_s6 + $0x230] sm:$0xff] }
 0x24f   :  { %3243 = vmatprep.subr.mxu1 %v1291_v14  ;;  %2680 = vmatprep.subr.mxu0 %v3304_v4  ;;  %v600_v14 = vld [vmem:[%s6917_s6 + $0x200] sm:$0xff] }
 0x250   :  { %3244 = vmatpush3.msra.mxu1 %v1179_v16  ;;  %2681 = vmatpush1.msra.mxu0 %v1396_v17  ;;  %v599_v16 = vld [vmem:[%s6917_s6 + $0x1f8] sm:$0xff]  ;;  %v593_v17 = vld [vmem:[%s6917_s6 + $0x1c8] sm:$0xff] }
 0x251   :  { %3245 = vmatprep.subr.mxu1 %v1284_v12  ;;  %2682 = vmatprep.subr.mxu0 %v3304_v4  ;;  %v586_v12 = vld [vmem:[%s6917_s6 + $0x190] sm:$0xff] }
 0x252   :  { %3246 = vmatpush3.msra.mxu1 %v1172_v20  ;;  %2683 = vmatpush1.msra.mxu0 %v1389_v37  ;;  %v1522_v20 = vld [vmem:[%s6918_s7 + $0x1958] sm:$0xff]  ;;  %v585_v37 = vld [vmem:[%s6917_s6 + $0x188] sm:$0xff] }
 0x253   :  { %3247 = vmatprep.subr.mxu1 %v1277_v2  ;;  %2690 = vmatprep.subr.mxu0 %v3304_v4  ;;  %v579_v2 = vld [vmem:[%s6917_s6 + $0x158] sm:$0xff] }
 0x254   :  { %3248 = vmatpush3.msra.mxu1 %v1165_v22  ;;  %2691 = vmatpush2.msra.mxu0 %v1585_v41  ;;  %v2082_v29 = vpop.f32.mrf.mxu1  ;;  %v578_v22 = vld [vmem:[%s6917_s6 + $0x150] sm:$0xff]  ;;  %v572_v41 = vld [vmem:[%s6917_s6 + $0x120] sm:$0xff] }
 0x255   :  { %2647 = vmatmul.mubr.f32.vlgmr.msra.gmra.mxu1 %v4327_v46  ;;  %2692 = vmatprep.subr.mxu0 %v3304_v4  ;;  %v2083_v32 = vadd.f32 %v2082_v29, %v2012_v25  ;;  %v628_v46 = vld [vmem:[%s6917_s6 + $0x2e0] sm:$0xff]  ;;  %v565_v25 = vld [vmem:[%s6917_s6 + $0xe8] sm:$0xff] }
 0x256   :  { %2726 = vmatprep.subr.mxu1 %v642_v45  ;;  %2693 = vmatpush2.msra.mxu0 %v1578_v26  ;;  %v2084_v35 = vpop.f32.mrf.mxu1  ;;  %v1501_v45 = vld [vmem:[%s6918_s7 + $0x18b0] sm:$0xff]  ;;  %v564_v26 = vld [vmem:[%s6917_s6 + $0xe0] sm:$0xff]  ;;  %v557_v29 = vld [vmem:[%s6917_s6 + $0xa8] sm:$0xff] }
 0x257   :  { %2727 = vmatpush1.msra.mxu1 %v641_v28  ;;  %3136 = vmatprep.mubr.msk.f32.mxu1 %vm2722_vm5, %v6245_v52  ;;  %v2085_v40 = vadd.f32 %v2084_v35, %v2014_v30  ;;  %v6263_v42 = vadd.f32 %v2153_v27, %v2083_v32  ;;  %v558_v27 = vld [vmem:[%s6917_s6 + $0xb0] sm:$0xff]  ;;  %v644_v28 = vld [vmem:[%s6917_s6 + $0x360] sm:$0xff]  ;;  %v643_v30 = vld [vmem:[%s6917_s6 + $0x358] sm:$0xff] }
 0x258   :  { %2694 = vmatprep.subr.mxu0 %v3304_v4  ;;  %2728 = vmatprep.subr.mxu1 %v635_v31  ;;  %v551_v31 = vld [vmem:[%s6917_s6 + $0x78] sm:$0xff]  ;;  %v637_v32 = vld [vmem:[%s6917_s6 + $0x328] sm:$0xff]  ;;  %v630_v35 = vld [vmem:[%s6917_s6 + $0x2f0] sm:$0xff] }
 0x259   :  { %2695 = vmatpush2.msra.mxu0 %v1571_v33  ;;  %2729 = vmatpush1.msra.mxu1 %v634_v34  ;;  %v6275_v58 = vadd.f32 %v2155_v44, %v2085_v40  ;;  %v550_v33 = vld [vmem:[%s6917_s6 + $0x70] sm:$0xff]  ;;  %v636_v34 = vld [vmem:[%s6917_s6 + $0x320] sm:$0xff]  ;;  %v629_v40 = vld [vmem:[%s6917_s6 + $0x2e8] sm:$0xff] }
 0x25a   :  { %2696 = vmatprep.subr.mxu0 %v3304_v4  ;;  %2730 = vmatprep.subr.mxu1 %v628_v46  ;;  %v543_v46 = vld [vmem:[%s6917_s6 + $0x38] sm:$0xff]  ;;  %v537_v44 = vld [vmem:[%s6917_s6 + $0x8] sm:$0xff] }
 0x25b   :  { %2697 = vmatpush2.msra.mxu0 %v1564_v47  ;;  %2731 = vmatpush1.msra.mxu1 %v627_v48  ;;  %v623_v47 = vld [vmem:[%s6917_s6 + $0x2b8] sm:$0xff]  ;;  %v536_v48 = vld [vmem:[%s6917_s6] sm:$0xff] }
 0x25c   :  { %2698 = vmatprep.subr.mxu0 %v3304_v4  ;;  %2732 = vmatprep.subr.mxu1 %v621_v49  ;;  %v622_v49 = vld [vmem:[%s6917_s6 + $0x2b0] sm:$0xff] }
 0x25d   :  { %2699 = vmatpush2.msra.mxu0 %v1557_v59  ;;  %2733 = vmatpush1.msra.mxu1 %v620_v60  ;;  %v705_v59 = vld [vmem:[%s6917_s6 + $0x548] sm:$0xff]  ;;  %v616_v60 = vld [vmem:[%s6917_s6 + $0x280] sm:$0xff] }
 0x25e   :  { %2700 = vmatprep.subr.mxu0 %v3304_v4  ;;  %2734 = vmatprep.subr.mxu1 %v614_v63  ;;  %v704_v63 = vld [vmem:[%s6917_s6 + $0x540] sm:$0xff] }
 0x25f   :  { %2701 = vmatpush2.msra.mxu0 %v1550_v3  ;;  %2735 = vmatpush1.msra.mxu1 %v613_v10  ;;  %v615_v3 = vld [vmem:[%s6917_s6 + $0x278] sm:$0xff]  ;;  %v698_v10 = vld [vmem:[%s6917_s6 + $0x510] sm:$0xff] }
 0x260   :  { %2702 = vmatprep.subr.mxu0 %v3304_v4  ;;  %2736 = vmatprep.subr.mxu1 %v607_v5  ;;  %v609_v5 = vld [vmem:[%s6917_s6 + $0x248] sm:$0xff] }
 0x261   :  { %2703 = vmatpush2.msra.mxu0 %v1543_v8  ;;  %2737 = vmatpush1.msra.mxu1 %v606_v9  ;;  %v697_v8 = vld [vmem:[%s6917_s6 + $0x508] sm:$0xff]  ;;  %v608_v9 = vld [vmem:[%s6917_s6 + $0x240] sm:$0xff] }
 0x262   :  { %2704 = vmatprep.subr.mxu0 %v3304_v4  ;;  %2738 = vmatprep.subr.mxu1 %v600_v14  ;;  %v691_v14 = vld [vmem:[%s6917_s6 + $0x4d8] sm:$0xff] }
 0x263   :  { %2705 = vmatpush2.msra.mxu0 %v1536_v15  ;;  %2739 = vmatpush1.msra.mxu1 %v599_v16  ;;  %v602_v15 = vld [vmem:[%s6917_s6 + $0x210] sm:$0xff] }
 0x264   :  { %2706 = vmatprep.subr.mxu0 %v3304_v4  ;;  %2740 = vmatprep.subr.mxu1 %v593_v17  ;;  %v690_v16 = vld [vmem:[%s6917_s6 + $0x4d0] sm:$0xff]  ;;  %v601_v17 = vld [vmem:[%s6917_s6 + $0x208] sm:$0xff] }
 0x265   :  { %2707 = vmatpush2.msra.mxu0 %v1529_v18  ;;  %2741 = vmatpush1.msra.mxu1 %v592_v19  ;;  %v684_v18 = vld [vmem:[%s6917_s6 + $0x4a0] sm:$0xff]  ;;  %v595_v19 = vld [vmem:[%s6917_s6 + $0x1d8] sm:$0xff] }
 0x266   :  { %2708 = vmatprep.subr.mxu0 %v3304_v4  ;;  %2742 = vmatprep.subr.mxu1 %v586_v12  ;;  %v683_v12 = vld [vmem:[%s6917_s6 + $0x498] sm:$0xff] }
 0x267   :  { %2709 = vmatpush2.msra.mxu0 %v1522_v20  ;;  %2743 = vmatpush1.msra.mxu1 %v585_v37  ;;  %v594_v20 = vld [vmem:[%s6917_s6 + $0x1d0] sm:$0xff]  ;;  %v677_v37 = vld [vmem:[%s6917_s6 + $0x468] sm:$0xff] }
 0x268   :  { %2710 = vmatprep.subr.mxu0 %v3304_v4  ;;  %2744 = vmatprep.subr.mxu1 %v579_v2  ;;  %v588_v2 = vld [vmem:[%s6917_s6 + $0x1a0] sm:$0xff] }
 0x269   :  { %2711 = vmatpush2.msra.mxu0 %v1515_v21  ;;  %2745 = vmatpush1.msra.mxu1 %v578_v22  ;;  %v676_v21 = vld [vmem:[%s6917_s6 + $0x460] sm:$0xff]  ;;  %v587_v22 = vld [vmem:[%s6917_s6 + $0x198] sm:$0xff] }
 0x26a   :  { %2712 = vmatprep.subr.mxu0 %v3304_v4  ;;  %2746 = vmatprep.subr.mxu1 %v572_v41  ;;  %v670_v41 = vld [vmem:[%s6917_s6 + $0x430] sm:$0xff] }
 0x26b   :  { %2713 = vmatpush2.msra.mxu0 %v1508_v23  ;;  %2747 = vmatpush1.msra.mxu1 %v571_v24  ;;  %v581_v23 = vld [vmem:[%s6917_s6 + $0x168] sm:$0xff]  ;;  %v65_v24 = vrot.slane %v6186_v6, %v3906_v51  ;;  %v574_v6 = vld [vmem:[%s6917_s6 + $0x130] sm:$0xff] }
 0x26c   :  { %2714 = vmatprep.subr.mxu0 %v3304_v4  ;;  %2748 = vmatprep.subr.mxu1 %v565_v25  ;;  %v669_v25 = vld [vmem:[%s6917_s6 + $0x428] sm:$0xff] }
 0x26d   :  { %2715 = vmatpush2.msra.mxu0 %v1501_v45  ;;  %2749 = vmatpush1.msra.mxu1 %v564_v26  ;;  %v580_v45 = vld [vmem:[%s6917_s6 + $0x160] sm:$0xff]  ;;  %v663_v26 = vld [vmem:[%s6917_s6 + $0x3f8] sm:$0xff] }
 0x26e   :  { %2717 = vmatmul.mubr.f32.vlgmr.msra.gmra.mxu0 %v4322_v43  ;;  %2750 = vmatprep.subr.mxu1 %v558_v27  ;;  %v544_v43 = vld [vmem:[%s6917_s6 + $0x40] sm:$0xff]  ;;  %v662_v27 = vld [vmem:[%s6917_s6 + $0x3f0] sm:$0xff] }
 0x26f   :  { %2797 = vmatprep.subr.mxu0 %v644_v28  ;;  %2751 = vmatpush1.msra.mxu1 %v557_v29  ;;  %v573_v28 = vld [vmem:[%s6917_s6 + $0x128] sm:$0xff]  ;;  %v656_v29 = vld [vmem:[%s6917_s6 + $0x3c0] sm:$0xff] }
 0x270   :  { %2798 = vmatpush1.msra.mxu0 %v643_v30  ;;  %3137 = vmatprep.mubr.msk.f32.mxu0 %vm2722_vm5, %v6245_v52  ;;  %v567_v30 = vld [vmem:[%s6917_s6 + $0xf8] sm:$0xff] }
 0x271   :  { %2752 = vmatprep.subr.mxu1 %v551_v31  ;;  %2799 = vmatprep.subr.mxu0 %v637_v32  ;;  %v150_v31 = vadd.f32 %v4180_v36, %v65_v24  ;;  %v655_v32 = vld [vmem:[%s6917_s6 + $0x3b8] sm:$0xff]  ;;  %v560_v36 = vld [vmem:[%s6917_s6 + $0xc0] sm:$0xff] }
 0x272   :  { %2753 = vmatpush1.msra.mxu1 %v550_v33  ;;  %2800 = vmatpush1.msra.mxu0 %v636_v34  ;;  %v566_v33 = vld [vmem:[%s6917_s6 + $0xf0] sm:$0xff]  ;;  %v649_v34 = vld [vmem:[%s6917_s6 + $0x388] sm:$0xff]  ;;  %v603_v24 = vld [vmem:[%s6917_s6 + $0x218] sm:$0xff] }
 0x273   :  { %2754 = vmatprep.subr.mxu1 %v544_v43  ;;  %2801 = vmatprep.subr.mxu0 %v630_v35  ;;  %v648_v43 = vld [vmem:[%s6917_s6 + $0x380] sm:$0xff]  ;;  %v559_v35 = vld [vmem:[%s6917_s6 + $0xb8] sm:$0xff] }
 0x274   :  { %2755 = vmatpush1.msra.mxu1 %v543_v46  ;;  %2802 = vmatpush1.msra.mxu0 %v629_v40  ;;  %v553_v46 = vld [vmem:[%s6917_s6 + $0x88] sm:$0xff]  ;;  %v6530_v40 = vmax.f32 %v150_v31, 0.0 }
 0x275   :  { %2756 = vmatprep.subr.mxu1 %v537_v44  ;;  %2803 = vmatprep.subr.mxu0 %v623_v47  ;;  %v646_v44 = vld [vmem:[%s6917_s6 + $0x370] sm:$0xff]  ;;  %v552_v47 = vld [vmem:[%s6917_s6 + $0x80] sm:$0xff]  ;;  %v665_v31 = vld [vmem:[%s6917_s6 + $0x408] sm:$0xff] }
 0x276   :  { %2757 = vmatpush1.msra.mxu1 %v536_v48  ;;  %2804 = vmatpush1.msra.mxu0 %v622_v49  ;;  %v645_v48 = vld [vmem:[%s6917_s6 + $0x368] sm:$0xff]  ;;  %v546_v49 = vld [vmem:[%s6917_s6 + $0x50] sm:$0xff] }
 0x277   :  { %2772 = vmatprep.subr.mxu1 %v705_v59  ;;  %2805 = vmatprep.subr.mxu0 %v616_v60  ;;  %v639_v59 = vld [vmem:[%s6917_s6 + $0x338] sm:$0xff]  ;;  %v545_v60 = vld [vmem:[%s6917_s6 + $0x48] sm:$0xff] }
 0x278   :  { %2773 = vmatpush2.msra.mxu1 %v704_v63  ;;  %2806 = vmatpush1.msra.mxu0 %v615_v3  ;;  %v638_v63 = vld [vmem:[%s6917_s6 + $0x330] sm:$0xff]  ;;  %v539_v3 = vld [vmem:[%s6917_s6 + $0x18] sm:$0xff] }
 0x279   :  { %2774 = vmatprep.subr.mxu1 %v698_v10  ;;  %2807 = vmatprep.subr.mxu0 %v609_v5  ;;  %v632_v10 = vld [vmem:[%s6917_s6 + $0x300] sm:$0xff]  ;;  %v538_v5 = vld [vmem:[%s6917_s6 + $0x10] sm:$0xff] }
 0x27a   :  { %2775 = vmatpush2.msra.mxu1 %v697_v8  ;;  %2808 = vmatpush1.msra.mxu0 %v608_v9  ;;  %v631_v8 = vld [vmem:[%s6917_s6 + $0x2f8] sm:$0xff] }
 0x27b   :  { %2776 = vmatprep.subr.mxu1 %v691_v14  ;;  %2809 = vmatprep.subr.mxu0 %v602_v15  ;;  %v707_v9 = vld [vmem:[%s6917_s6 + $0x558] sm:$0xff]  ;;  %v625_v14 = vld [vmem:[%s6917_s6 + $0x2c8] sm:$0xff]  ;;  %v706_v15 = vld [vmem:[%s6917_s6 + $0x550] sm:$0xff] }
 0x27c   :  { %2777 = vmatpush2.msra.mxu1 %v690_v16  ;;  %2810 = vmatpush1.msra.mxu0 %v601_v17  ;;  %v624_v16 = vld [vmem:[%s6917_s6 + $0x2c0] sm:$0xff] }
 0x27d   :  { %2778 = vmatprep.subr.mxu1 %v684_v18  ;;  %2811 = vmatprep.subr.mxu0 %v595_v19  ;;  %v700_v17 = vld [vmem:[%s6917_s6 + $0x520] sm:$0xff]  ;;  %v618_v18 = vld [vmem:[%s6917_s6 + $0x290] sm:$0xff]  ;;  %v699_v19 = vld [vmem:[%s6917_s6 + $0x518] sm:$0xff] }
 0x27e   :  { %2779 = vmatpush2.msra.mxu1 %v683_v12  ;;  %2812 = vmatpush1.msra.mxu0 %v594_v20  ;;  %v617_v12 = vld [vmem:[%s6917_s6 + $0x288] sm:$0xff] }
 0x27f   :  { %2780 = vmatprep.subr.mxu1 %v677_v37  ;;  %2813 = vmatprep.subr.mxu0 %v588_v2  ;;  %v693_v20 = vld [vmem:[%s6917_s6 + $0x4e8] sm:$0xff]  ;;  %v611_v37 = vld [vmem:[%s6917_s6 + $0x258] sm:$0xff]  ;;  %v692_v2 = vld [vmem:[%s6917_s6 + $0x4e0] sm:$0xff] }
 0x280   :  { %2781 = vmatpush2.msra.mxu1 %v676_v21  ;;  %2814 = vmatpush1.msra.mxu0 %v587_v22  ;;  %v610_v21 = vld [vmem:[%s6917_s6 + $0x250] sm:$0xff] }
 0x281   :  { %2782 = vmatprep.subr.mxu1 %v670_v41  ;;  %2815 = vmatprep.subr.mxu0 %v581_v23  ;;  %v686_v22 = vld [vmem:[%s6917_s6 + $0x4b0] sm:$0xff]  ;;  %v604_v41 = vld [vmem:[%s6917_s6 + $0x220] sm:$0xff]  ;;  %v685_v23 = vld [vmem:[%s6917_s6 + $0x4a8] sm:$0xff] }
 0x282   :  { %2783 = vmatpush2.msra.mxu1 %v669_v25  ;;  %2816 = vmatpush1.msra.mxu0 %v580_v45  ;;  %v679_v25 = vld [vmem:[%s6917_s6 + $0x478] sm:$0xff]  ;;  %v597_v45 = vld [vmem:[%s6917_s6 + $0x1e8] sm:$0xff] }
 0x283   :  { %2784 = vmatprep.subr.mxu1 %v663_v26  ;;  %2817 = vmatprep.subr.mxu0 %v574_v6  ;;  %v678_v26 = vld [vmem:[%s6917_s6 + $0x470] sm:$0xff]  ;;  %v596_v6 = vld [vmem:[%s6917_s6 + $0x1e0] sm:$0xff] }
 0x284   :  { %2785 = vmatpush2.msra.mxu1 %v662_v27  ;;  %2818 = vmatpush1.msra.mxu0 %v573_v28  ;;  %v672_v27 = vld [vmem:[%s6917_s6 + $0x440] sm:$0xff]  ;;  %v590_v28 = vld [vmem:[%s6917_s6 + $0x1b0] sm:$0xff] }
 0x285   :  { %2786 = vmatprep.subr.mxu1 %v656_v29  ;;  %2819 = vmatprep.subr.mxu0 %v567_v30  ;;  %v671_v29 = vld [vmem:[%s6917_s6 + $0x438] sm:$0xff]  ;;  %v589_v30 = vld [vmem:[%s6917_s6 + $0x1a8] sm:$0xff] }
 0x286   :  { %2787 = vmatpush2.msra.mxu1 %v655_v32  ;;  %2820 = vmatpush1.msra.mxu0 %v566_v33  ;;  %v583_v32 = vld [vmem:[%s6917_s6 + $0x178] sm:$0xff]  ;;  %v664_v33 = vld [vmem:[%s6917_s6 + $0x400] sm:$0xff] }
 0x287   :  { %2788 = vmatprep.subr.mxu1 %v649_v34  ;;  %2821 = vmatprep.subr.mxu0 %v560_v36  ;;  %v582_v34 = vld [vmem:[%s6917_s6 + $0x170] sm:$0xff] }
 0x288   :  { %2789 = vmatpush2.msra.mxu1 %v648_v43  ;;  %2822 = vmatpush1.msra.mxu0 %v559_v35  ;;  %v658_v36 = vld [vmem:[%s6917_s6 + $0x3d0] sm:$0xff]  ;;  %v576_v43 = vld [vmem:[%s6917_s6 + $0x140] sm:$0xff]  ;;  %v657_v35 = vld [vmem:[%s6917_s6 + $0x3c8] sm:$0xff] }
 0x289   :  { %2791 = vmatmul.mubr.f32.vlgmr.msra.gmra.mxu1 %v6530_v40  ;;  %2823 = vmatprep.subr.mxu0 %v553_v46  ;;  %v575_v46 = vld [vmem:[%s6917_s6 + $0x138] sm:$0xff] }
 0x28a   :  { %2868 = vmatprep.subr.mxu1 %v646_v44  ;;  %2824 = vmatpush1.msra.mxu0 %v552_v47  ;;  %v651_v44 = vld [vmem:[%s6917_s6 + $0x398] sm:$0xff]  ;;  %v569_v47 = vld [vmem:[%s6917_s6 + $0x108] sm:$0xff] }
 0x28b   :  { %2869 = vmatpush1.msra.mxu1 %v645_v48  ;;  %3138 = vmatprep.mubr.msk.f32.mxu1 %vm2722_vm5, %v6245_v52  ;;  %v650_v48 = vld [vmem:[%s6917_s6 + $0x390] sm:$0xff] }
 0x28c   :  { %2825 = vmatprep.subr.mxu0 %v546_v49  ;;  %2870 = vmatprep.subr.mxu1 %v639_v59  ;;  %v568_v49 = vld [vmem:[%s6917_s6 + $0x100] sm:$0xff]  ;;  %v562_v59 = vld [vmem:[%s6917_s6 + $0xd0] sm:$0xff] }
 0x28d   :  { %2826 = vmatpush1.msra.mxu0 %v545_v60  ;;  %2871 = vmatpush1.msra.mxu1 %v638_v63  ;;  %v561_v60 = vld [vmem:[%s6917_s6 + $0xc8] sm:$0xff]  ;;  %v647_v63 = vld [vmem:[%s6917_s6 + $0x378] sm:$0xff] }
 0x28e   :  { %2827 = vmatprep.subr.mxu0 %v539_v3  ;;  %2872 = vmatprep.subr.mxu1 %v632_v10  ;;  %v555_v3 = vld [vmem:[%s6917_s6 + $0x98] sm:$0xff]  ;;  %v554_v10 = vld [vmem:[%s6917_s6 + $0x90] sm:$0xff] }
 0x28f   :  { %2828 = vmatpush1.msra.mxu0 %v538_v5  ;;  %2873 = vmatpush1.msra.mxu1 %v631_v8  ;;  %v640_v5 = vld [vmem:[%s6917_s6 + $0x340] sm:$0xff] }
 0x290   :  { %2843 = vmatprep.subr.mxu0 %v707_v9  ;;  %2874 = vmatprep.subr.mxu1 %v625_v14  ;;  %v548_v8 = vld [vmem:[%s6917_s6 + $0x60] sm:$0xff]  ;;  %v547_v9 = vld [vmem:[%s6917_s6 + $0x58] sm:$0xff]  ;;  %v633_v14 = vld [vmem:[%s6917_s6 + $0x308] sm:$0xff] }
 0x291   :  { %2844 = vmatpush2.msra.mxu0 %v706_v15  ;;  %2875 = vmatpush1.msra.mxu1 %v624_v16  ;;  %v540_v15 = vld [vmem:[%s6917_s6 + $0x20] sm:$0xff]  ;;  %v626_v16 = vld [vmem:[%s6917_s6 + $0x2d0] sm:$0xff] }
 0x292   :  { %2845 = vmatprep.subr.mxu0 %v700_v17  ;;  %2876 = vmatprep.subr.mxu1 %v618_v18  ;;  %v709_v17 = vld [vmem:[%s6917_s6 + $0x568] sm:$0xff]  ;;  %v708_v18 = vld [vmem:[%s6917_s6 + $0x560] sm:$0xff] }
 0x293   :  { %2846 = vmatpush2.msra.mxu0 %v699_v19  ;;  %2877 = vmatpush1.msra.mxu1 %v617_v12  ;;  %v619_v19 = vld [vmem:[%s6917_s6 + $0x298] sm:$0xff]  ;;  %v702_v12 = vld [vmem:[%s6917_s6 + $0x530] sm:$0xff] }
 0x294   :  { %2847 = vmatprep.subr.mxu0 %v693_v20  ;;  %2878 = vmatprep.subr.mxu1 %v611_v37  ;;  %v701_v20 = vld [vmem:[%s6917_s6 + $0x528] sm:$0xff]  ;;  %v612_v37 = vld [vmem:[%s6917_s6 + $0x260] sm:$0xff] }
 0x295   :  { %2848 = vmatpush2.msra.mxu0 %v692_v2  ;;  %2879 = vmatpush1.msra.mxu1 %v610_v21  ;;  %v695_v2 = vld [vmem:[%s6917_s6 + $0x4f8] sm:$0xff]  ;;  %v694_v21 = vld [vmem:[%s6917_s6 + $0x4f0] sm:$0xff] }
 0x296   :  { %2849 = vmatprep.subr.mxu0 %v686_v22  ;;  %2880 = vmatprep.subr.mxu1 %v604_v41  ;;  %v605_v22 = vld [vmem:[%s6917_s6 + $0x228] sm:$0xff]  ;;  %v688_v41 = vld [vmem:[%s6917_s6 + $0x4c0] sm:$0xff] }
 0x297   :  { %2850 = vmatpush2.msra.mxu0 %v685_v23  ;;  %2881 = vmatpush1.msra.mxu1 %v603_v24  ;;  %v687_v23 = vld [vmem:[%s6917_s6 + $0x4b8] sm:$0xff]  ;;  %v598_v24 = vld [vmem:[%s6917_s6 + $0x1f0] sm:$0xff] }
 0x298   :  { %2851 = vmatprep.subr.mxu0 %v679_v25  ;;  %2882 = vmatprep.subr.mxu1 %v597_v45  ;;  %v681_v25 = vld [vmem:[%s6917_s6 + $0x488] sm:$0xff]  ;;  %v680_v45 = vld [vmem:[%s6917_s6 + $0x480] sm:$0xff] }
 0x299   :  { %2852 = vmatpush2.msra.mxu0 %v678_v26  ;;  %2883 = vmatpush1.msra.mxu1 %v596_v6  ;;  %v591_v26 = vld [vmem:[%s6917_s6 + $0x1b8] sm:$0xff]  ;;  %v674_v6 = vld [vmem:[%s6917_s6 + $0x450] sm:$0xff] }
 0x29a   :  { %2853 = vmatprep.subr.mxu0 %v672_v27  ;;  %2884 = vmatprep.subr.mxu1 %v590_v28  ;;  %v673_v27 = vld [vmem:[%s6917_s6 + $0x448] sm:$0xff]  ;;  %v584_v28 = vld [vmem:[%s6917_s6 + $0x180] sm:$0xff] }
 0x29b   :  { %2854 = vmatpush2.msra.mxu0 %v671_v29  ;;  %2885 = vmatpush1.msra.mxu1 %v589_v30  ;;  %v667_v29 = vld [vmem:[%s6917_s6 + $0x418] sm:$0xff]  ;;  %v666_v30 = vld [vmem:[%s6917_s6 + $0x410] sm:$0xff] }
 0x29c   :  { %2855 = vmatprep.subr.mxu0 %v665_v31  ;;  %2886 = vmatprep.subr.mxu1 %v583_v32  ;;  %v577_v31 = vld [vmem:[%s6917_s6 + $0x148] sm:$0xff]  ;;  %v660_v32 = vld [vmem:[%s6917_s6 + $0x3e0] sm:$0xff] }
 0x29d   :  { %2856 = vmatpush2.msra.mxu0 %v664_v33  ;;  %2887 = vmatpush1.msra.mxu1 %v582_v34  ;;  %v659_v33 = vld [vmem:[%s6917_s6 + $0x3d8] sm:$0xff]  ;;  %v570_v34 = vld [vmem:[%s6917_s6 + $0x110] sm:$0xff] }
 0x29e   :  { %2857 = vmatprep.subr.mxu0 %v658_v36  ;;  %2888 = vmatprep.subr.mxu1 %v576_v43  ;;  %v653_v36 = vld [vmem:[%s6917_s6 + $0x3a8] sm:$0xff]  ;;  %v652_v43 = vld [vmem:[%s6917_s6 + $0x3a0] sm:$0xff] }
 0x29f   :  { %2858 = vmatpush2.msra.mxu0 %v657_v35  ;;  %2889 = vmatpush1.msra.mxu1 %v575_v46  ;;  %v563_v35 = vld [vmem:[%s6917_s6 + $0xd8] sm:$0xff]  ;;  %v556_v46 = vld [vmem:[%s6917_s6 + $0xa0] sm:$0xff] }
 0x2a0   :  { %2859 = vmatprep.subr.mxu0 %v651_v44  ;;  %2890 = vmatprep.subr.mxu1 %v569_v47  ;;  %v549_v44 = vld [vmem:[%s6917_s6 + $0x68] sm:$0xff]  ;;  %v542_v47 = vld [vmem:[%s6917_s6 + $0x30] sm:$0xff] }
 0x2a1   :  { %2860 = vmatpush2.msra.mxu0 %v650_v48  ;;  %2891 = vmatpush1.msra.mxu1 %v568_v49  ;;  %v710_v48 = vld [vmem:[%s6917_s6 + $0x570] sm:$0xff]  ;;  %v703_v49 = vld [vmem:[%s6917_s6 + $0x538] sm:$0xff] }
 0x2a2   :  { %2862 = vmatmul.mubr.f32.vlgmr.msra.gmra.mxu0 %v6530_v40  ;;  %2892 = vmatprep.subr.mxu1 %v562_v59  ;;  %v696_v59 = vld [vmem:[%s6917_s6 + $0x500] sm:$0xff] }
 0x2a3   :  { %2939 = vmatprep.subr.mxu0 %v3304_v4  ;;  %2893 = vmatpush1.msra.mxu1 %v561_v60  ;;  %v689_v60 = vld [vmem:[%s6917_s6 + $0x4c8] sm:$0xff] }
 0x2a4   :  { %2940 = vmatpush1.msra.mxu0 %v647_v63  ;;  %3139 = vmatprep.mubr.msk.f32.mxu0 %vm2722_vm5, %v6245_v52  ;;  %v541_v52 = vld [vmem:[%s6917_s6 + $0x28] sm:$0xff]  ;;  %v2224_v63 = vpop.f32.mrf.mxu0 }
 0x2a5   :  { %2894 = vmatprep.subr.mxu1 %v555_v3  ;;  %2941 = vmatprep.subr.mxu0 %v3304_v4  ;;  %v2295_v3 = vpop.f32.mrf.mxu1 }
 0x2a6   :  { %2895 = vmatpush1.msra.mxu1 %v554_v10  ;;  %2942 = vmatpush1.msra.mxu0 %v640_v5  ;;  %v682_v10 = vld [vmem:[%s6917_s6 + $0x490] sm:$0xff]  ;;  %v675_v5 = vld [vmem:[%s6917_s6 + $0x458] sm:$0xff] }
 0x2a7   :  { %2896 = vmatprep.subr.mxu1 %v548_v8  ;;  %2943 = vmatprep.subr.mxu0 %v3304_v4  ;;  %v2226_v8 = vpop.f32.mrf.mxu0 }
 0x2a8   :  { %2897 = vmatpush1.msra.mxu1 %v547_v9  ;;  %2944 = vmatpush1.msra.mxu0 %v633_v14  ;;  %v2297_v9 = vpop.f32.mrf.mxu1  ;;  %v668_v14 = vld [vmem:[%s6917_s6 + $0x420] sm:$0xff] }
 0x2a9   :  { %2898 = vmatprep.subr.mxu1 %v541_v52  ;;  %2945 = vmatprep.subr.mxu0 %v3304_v4  ;;  %v2296_v52 = vadd.f32 %v2295_v3, %v2224_v63 }
 0x2aa   :  { %2899 = vmatpush1.msra.mxu1 %v540_v15  ;;  %2946 = vmatpush1.msra.mxu0 %v626_v16  ;;  %v661_v15 = vld [vmem:[%s6917_s6 + $0x3e8] sm:$0xff] }
 0x2ab   :  { %2914 = vmatprep.subr.mxu1 %v709_v17  ;;  %2947 = vmatprep.subr.mxu0 %v3304_v4  ;;  %v2298_v17 = vadd.f32 %v2297_v9, %v2226_v8 }
 0x2ac   :  { %2915 = vmatpush2.msra.mxu1 %v708_v18  ;;  %2948 = vmatpush1.msra.mxu0 %v619_v19  ;;  %v654_v19 = vld [vmem:[%s6917_s6 + $0x3b0] sm:$0xff] }
 0x2ad   :  { %2916 = vmatprep.subr.mxu1 %v702_v12  ;;  %2949 = vmatprep.subr.mxu0 %v3304_v4 }
 0x2ae   :  { %2917 = vmatpush2.msra.mxu1 %v701_v20  ;;  %2950 = vmatpush1.msra.mxu0 %v612_v37 }
 0x2af   :  { %2918 = vmatprep.subr.mxu1 %v695_v2  ;;  %2951 = vmatprep.subr.mxu0 %v3304_v4 }
 0x2b0   :  { %2919 = vmatpush2.msra.mxu1 %v694_v21  ;;  %2952 = vmatpush1.msra.mxu0 %v605_v22 }
 0x2b1   :  { %2920 = vmatprep.subr.mxu1 %v688_v41  ;;  %2953 = vmatprep.subr.mxu0 %v3304_v4 }
 0x2b2   :  { %2921 = vmatpush2.msra.mxu1 %v687_v23  ;;  %2954 = vmatpush1.msra.mxu0 %v598_v24 }
 0x2b3   :  { %2922 = vmatprep.subr.mxu1 %v681_v25  ;;  %2955 = vmatprep.subr.mxu0 %v3304_v4 }
 0x2b4   :  { %2923 = vmatpush2.msra.mxu1 %v680_v45  ;;  %2956 = vmatpush1.msra.mxu0 %v591_v26 }
 0x2b5   :  { %2924 = vmatprep.subr.mxu1 %v674_v6  ;;  %2957 = vmatprep.subr.mxu0 %v3304_v4 }
 0x2b6   :  { %2925 = vmatpush2.msra.mxu1 %v673_v27  ;;  %2958 = vmatpush1.msra.mxu0 %v584_v28 }
 0x2b7   :  { %2926 = vmatprep.subr.mxu1 %v667_v29  ;;  %2959 = vmatprep.subr.mxu0 %v3304_v4 }
 0x2b8   :  { %2927 = vmatpush2.msra.mxu1 %v666_v30  ;;  %2960 = vmatpush1.msra.mxu0 %v577_v31  ;;  %v1730_v31 = vadd.f32 %v6157_v56, %v6155_v54 }
 0x2b9   :  { %2928 = vmatprep.subr.mxu1 %v660_v32  ;;  %2961 = vmatprep.subr.mxu0 %v3304_v4 }
 0x2ba   :  { %2929 = vmatpush2.msra.mxu1 %v659_v33  ;;  %2962 = vmatpush1.msra.mxu0 %v570_v34  ;;  %v6877_v33 = vld [vmem:[%s6919_s8] sm:$0x7f]  ;;  %v1801_v34 = vadd.f32 %v6200_v1, %v1730_v31  ;;  %s3305_s8 = smov [#allocation2]  }
 0x2bb   :  { %2930 = vmatprep.subr.mxu1 %v653_v36  ;;  %2963 = vmatprep.subr.mxu0 %v3304_v4  ;;  %s3109_s19 = sshll.u32 %s3305_s8, 4  ;;  %s3110_s19 = int_to_ptr.vmem [resolvable:$true] %s3109_s19 }
 0x2bc   :  { %2931 = vmatpush2.msra.mxu1 %v652_v43  ;;  %2964 = vmatpush1.msra.mxu0 %v563_v35  ;;  %v3014_v43 = vrot.slane %v6877_v33, %v3906_v51  ;;  %s3282_s20 = scalar_lea.vmem %s3110_s19, 896  ;;  %p3287_p1 = scmp.lt.s32.totalorder %s3110_s19, %s3110_s19 }
 0x2bd   :  { %2933 = vmatmul.mubr.f32.vlgmr.msra.gmra.mxu1 %v6530_v40  ;;  %2965 = vmatprep.subr.mxu0 %v3304_v4  ;;  %p3283_p0 = scmp.ne.s32.totalorder %s3110_s19, %s3282_s20  ;;  %p3288_p2 = scmp.lt.s32.totalorder %s3282_s20, %s3282_s20 }
 0x2be   :  { %2966 = vmatpush1.msra.mxu0 %v556_v46 }
 0x2bf   :  { %2967 = vmatprep.subr.mxu0 %v3304_v4  ;;  %p3289_p3 = por %p3288_p2, %p3287_p1 }
 0x2c0   :  { %2968 = vmatpush1.msra.mxu0 %v549_v44 }
 0x2c1   :  { %2969 = vmatprep.subr.mxu0 %v3304_v4  ;;  %p3290_p4 = pnand %p3289_p3, %p3283_p0 }
 0x2c2   :  { %2970 = vmatpush1.msra.mxu0 %v542_v47 }
 0x2c3   :  { %2985 = vmatprep.subr.mxu0 %v3304_v4 }
 0x2c4   :  { %2986 = vmatpush2.msra.mxu0 %v710_v48 }
 0x2c5   :  { %2987 = vmatprep.subr.mxu0 %v3304_v4 }
 0x2c6   :  { %2988 = vmatpush2.msra.mxu0 %v703_v49 }
 0x2c7   :  { %2989 = vmatprep.subr.mxu0 %v3304_v4 }
 0x2c8   :  { %2990 = vmatpush2.msra.mxu0 %v696_v59 }
 0x2c9   :  { %2991 = vmatprep.subr.mxu0 %v3304_v4 }
 0x2ca   :  { %2992 = vmatpush2.msra.mxu0 %v689_v60  ;;  %v3026_v60 = vrot.slane %v6877_v33, %v189_v57 }
 0x2cb   :  { %2993 = vmatprep.subr.mxu0 %v3304_v4 }
 0x2cc   :  { %2994 = vmatpush2.msra.mxu0 %v682_v10 }
 0x2cd   :  { %2995 = vmatprep.subr.mxu0 %v3304_v4 }
 0x2ce   :  { %2996 = vmatpush2.msra.mxu0 %v675_v5 }
 0x2cf   :  { %2997 = vmatprep.subr.mxu0 %v3304_v4  ;;  %v2366_v16 = vpop.f32.mrf.mxu0 }
 0x2d0   :  { %2998 = vmatpush2.msra.mxu0 %v668_v14  ;;  %v6853_v18 = vadd.f32 %v2366_v16, %v2296_v52 }
 0x2d1   :  { %2999 = vmatprep.subr.mxu0 %v3304_v4  ;;  %v2368_v12 = vpop.f32.mrf.mxu0 }
 0x2d2   :  { %3000 = vmatpush2.msra.mxu0 %v661_v15  ;;  %v6859_v20 = vadd.f32 %v2368_v12, %v2298_v17  ;;  %v6863_v37 = vpop.f32.mrf.mxu1 }
 0x2d3   :  { %3001 = vmatprep.subr.mxu0 %v3304_v4  ;;  %v2438_v57 = vadd.f32 %v6863_v37, %v6853_v18 }
 0x2d4   :  { %3002 = vmatpush2.msra.mxu0 %v654_v19  ;;  %v6865_v21 = vpop.f32.mrf.mxu1 }
 0x2d5   :  { %3004 = vmatmul.mubr.f32.vlgmr.msra.gmra.mxu0 %v6530_v40  ;;  %v1728_v40 = vadd.f32 %v6133_v39, %v6131_v38  ;;  %v1872_v38 = vadd.f32 %v6198_v13, %v1801_v34  ;;  %v3018_v39 = vrot.slane %v6877_v33, %v3914_v53  ;;  %v3022_v13 = vrot.slane %v6877_v33, %v185_v55 }
 0x2d6   :  { %v2440_v19 = vadd.f32 %v6865_v21, %v6859_v20 }
 0x2d7   :  { %v1799_v32 = vadd.f32 %v6171_v62, %v1728_v40 }
 0x2d9   :  { %v1870_v36 = vadd.f32 %v6169_v61, %v1799_v32 }
 0x2f1   :  { %v3214_v2 = vpop.f32.mrf.mxu0 }
 0x2f3   :  { %v3215_v22 = vpop.f32.mrf.mxu0 }
 0x2f4   :  { %v3179_v41 = vpop.f32.mrf.mxu1  ;;  %v3216_v23 = vadd.f32 %v3215_v22, %v3214_v2  ;;  %v3034_v2 = vrot.slane %v6877_v33, %v197_v0  ;;  %v3038_v0 = vrot.slane %v6877_v33, %v201_v7 }
 0x2f6   :  { %v3180_v24 = vpop.f32.mrf.mxu1 }
 0x2f7   :  { %v3181_v25 = vadd.f32 %v3180_v24, %v3179_v41 }
 0x2f9   :  { %v2579_v45 = vadd.f32 %v3216_v23, %v3181_v25 }
 0x315   :  { %v3249_v26 = vpop.f32.mrf.mxu1 }
 0x317   :  { %v3250_v6 = vpop.f32.mrf.mxu1 }
 0x318   :  { %v3251_v27 = vadd.f32 %v3250_v6, %v3249_v26 }
 0x31a   :  { %v2649_v28 = vadd.f32 %v3251_v27, %v2579_v45 }
 0x32e   :  { %v2718_v29 = vpop.f32.mrf.mxu0 }
 0x32f   :  { %v6867_v4 = vadd.f32 %v2718_v29, %v2649_v28 }
 0x330   :  { %v2720_v30 = vpop.f32.mrf.mxu0 }
 0x349   :  { %v2792_v35 = vpop.f32.mrf.mxu1 }
 0x34a   :  { %v2793_v46 = vadd.f32 %v2792_v35, %v1870_v36 }
 0x34b   :  { %v2794_v54 = vpop.f32.mrf.mxu1 }
 0x34c   :  { %v3046_v56 = vadd.f32 %v3014_v43, %v2793_v46  ;;  %v2795_v62 = vadd.f32 %v2794_v54, %v1872_v38 }
 0x34e   :  { %v3140_v44 = vmul.f32 -1.442695, %v3046_v56  ;;  %v3047_v47 = vadd.f32 %v3018_v39, %v2795_v62 }
 0x350   :  { %3254 = vpow2.f32 %v3140_v44  ;;  %v3141_v48 = vmul.f32 -1.442695, %v3047_v47 }
 0x352   :  { %3256 = vpow2.f32 %v3141_v48 }
 0x35d   :  { %v3255_v1 = vpop.eup %3254 }
 0x35e   :  { %v3074_v61 = vadd.f32 1.0, %v3255_v1 }
 0x35f   :  { %v3257_v49 = vpop.eup %3256 }
 0x360   :  { %3258 = vrcp.f32 %v3074_v61  ;;  %v3075_v51 = vadd.f32 1.0, %v3257_v49 }
 0x362   :  { %3260 = vrcp.f32 %v3075_v51  ;;  %v2863_v59 = vpop.f32.mrf.mxu0 }
 0x363   :  { %v2864_v53 = vadd.f32 %v2863_v59, %v6263_v42 }
 0x364   :  { %v2865_v63 = vpop.f32.mrf.mxu0 }
 0x365   :  { %v3048_v3 = vadd.f32 %v3022_v13, %v2864_v53  ;;  %v2866_v10 = vadd.f32 %v2865_v63, %v6275_v58  ;;  %v3030_v58 = vrot.slane %v6877_v33, %v193_v11 }
 0x367   :  { %v3142_v5 = vmul.f32 -1.442695, %v3048_v3  ;;  %v3049_v8 = vadd.f32 %v3026_v60, %v2866_v10 }
 0x369   :  { %3262 = vpow2.f32 %v3142_v5  ;;  %v3143_v9 = vmul.f32 -1.442695, %v3049_v8 }
 0x36b   :  { %3264 = vpow2.f32 %v3143_v9 }
 0x36d   :  { %v3259_v14 = vpop.eup %3258 }
 0x36e   :  { %3095 = vst [vmem:[#allocation2] sm:$0xff] %v3259_v14 }
 0x36f   :  { %v3261_v55 = vpop.eup %3260 }
 0x370   :  { %3096 = vst [vmem:[#allocation2 + $0x8] sm:$0xff] %v3261_v55 }
 0x376   :  { %v3263_v52 = vpop.eup %3262 }
 0x377   :  { %v3076_v15 = vadd.f32 1.0, %v3263_v52 }
 0x378   :  { %v3265_v42 = vpop.eup %3264 }
 0x379   :  { %3266 = vrcp.f32 %v3076_v15  ;;  %v3077_v16 = vadd.f32 1.0, %v3265_v42 }
 0x37b   :  { %3268 = vrcp.f32 %v3077_v16 }
 0x37d   :  { %v2934_v17 = vpop.f32.mrf.mxu1 }
 0x37e   :  { %v2935_v12 = vadd.f32 %v2934_v17, %v2438_v57 }
 0x37f   :  { %v2936_v22 = vpop.f32.mrf.mxu1 }
 0x380   :  { %v3050_v41 = vadd.f32 %v3030_v58, %v2935_v12  ;;  %v2937_v23 = vadd.f32 %v2936_v22, %v2440_v19 }
 0x382   :  { %v3144_v24 = vmul.f32 -1.442695, %v3050_v41  ;;  %v3051_v25 = vadd.f32 %v3034_v2, %v2937_v23 }
 0x384   :  { %3270 = vpow2.f32 %v3144_v24  ;;  %v3145_v18 = vmul.f32 -1.442695, %v3051_v25 }
 0x386   :  { %v3267_v37 = vpop.eup %3266  ;;  %3272 = vpow2.f32 %v3145_v18 }
 0x387   :  { %3097 = vst [vmem:[#allocation2 + $0x10] sm:$0xff] %v3267_v37 }
 0x388   :  { %v3269_v11 = vpop.eup %3268 }
 0x389   :  { %3098 = vst [vmem:[#allocation2 + $0x18] sm:$0xff] %v3269_v11 }
 0x391   :  { %v3271_v45 = vpop.eup %3270 }
 0x392   :  { %v3078_v26 = vadd.f32 1.0, %v3271_v45 }
 0x393   :  { %v3273_v20 = vpop.eup %3272 }
 0x394   :  { %3274 = vrcp.f32 %v3078_v26  ;;  %v3079_v21 = vadd.f32 1.0, %v3273_v20 }
 0x395   :  { %v3005_v6 = vpop.f32.mrf.mxu0 }
 0x396   :  { %3276 = vrcp.f32 %v3079_v21  ;;  %v3006_v27 = vadd.f32 %v3005_v6, %v6867_v4 }
 0x397   :  { %v3007_v28 = vpop.f32.mrf.mxu0 }
 0x398   :  { %v3052_v29 = vadd.f32 %v3038_v0, %v3006_v27 }
 0x39a   :  { %v3146_v30 = vmul.f32 -1.442695, %v3052_v29 }
 0x39c   :  { %3278 = vpow2.f32 %v3146_v30 }
 0x3a1   :  { %v3275_v40 = vpop.eup %3274 }
 0x3a2   :  { %3099 = vst [vmem:[#allocation2 + $0x20] sm:$0xff] %v3275_v40 }
 0x3a3   :  { %v3277_v31 = vpop.eup %3276 }
 0x3a4   :  { %3100 = vst [vmem:[#allocation2 + $0x28] sm:$0xff] %v3277_v31 }
 0x3a9   :  { %v3279_v32 = vpop.eup %3278 }
 0x3aa   :  { %v3080_v34 = vadd.f32 1.0, %v3279_v32 }
 0x3ac   :  { %3280 = vrcp.f32 %v3080_v34 }
 0x3b9   :  { %v3281_v50 = vpop.eup %3280 }
 0x3ba   :  { %3102 = vst.msk [vmem:[#allocation2 + $0x30] sm:$0xff] %vm3101_vm6, %v3281_v50 }
 0x3bb   :  { %3293 = shalt.err (!%p3290_p4)
}
 0x3bc   :  { %3112 = dma.vmem_to_hbm [thread:$0]  %s3110_s19, 896, %s6920_s9, [#allocation3]  }
 0x3bd   :  { %3302 = dma.done.wait [#allocation3], 896  }
 0x3be   :  { %3303 = vsyncadd [#allocation3], 4294966400 }
 0x3bf   :  { %3116 = vsyncpa [#allocation3], 1 }

</bundles_post_ra>
